<compile_context>
chip_gen: v5e
topology: v5e:2x2
jax: 0.10.0
libtpu: 0.0.40
codegen_flags: <defaults>
</compile_context>

<pallas_src>
import jax
import jax.numpy as jnp
from jax import lax
from jax.experimental import pallas as pl
from jax.experimental.pallas import tpu as pltpu

NEG_SLOPE = 0.2     # PyG GATConv default negative_slope
NEG_INF = -1e30     # f32-only mask value (softmax path stays f32)
LANE = 128
SUBLANE = 8


def _round_up(v, m):
    return ((v + m - 1) // m) * m


# ----------------------------------------------------------------------------- kernel
def _gat_layer(h, adj, w_ref, a_src, a_dst, bias):
    """One dense (block-diagonal masked) GATConv layer, heads=1.

    h:     (M, K)  f32 activations (zero padded)
    adj:   (M, M)  f32 edge multiplicities (block diagonal, diag=1 self loops)
    w_ref: (K, H)  bf16 weight ref
    a_src / a_dst / bias: (1, H) f32
    """
    # Node transform on the MXU: bf16 operands, f32 accumulation.
    xp = jnp.dot(h.astype(jnp.bfloat16), w_ref[...],
                 preferred_element_type=jnp.float32)                     # (M, H) f32

    # Attention scores (kept in f32).
    dst_col = jnp.sum(xp * a_dst, axis=-1, keepdims=True)                # (M, 1)
    # Source scores as a lane-major row via an M=1, K=H matvec on the MXU
    # (contract last dims == a_src @ xp^T, no transpose / ones matmul needed).
    src_row = lax.dot_general(a_src, xp, (((1,), (1,)), ((), ())),
                              preferred_element_type=jnp.float32)        # (1, M)
    e = dst_col + src_row                                                # (M, M)
    e = jnp.where(e > 0.0, e, NEG_SLOPE * e)                             # LeakyReLU

    # Masked softmax over source nodes j; adj[i,j] = multiplicity of edge j->i
    # (diag = 1 for every row, incl. padded rows -> denominator never 0).
    e = jnp.where(adj > 0.0, e, NEG_INF)
    m = jnp.max(e, axis=-1, keepdims=True)
    p = jnp.exp(e - m) * adj
    alpha = p / jnp.sum(p, axis=-1, keepdims=True)

    # Aggregate on the MXU (bf16 operands, f32 accumulation) + bias.
    agg = jnp.dot(alpha.astype(jnp.bfloat16), xp.astype(jnp.bfloat16),
                  preferred_element_type=jnp.float32)                    # (M, H) f32
    return agg + bias


def gat_kernel(x_ref, adj_ref, pool_ref, w1_ref, w2_ref, w3_ref,
               vec_ref, linw_ref, out_ref):
    x = x_ref[...]                      # (M, F_pad) f32, graphs stacked along rows
    adj = adj_ref[0]                    # (M, M) f32 block-diagonal adjacency

    # Packed per-layer attention / bias vectors + classifier bias (one DMA).
    a1s = vec_ref[0:1, :]; a1d = vec_ref[1:2, :]; b1 = vec_ref[2:3, :]
    a2s = vec_ref[3:4, :]; a2d = vec_ref[4:5, :]; b2 = vec_ref[5:6, :]
    a3s = vec_ref[6:7, :]; a3d = vec_ref[7:8, :]; b3 = vec_ref[8:9, :]
    lin_b = vec_ref[9:10, :]

    h1 = jnp.maximum(_gat_layer(x,  adj, w1_ref, a1s, a1d, b1), 0.0)
    h2 = jnp.maximum(_gat_layer(h1, adj, w2_ref, a2s, a2d, b2), 0.0)
    h3 = _gat_layer(h2, adj, w3_ref, a3s, a3d, b3)

    # global_mean_pool: precomputed (G, M) matrix with 1/n_g on valid nodes.
    pooled = jnp.dot(pool_ref[...], h3, preferred_element_type=jnp.float32)   # (G, H)

    # TODO(synk): training-mode dropout (p=0.5) after pooling not implemented;
    # eval/inference semantics (identity) only.

    # Fused classifier: (G, H) @ (H, C_pad) + bias -> unmasked (8, 128) store.
    out_ref[...] = jnp.dot(pooled, linw_ref[...],
                           preferred_element_type=jnp.float32) + lin_b


# ----------------------------------------------------------------------------- wrapper
def gat_forward(x_nodes, adj_blk, pool, w1, w2, w3, vecs, lin_w, *, graphs_per_step):
    total_nodes, f_pad = x_nodes.shape
    b_pad = pool.shape[0]
    h_pad = w1.shape[1]
    c_pad = lin_w.shape[1]
    num_groups, n_group, _ = adj_blk.shape
    G = graphs_per_step
    assert total_nodes == num_groups * n_group
    assert b_pad == num_groups * G

    grid_spec = pltpu.PrefetchScalarGridSpec(
        num_scalar_prefetch=0,
        grid=(num_groups,),                 # collapsed to 1 step at this batch size
        in_specs=[
            pl.BlockSpec((n_group, f_pad), lambda s: (s, 0)),          # stacked nodes
            pl.BlockSpec((1, n_group, n_group), lambda s: (s, 0, 0)),  # block-diag adj
            pl.BlockSpec((G, n_group), lambda s: (s, s)),              # pool block
            pl.BlockSpec((f_pad, h_pad), lambda s: (0, 0)),            # W1 (bf16)
            pl.BlockSpec((h_pad, h_pad), lambda s: (0, 0)),            # W2 (bf16)
            pl.BlockSpec((h_pad, h_pad), lambda s: (0, 0)),            # W3 (bf16)
            pl.BlockSpec((16, h_pad), lambda s: (0, 0)),               # packed vectors
            pl.BlockSpec((h_pad, c_pad), lambda s: (0, 0)),            # classifier W
        ],
        out_specs=pl.BlockSpec((G, c_pad), lambda s: (s, 0)),          # (8,128) dense
    )

    # Advisory cost for XLA scheduling around the kernel.
    Mn = n_group
    flops = num_groups * (
        2 * Mn * f_pad * h_pad                      # layer-1 node transform
        + 2 * 2 * Mn * h_pad * h_pad                # layer-2/3 node transforms
        + 3 * (2 * Mn * h_pad + 2 * Mn * Mn * h_pad)  # src matvec + aggregation
        + 2 * G * Mn * h_pad + 2 * G * h_pad * c_pad  # pool + classifier
    )
    bytes_accessed = (x_nodes.size * 4 + adj_blk.size * 4 + pool.size * 4
                      + (w1.size + w2.size + w3.size) * 2
                      + vecs.size * 4 + lin_w.size * 4 + b_pad * c_pad * 4)
    cost = pl.CostEstimate(flops=flops,
                           transcendentals=3 * num_groups * Mn * Mn,
                           bytes_accessed=bytes_accessed)

    return pl.pallas_call(
        gat_kernel,
        out_shape=jax.ShapeDtypeStruct((b_pad, c_pad), jnp.float32),
        grid_spec=grid_spec,
        compiler_params=pltpu.CompilerParams(
            dimension_semantics=("parallel",),      # graph groups are independent
            vmem_limit_bytes=32 * 1024 * 1024),
        cost_estimate=cost,
    )(x_nodes, adj_blk, pool, w1, w2, w3, vecs, lin_w)


# ----------------------------------------------------------------------------- params / data
def make_params(key, num_node_features, hidden, num_classes):
    """Deterministic synthetic parameters matching the PyTorch module's shapes."""
    ks = jax.random.split(key, 11)

    def glorot(k, shape):
        s = jnp.sqrt(6.0 / (shape[0] + shape[-1]))
        return jax.random.uniform(k, shape, jnp.float32, -s, s)

    return {
        # GATConv(num_node_features, hidden): lin (no bias), att_src/att_dst, bias
        "w1": glorot(ks[0], (num_node_features, hidden)),
        "a1s": glorot(ks[1], (1, hidden)), "a1d": glorot(ks[2], (1, hidden)),
        "b1": jnp.zeros((1, hidden), jnp.float32),
        # GATConv(hidden, hidden)
        "w2": glorot(ks[3], (hidden, hidden)),
        "a2s": glorot(ks[4], (1, hidden)), "a2d": glorot(ks[5], (1, hidden)),
        "b2": jnp.full((1, hidden), 0.01, jnp.float32),
        # GATConv(hidden, hidden)
        "w3": glorot(ks[6], (hidden, hidden)),
        "a3s": glorot(ks[7], (1, hidden)), "a3d": glorot(ks[8], (1, hidden)),
        "b3": jnp.full((1, hidden), -0.01, jnp.float32),
        # Linear(hidden, num_classes)
        "wl": glorot(ks[9], (hidden, num_classes)),
        "bl": jax.random.uniform(ks[10], (1, num_classes), jnp.float32, -0.1, 0.1),
    }


def pack_params(params, f_pad, h_pad, c_pad):
    """Pad weights, cast layer weights to bf16, pack the small vectors."""
    def pad2(w, rows, cols):
        return jnp.pad(w, ((0, rows - w.shape[0]), (0, cols - w.shape[1])))

    w1 = pad2(params["w1"], f_pad, h_pad).astype(jnp.bfloat16)
    w2 = pad2(params["w2"], h_pad, h_pad).astype(jnp.bfloat16)
    w3 = pad2(params["w3"], h_pad, h_pad).astype(jnp.bfloat16)

    rows = [params["a1s"], params["a1d"], params["b1"],
            params["a2s"], params["a2d"], params["b2"],
            params["a3s"], params["a3d"], params["b3"],
            params["bl"]]
    vecs = jnp.zeros((16, h_pad), jnp.float32)
    for i, r in enumerate(rows):
        vecs = vecs.at[i, :r.shape[1]].set(r[0])

    lin_w = pad2(params["wl"], h_pad, c_pad)                # f32 (tiny)
    return w1, w2, w3, vecs, lin_w


def build_batch(x, edge_index, num_graphs, nodes_per_graph, b_pad, n_pad, f_pad):
    """Stacked/padded node features, block-diagonal adjacency and pool matrix.

    Assumes nodes are sorted by graph and graphs are equal-sized (standard PyG
    batching of same-size graphs).  TODO(synk): ragged / unequal graph sizes
    would need per-graph node counts / offsets when building these operands.
    """
    N, F = x.shape
    src, dst = edge_index[0], edge_index[1]
    a = jnp.zeros((N, N), jnp.float32).at[dst, src].add(1.0)   # a[i,j] = #edges j->i
    eye = jnp.eye(N, dtype=jnp.float32)
    a_dense = a * (1.0 - eye) + eye        # GATConv: remove self loops, add exactly one

    total = b_pad * n_pad
    x_nodes = jnp.zeros((total, f_pad), jnp.float32)
    adj = jnp.eye(total, dtype=jnp.float32)  # self loop everywhere keeps softmax finite
    pool = jnp.zeros((b_pad, total), jnp.float32)
    inv_n = 1.0 / nodes_per_graph
    for g in range(num_graphs):
        r0 = g * nodes_per_graph
        p0 = g * n_pad
        x_nodes = x_nodes.at[p0:p0 + nodes_per_graph, :F].set(x[r0:r0 + nodes_per_graph])
        adj = adj.at[p0:p0 + nodes_per_graph, p0:p0 + nodes_per_graph].set(
            a_dense[r0:r0 + nodes_per_graph, r0:r0 + nodes_per_graph])
        pool = pool.at[g, p0:p0 + nodes_per_graph].set(inv_n)
    return x_nodes, adj[None], pool, a_dense


# ----------------------------------------------------------------------------- reference
def _mm(a, b):
    # Numerics-matched to the kernel: bf16 operands, f32 accumulation (MXU path).
    return jnp.dot(a.astype(jnp.bfloat16), b.astype(jnp.bfloat16),
                   preferred_element_type=jnp.float32)


def _gat_layer_ref(h, a_dense, w, a_s, a_d, b):
    xp = _mm(h, w)
    src = jnp.sum(xp * a_s, axis=-1, keepdims=True)
    dst = jnp.sum(xp * a_d, axis=-1, keepdims=True)
    e = dst + src.T
    e = jnp.where(e > 0.0, e, NEG_SLOPE * e)
    e = jnp.where(a_dense > 0.0, e, NEG_INF)
    m = e.max(-1, keepdims=True)
    p = jnp.exp(e - m) * a_dense
    alpha = p / p.sum(-1, keepdims=True)
    return _mm(alpha, xp) + b


def reference_forward(x, a_dense, pool_mat, params):
    h = jnp.maximum(_gat_layer_ref(x, a_dense, params["w1"], params["a1s"],
                                   params["a1d"], params["b1"]), 0.0)
    h = jnp.maximum(_gat_layer_ref(h, a_dense, params["w2"], params["a2s"],
                                   params["a2d"], params["b2"]), 0.0)
    h = _gat_layer_ref(h, a_dense, params["w3"], params["a3s"],
                       params["a3d"], params["b3"])
    return (pool_mat @ h) @ params["wl"] + params["bl"]


# ----------------------------------------------------------------------------- main
if __name__ == "__main__":
    # 2 graphs of 16 nodes each, 16 node features, hidden 32, 2 classes.
    num_graphs = 2
    nodes_per_graph = 16
    N = num_graphs * nodes_per_graph
    num_node_features = 16
    hidden = 32
    num_classes = 2

    key = jax.random.PRNGKey(0)
    kx, kp = jax.random.split(key)

    x = jax.random.normal(kx, (N, num_node_features), jnp.float32)
    batch = jnp.repeat(jnp.arange(num_graphs, dtype=jnp.int32), nodes_per_graph)

    # Deterministic bidirectional ring within each subgraph.
    idx = jnp.arange(nodes_per_graph, dtype=jnp.int32)
    srcs, dsts = [], []
    for g in range(num_graphs):
        off = g * nodes_per_graph
        s = off + idx
        d = off + (idx + 1) % nodes_per_graph
        srcs += [s, d]
        dsts += [d, s]
    edge_index = jnp.stack([jnp.concatenate(srcs), jnp.concatenate(dsts)], axis=0)

    f_pad = _round_up(num_node_features, LANE)
    h_pad = _round_up(hidden, LANE)
    c_pad = _round_up(num_classes, LANE)
    assert c_pad == h_pad                      # lin_b shares the packed-vector width
    n_pad = _round_up(nodes_per_graph, SUBLANE)
    b_pad = _round_up(num_graphs, SUBLANE)     # multiple of 8 -> (8,128) unmasked store
                                               # and b_pad*n_pad = 128 MXU rows per matmul

    params = make_params(kp, num_node_features, hidden, num_classes)
    w1, w2, w3, vecs, lin_w = pack_params(params, f_pad, h_pad, c_pad)
    x_nodes, adj_blk, pool, a_dense = build_batch(
        x, edge_index, num_graphs, nodes_per_graph, b_pad, n_pad, f_pad)

    out_pad = gat_forward(x_nodes, adj_blk, pool, w1, w2, w3, vecs, lin_w,
                          graphs_per_step=b_pad)
    out_pad = jax.block_until_ready(out_pad)
    out = out_pad[:num_graphs, :num_classes]

    # Pure-JAX reference on the unpadded graph (same bf16-operand matmul numerics).
    cnt = jnp.zeros((num_graphs,), jnp.float32).at[batch].add(1.0)
    P = jnp.zeros((num_graphs, N), jnp.float32).at[
        batch, jnp.arange(N)].set(1.0 / cnt[batch])
    ref = reference_forward(x, a_dense, P, params)

    assert out.shape == (num_graphs, num_classes)
    assert jnp.allclose(out, ref, atol=1e-2, rtol=1e-2), (out, ref)

    print("KERNEL_OK")
</pallas_src>

<mosaic_0001>
module attributes {stable_mosaic.version = 11 : i64} {
  func.func @gat_kernel(%arg0: i32, %arg1: memref<128x128xf32, #tpu.memory_space<vmem>>, %arg2: memref<1x128x128xf32, #tpu.memory_space<vmem>>, %arg3: memref<8x128xf32, #tpu.memory_space<vmem>>, %arg4: memref<128x128xbf16, #tpu.memory_space<vmem>>, %arg5: memref<128x128xbf16, #tpu.memory_space<vmem>>, %arg6: memref<128x128xbf16, #tpu.memory_space<vmem>>, %arg7: memref<16x128xf32, #tpu.memory_space<vmem>>, %arg8: memref<128x128xf32, #tpu.memory_space<vmem>>, %arg9: memref<8x128xf32, #tpu.memory_space<vmem>>) attributes {dimension_semantics = [#tpu.dimension_semantics<parallel>], iteration_bounds = array<i64: 1>, scalar_prefetch = 0 : i64, scratch_operands = 0 : i64, tpu.core_type = #tpu.core_type<tc>, window_params = [{transform_indices = @transform_0, window_bounds = array<i64: 128, 128>}, {transform_indices = @transform_1, window_bounds = array<i64: 1, 128, 128>}, {transform_indices = @transform_2, window_bounds = array<i64: 8, 128>}, {pipeline_mode = #tpu.pipeline_mode<synchronous>, transform_indices = @transform_3, window_bounds = array<i64: 128, 128>}, {pipeline_mode = #tpu.pipeline_mode<synchronous>, transform_indices = @transform_4, window_bounds = array<i64: 128, 128>}, {pipeline_mode = #tpu.pipeline_mode<synchronous>, transform_indices = @transform_5, window_bounds = array<i64: 128, 128>}, {pipeline_mode = #tpu.pipeline_mode<synchronous>, transform_indices = @transform_6, window_bounds = array<i64: 16, 128>}, {pipeline_mode = #tpu.pipeline_mode<synchronous>, transform_indices = @transform_7, window_bounds = array<i64: 128, 128>}, {transform_indices = @transform_8, window_bounds = array<i64: 8, 128>}]} {
    %c0 = arith.constant 0 : index
    %c0_0 = arith.constant 0 : index
    %0 = vector.load %arg1[%c0, %c0_0] : memref<128x128xf32, #tpu.memory_space<vmem>>, vector<128x128xf32>
    %c0_1 = arith.constant 0 : index
    %c0_2 = arith.constant 0 : index
    %c0_3 = arith.constant 0 : index
    %1 = vector.load %arg2[%c0_1, %c0_2, %c0_3] : memref<1x128x128xf32, #tpu.memory_space<vmem>>, vector<1x128x128xf32>
    %2 = vector.shape_cast %1 : vector<1x128x128xf32> to vector<128x128xf32>
    %c0_4 = arith.constant 0 : index
    %c0_5 = arith.constant 0 : index
    %3 = vector.load %arg7[%c0_4, %c0_5] : memref<16x128xf32, #tpu.memory_space<vmem>>, vector<1x128xf32>
    %c1 = arith.constant 1 : index
    %c0_6 = arith.constant 0 : index
    %4 = vector.load %arg7[%c1, %c0_6] : memref<16x128xf32, #tpu.memory_space<vmem>>, vector<1x128xf32>
    %c2 = arith.constant 2 : index
    %c0_7 = arith.constant 0 : index
    %5 = vector.load %arg7[%c2, %c0_7] : memref<16x128xf32, #tpu.memory_space<vmem>>, vector<1x128xf32>
    %c3 = arith.constant 3 : index
    %c0_8 = arith.constant 0 : index
    %6 = vector.load %arg7[%c3, %c0_8] : memref<16x128xf32, #tpu.memory_space<vmem>>, vector<1x128xf32>
    %c4 = arith.constant 4 : index
    %c0_9 = arith.constant 0 : index
    %7 = vector.load %arg7[%c4, %c0_9] : memref<16x128xf32, #tpu.memory_space<vmem>>, vector<1x128xf32>
    %c5 = arith.constant 5 : index
    %c0_10 = arith.constant 0 : index
    %8 = vector.load %arg7[%c5, %c0_10] : memref<16x128xf32, #tpu.memory_space<vmem>>, vector<1x128xf32>
    %c6 = arith.constant 6 : index
    %c0_11 = arith.constant 0 : index
    %9 = vector.load %arg7[%c6, %c0_11] : memref<16x128xf32, #tpu.memory_space<vmem>>, vector<1x128xf32>
    %c7 = arith.constant 7 : index
    %c0_12 = arith.constant 0 : index
    %10 = vector.load %arg7[%c7, %c0_12] : memref<16x128xf32, #tpu.memory_space<vmem>>, vector<1x128xf32>
    %c8 = arith.constant 8 : index
    %c0_13 = arith.constant 0 : index
    %11 = vector.load %arg7[%c8, %c0_13] : memref<16x128xf32, #tpu.memory_space<vmem>>, vector<1x128xf32>
    %c9 = arith.constant 9 : index
    %c0_14 = arith.constant 0 : index
    %12 = vector.load %arg7[%c9, %c0_14] : memref<16x128xf32, #tpu.memory_space<vmem>>, vector<1x128xf32>
    %13 = arith.truncf %0 : vector<128x128xf32> to vector<128x128xbf16>
    %c0_15 = arith.constant 0 : index
    %c0_16 = arith.constant 0 : index
    %14 = vector.load %arg4[%c0_15, %c0_16] : memref<128x128xbf16, #tpu.memory_space<vmem>>, vector<128x128xbf16>
    %cst = arith.constant dense<0.000000e+00> : vector<128x128xf32>
    %15 = tpu.matmul %13, %14, %cst {dimension_numbers = #tpu.dot_dimension_numbers<[1], [0], [0], [1], [0, 0, 1, 1], [], []>} : vector<128x128xbf16>, vector<128x128xbf16>, vector<128x128xf32> -> vector<128x128xf32>
    %16 = vector.broadcast %4 : vector<1x128xf32> to vector<128x128xf32>
    %17 = arith.mulf %15, %16 : vector<128x128xf32>
    %cst_17 = arith.constant dense<0.000000e+00> : vector<128xf32>
    %18 = vector.multi_reduction <add>, %17, %cst_17 [1] : vector<128x128xf32> to vector<128xf32>
    %19 = vector.shape_cast %18 : vector<128xf32> to vector<128x1xf32>
    %cst_18 = arith.constant dense<0.000000e+00> : vector<1x128xf32>
    %20 = tpu.matmul %3, %15, %cst_18 {dimension_numbers = #tpu.dot_dimension_numbers<[1], [1], [0], [0], [0, 0, 1, 0], [], []>} : vector<1x128xf32>, vector<128x128xf32>, vector<1x128xf32> -> vector<1x128xf32>
    %21 = vector.broadcast %19 : vector<128x1xf32> to vector<128x128xf32>
    %22 = vector.broadcast %20 : vector<1x128xf32> to vector<128x128xf32>
    %23 = arith.addf %21, %22 : vector<128x128xf32>
    %cst_19 = arith.constant 0.000000e+00 : f32
    %24 = vector.broadcast %cst_19 : f32 to vector<128x128xf32>
    %25 = arith.cmpf ogt, %23, %24 : vector<128x128xf32>
    %cst_20 = arith.constant 2.000000e-01 : f32
    %26 = vector.broadcast %cst_20 : f32 to vector<128x128xf32>
    %27 = arith.mulf %26, %23 : vector<128x128xf32>
    %28 = arith.select %25, %23, %27 : vector<128x128xi1>, vector<128x128xf32>
    %cst_21 = arith.constant 0.000000e+00 : f32
    %29 = vector.broadcast %cst_21 : f32 to vector<128x128xf32>
    %30 = arith.cmpf ogt, %2, %29 : vector<128x128xf32>
    %cst_22 = arith.constant -1.000000e+30 : f32
    %31 = vector.broadcast %cst_22 : f32 to vector<128x128xf32>
    %32 = arith.select %30, %28, %31 : vector<128x128xi1>, vector<128x128xf32>
    %cst_23 = arith.constant dense<0xFF800000> : vector<128xf32>
    %33 = vector.multi_reduction <maximumf>, %32, %cst_23 [1] : vector<128x128xf32> to vector<128xf32>
    %34 = vector.shape_cast %33 : vector<128xf32> to vector<128x1xf32>
    %35 = vector.broadcast %34 : vector<128x1xf32> to vector<128x128xf32>
    %36 = arith.subf %32, %35 : vector<128x128xf32>
    %37 = math.exp %36 : vector<128x128xf32>
    %38 = arith.mulf %37, %2 : vector<128x128xf32>
    %cst_24 = arith.constant dense<0.000000e+00> : vector<128xf32>
    %39 = vector.multi_reduction <add>, %38, %cst_24 [1] : vector<128x128xf32> to vector<128xf32>
    %40 = vector.shape_cast %39 : vector<128xf32> to vector<128x1xf32>
    %41 = vector.broadcast %40 : vector<128x1xf32> to vector<128x128xf32>
    %42 = arith.divf %38, %41 : vector<128x128xf32>
    %43 = arith.truncf %42 : vector<128x128xf32> to vector<128x128xbf16>
    %44 = arith.truncf %15 : vector<128x128xf32> to vector<128x128xbf16>
    %cst_25 = arith.constant dense<0.000000e+00> : vector<128x128xf32>
    %45 = tpu.matmul %43, %44, %cst_25 {dimension_numbers = #tpu.dot_dimension_numbers<[1], [0], [0], [1], [0, 0, 1, 1], [], []>} : vector<128x128xbf16>, vector<128x128xbf16>, vector<128x128xf32> -> vector<128x128xf32>
    %46 = vector.broadcast %5 : vector<1x128xf32> to vector<128x128xf32>
    %47 = arith.addf %45, %46 : vector<128x128xf32>
    %cst_26 = arith.constant 0.000000e+00 : f32
    %48 = vector.broadcast %cst_26 : f32 to vector<128x128xf32>
    %49 = arith.maximumf %47, %48 : vector<128x128xf32>
    %50 = arith.truncf %49 : vector<128x128xf32> to vector<128x128xbf16>
    %c0_27 = arith.constant 0 : index
    %c0_28 = arith.constant 0 : index
    %51 = vector.load %arg5[%c0_27, %c0_28] : memref<128x128xbf16, #tpu.memory_space<vmem>>, vector<128x128xbf16>
    %cst_29 = arith.constant dense<0.000000e+00> : vector<128x128xf32>
    %52 = tpu.matmul %50, %51, %cst_29 {dimension_numbers = #tpu.dot_dimension_numbers<[1], [0], [0], [1], [0, 0, 1, 1], [], []>} : vector<128x128xbf16>, vector<128x128xbf16>, vector<128x128xf32> -> vector<128x128xf32>
    %53 = vector.broadcast %7 : vector<1x128xf32> to vector<128x128xf32>
    %54 = arith.mulf %52, %53 : vector<128x128xf32>
    %cst_30 = arith.constant dense<0.000000e+00> : vector<128xf32>
    %55 = vector.multi_reduction <add>, %54, %cst_30 [1] : vector<128x128xf32> to vector<128xf32>
    %56 = vector.shape_cast %55 : vector<128xf32> to vector<128x1xf32>
    %cst_31 = arith.constant dense<0.000000e+00> : vector<1x128xf32>
    %57 = tpu.matmul %6, %52, %cst_31 {dimension_numbers = #tpu.dot_dimension_numbers<[1], [1], [0], [0], [0, 0, 1, 0], [], []>} : vector<1x128xf32>, vector<128x128xf32>, vector<1x128xf32> -> vector<1x128xf32>
    %58 = vector.broadcast %56 : vector<128x1xf32> to vector<128x128xf32>
    %59 = vector.broadcast %57 : vector<1x128xf32> to vector<128x128xf32>
    %60 = arith.addf %58, %59 : vector<128x128xf32>
    %cst_32 = arith.constant 0.000000e+00 : f32
    %61 = vector.broadcast %cst_32 : f32 to vector<128x128xf32>
    %62 = arith.cmpf ogt, %60, %61 : vector<128x128xf32>
    %cst_33 = arith.constant 2.000000e-01 : f32
    %63 = vector.broadcast %cst_33 : f32 to vector<128x128xf32>
    %64 = arith.mulf %63, %60 : vector<128x128xf32>
    %65 = arith.select %62, %60, %64 : vector<128x128xi1>, vector<128x128xf32>
    %cst_34 = arith.constant 0.000000e+00 : f32
    %66 = vector.broadcast %cst_34 : f32 to vector<128x128xf32>
    %67 = arith.cmpf ogt, %2, %66 : vector<128x128xf32>
    %cst_35 = arith.constant -1.000000e+30 : f32
    %68 = vector.broadcast %cst_35 : f32 to vector<128x128xf32>
    %69 = arith.select %67, %65, %68 : vector<128x128xi1>, vector<128x128xf32>
    %cst_36 = arith.constant dense<0xFF800000> : vector<128xf32>
    %70 = vector.multi_reduction <maximumf>, %69, %cst_36 [1] : vector<128x128xf32> to vector<128xf32>
    %71 = vector.shape_cast %70 : vector<128xf32> to vector<128x1xf32>
    %72 = vector.broadcast %71 : vector<128x1xf32> to vector<128x128xf32>
    %73 = arith.subf %69, %72 : vector<128x128xf32>
    %74 = math.exp %73 : vector<128x128xf32>
    %75 = arith.mulf %74, %2 : vector<128x128xf32>
    %cst_37 = arith.constant dense<0.000000e+00> : vector<128xf32>
    %76 = vector.multi_reduction <add>, %75, %cst_37 [1] : vector<128x128xf32> to vector<128xf32>
    %77 = vector.shape_cast %76 : vector<128xf32> to vector<128x1xf32>
    %78 = vector.broadcast %77 : vector<128x1xf32> to vector<128x128xf32>
    %79 = arith.divf %75, %78 : vector<128x128xf32>
    %80 = arith.truncf %79 : vector<128x128xf32> to vector<128x128xbf16>
    %81 = arith.truncf %52 : vector<128x128xf32> to vector<128x128xbf16>
    %cst_38 = arith.constant dense<0.000000e+00> : vector<128x128xf32>
    %82 = tpu.matmul %80, %81, %cst_38 {dimension_numbers = #tpu.dot_dimension_numbers<[1], [0], [0], [1], [0, 0, 1, 1], [], []>} : vector<128x128xbf16>, vector<128x128xbf16>, vector<128x128xf32> -> vector<128x128xf32>
    %83 = vector.broadcast %8 : vector<1x128xf32> to vector<128x128xf32>
    %84 = arith.addf %82, %83 : vector<128x128xf32>
    %cst_39 = arith.constant 0.000000e+00 : f32
    %85 = vector.broadcast %cst_39 : f32 to vector<128x128xf32>
    %86 = arith.maximumf %84, %85 : vector<128x128xf32>
    %87 = arith.truncf %86 : vector<128x128xf32> to vector<128x128xbf16>
    %c0_40 = arith.constant 0 : index
    %c0_41 = arith.constant 0 : index
    %88 = vector.load %arg6[%c0_40, %c0_41] : memref<128x128xbf16, #tpu.memory_space<vmem>>, vector<128x128xbf16>
    %cst_42 = arith.constant dense<0.000000e+00> : vector<128x128xf32>
    %89 = tpu.matmul %87, %88, %cst_42 {dimension_numbers = #tpu.dot_dimension_numbers<[1], [0], [0], [1], [0, 0, 1, 1], [], []>} : vector<128x128xbf16>, vector<128x128xbf16>, vector<128x128xf32> -> vector<128x128xf32>
    %90 = vector.broadcast %10 : vector<1x128xf32> to vector<128x128xf32>
    %91 = arith.mulf %89, %90 : vector<128x128xf32>
    %cst_43 = arith.constant dense<0.000000e+00> : vector<128xf32>
    %92 = vector.multi_reduction <add>, %91, %cst_43 [1] : vector<128x128xf32> to vector<128xf32>
    %93 = vector.shape_cast %92 : vector<128xf32> to vector<128x1xf32>
    %cst_44 = arith.constant dense<0.000000e+00> : vector<1x128xf32>
    %94 = tpu.matmul %9, %89, %cst_44 {dimension_numbers = #tpu.dot_dimension_numbers<[1], [1], [0], [0], [0, 0, 1, 0], [], []>} : vector<1x128xf32>, vector<128x128xf32>, vector<1x128xf32> -> vector<1x128xf32>
    %95 = vector.broadcast %93 : vector<128x1xf32> to vector<128x128xf32>
    %96 = vector.broadcast %94 : vector<1x128xf32> to vector<128x128xf32>
    %97 = arith.addf %95, %96 : vector<128x128xf32>
    %cst_45 = arith.constant 0.000000e+00 : f32
    %98 = vector.broadcast %cst_45 : f32 to vector<128x128xf32>
    %99 = arith.cmpf ogt, %97, %98 : vector<128x128xf32>
    %cst_46 = arith.constant 2.000000e-01 : f32
    %100 = vector.broadcast %cst_46 : f32 to vector<128x128xf32>
    %101 = arith.mulf %100, %97 : vector<128x128xf32>
    %102 = arith.select %99, %97, %101 : vector<128x128xi1>, vector<128x128xf32>
    %cst_47 = arith.constant 0.000000e+00 : f32
    %103 = vector.broadcast %cst_47 : f32 to vector<128x128xf32>
    %104 = arith.cmpf ogt, %2, %103 : vector<128x128xf32>
    %cst_48 = arith.constant -1.000000e+30 : f32
    %105 = vector.broadcast %cst_48 : f32 to vector<128x128xf32>
    %106 = arith.select %104, %102, %105 : vector<128x128xi1>, vector<128x128xf32>
    %cst_49 = arith.constant dense<0xFF800000> : vector<128xf32>
    %107 = vector.multi_reduction <maximumf>, %106, %cst_49 [1] : vector<128x128xf32> to vector<128xf32>
    %108 = vector.shape_cast %107 : vector<128xf32> to vector<128x1xf32>
    %109 = vector.broadcast %108 : vector<128x1xf32> to vector<128x128xf32>
    %110 = arith.subf %106, %109 : vector<128x128xf32>
    %111 = math.exp %110 : vector<128x128xf32>
    %112 = arith.mulf %111, %2 : vector<128x128xf32>
    %cst_50 = arith.constant dense<0.000000e+00> : vector<128xf32>
    %113 = vector.multi_reduction <add>, %112, %cst_50 [1] : vector<128x128xf32> to vector<128xf32>
    %114 = vector.shape_cast %113 : vector<128xf32> to vector<128x1xf32>
    %115 = vector.broadcast %114 : vector<128x1xf32> to vector<128x128xf32>
    %116 = arith.divf %112, %115 : vector<128x128xf32>
    %117 = arith.truncf %116 : vector<128x128xf32> to vector<128x128xbf16>
    %118 = arith.truncf %89 : vector<128x128xf32> to vector<128x128xbf16>
    %cst_51 = arith.constant dense<0.000000e+00> : vector<128x128xf32>
    %119 = tpu.matmul %117, %118, %cst_51 {dimension_numbers = #tpu.dot_dimension_numbers<[1], [0], [0], [1], [0, 0, 1, 1], [], []>} : vector<128x128xbf16>, vector<128x128xbf16>, vector<128x128xf32> -> vector<128x128xf32>
    %120 = vector.broadcast %11 : vector<1x128xf32> to vector<128x128xf32>
    %121 = arith.addf %119, %120 : vector<128x128xf32>
    %c0_52 = arith.constant 0 : index
    %c0_53 = arith.constant 0 : index
    %122 = vector.load %arg3[%c0_52, %c0_53] : memref<8x128xf32, #tpu.memory_space<vmem>>, vector<8x128xf32>
    %cst_54 = arith.constant dense<0.000000e+00> : vector<8x128xf32>
    %123 = tpu.matmul %122, %121, %cst_54 {dimension_numbers = #tpu.dot_dimension_numbers<[1], [0], [0], [1], [0, 0, 1, 1], [], []>} : vector<8x128xf32>, vector<128x128xf32>, vector<8x128xf32> -> vector<8x128xf32>
    %c0_55 = arith.constant 0 : index
    %c0_56 = arith.constant 0 : index
    %124 = vector.load %arg8[%c0_55, %c0_56] : memref<128x128xf32, #tpu.memory_space<vmem>>, vector<128x128xf32>
    %cst_57 = arith.constant dense<0.000000e+00> : vector<8x128xf32>
    %125 = tpu.matmul %123, %124, %cst_57 {dimension_numbers = #tpu.dot_dimension_numbers<[1], [0], [0], [1], [0, 0, 1, 1], [], []>} : vector<8x128xf32>, vector<128x128xf32>, vector<8x128xf32> -> vector<8x128xf32>
    %126 = vector.broadcast %12 : vector<1x128xf32> to vector<8x128xf32>
    %127 = arith.addf %125, %126 : vector<8x128xf32>
    %c0_58 = arith.constant 0 : index
    %c0_59 = arith.constant 0 : index
    %128 = vector.load %arg9[%c0_58, %c0_59] : memref<8x128xf32, #tpu.memory_space<vmem>>, vector<8x128xf32>
    tpu.vector_store %arg9[%c0_58, %c0_59], %127 {strides = array<i32>} : memref<8x128xf32, #tpu.memory_space<vmem>>, vector<8x128xf32>,
    return
  }
  func.func @transform_0(%arg0: i32) -> (i32, i32) {
    %c0_i32 = arith.constant 0 : i32
    %c0_i32_0 = arith.constant 0 : i32
    return %arg0, %c0_i32 : i32, i32
  }
  func.func @transform_1(%arg0: i32) -> (i32, i32, i32) {
    %c0_i32 = arith.constant 0 : i32
    %c0_i32_0 = arith.constant 0 : i32
    %c0_i32_1 = arith.constant 0 : i32
    return %arg0, %c0_i32, %c0_i32_0 : i32, i32, i32
  }
  func.func @transform_2(%arg0: i32) -> (i32, i32) {
    %c0_i32 = arith.constant 0 : i32
    return %arg0, %arg0 : i32, i32
  }
  func.func @transform_3(%arg0: i32) -> (i32, i32) {
    %c0_i32 = arith.constant 0 : i32
    %c0_i32_0 = arith.constant 0 : i32
    %c0_i32_1 = arith.constant 0 : i32
    return %c0_i32, %c0_i32_0 : i32, i32
  }
  func.func @transform_4(%arg0: i32) -> (i32, i32) {
    %c0_i32 = arith.constant 0 : i32
    %c0_i32_0 = arith.constant 0 : i32
    %c0_i32_1 = arith.constant 0 : i32
    return %c0_i32, %c0_i32_0 : i32, i32
  }
  func.func @transform_5(%arg0: i32) -> (i32, i32) {
    %c0_i32 = arith.constant 0 : i32
    %c0_i32_0 = arith.constant 0 : i32
    %c0_i32_1 = arith.constant 0 : i32
    return %c0_i32, %c0_i32_0 : i32, i32
  }
  func.func @transform_6(%arg0: i32) -> (i32, i32) {
    %c0_i32 = arith.constant 0 : i32
    %c0_i32_0 = arith.constant 0 : i32
    %c0_i32_1 = arith.constant 0 : i32
    return %c0_i32, %c0_i32_0 : i32, i32
  }
  func.func @transform_7(%arg0: i32) -> (i32, i32) {
    %c0_i32 = arith.constant 0 : i32
    %c0_i32_0 = arith.constant 0 : i32
    %c0_i32_1 = arith.constant 0 : i32
    return %c0_i32, %c0_i32_0 : i32, i32
  }
  func.func @transform_8(%arg0: i32) -> (i32, i32) {
    %c0_i32 = arith.constant 0 : i32
    %c0_i32_0 = arith.constant 0 : i32
    return %arg0, %c0_i32 : i32, i32
  }
}

</mosaic_0001>

<bundles_post_ra>
// kernel: tpu_custom_call.1
= control target key start
LH: loop header
LB: loop body
LE: loop exit
PB: predicated region body
PF: predicated region fallthrough
CT: control target
= control target key end

     0   :  { %13 = vsyncpa [#allocation3], 0  ;;  %s4250_s0 = inlined_call_operand.hbm [shape: f32[128,128], index: 0, kind: input, shape index: {}]   ;;  %s4251_s1 = inlined_call_operand.hbm [shape: f32[1,128,128], index: 1, kind: input, shape index: {}]   ;;  %s4252_s2 = inlined_call_operand.hbm [shape: f32[8,128], index: 2, kind: input, shape index: {}]   ;;  %s4253_s3 = inlined_call_operand.hbm [shape: bf16[128,128], index: 3, kind: input, shape index: {}]   ;;  %s4254_s4 = inlined_call_operand.hbm [shape: bf16[128,128], index: 4, kind: input, shape index: {}]   ;;  %s4255_s5 = inlined_call_operand.hbm [shape: bf16[128,128], index: 5, kind: input, shape index: {}]   ;;  %s4256_s6 = inlined_call_operand.hbm [shape: f32[16,128], index: 6, kind: input, shape index: {}]   ;;  %s4257_s7 = inlined_call_operand.hbm [shape: f32[128,128], index: 7, kind: input, shape index: {}]   ;;  %s4258_s8 = inlined_call_operand.hbm [shape: f32[8,128], index: 8, kind: output, shape index: {}]  }
   0x1   :  { %14 = vsyncpa [#allocation6], 0 }
   0x2   :  { %15 = vsyncpa [#allocation9], 0 }
   0x3   :  { %16 = vsyncpa [#allocation12], 0 }
   0x4   :  { %17 = vsyncpa [#allocation15], 0 }
   0x5   :  { %18 = vsyncpa [#allocation4], 0  ;;  %s36_s29 = sshll.u32 %s4251_s1, 4  ;;  %s3030_s30 = smov [#allocation5]   ;;  %s37_s29 = int_to_ptr.hbm [resolvable:$true] %s36_s29 }
   0x6   :  { %s38_s9 = sshll.u32 %s3030_s30, 4  ;;  %s60_s12 = sshll.u32 %s4253_s3, 4  ;;  %s39_s9 = int_to_ptr.vmem [resolvable:$true] %s38_s9  ;;  %s61_s12 = int_to_ptr.hbm [resolvable:$true] %s60_s12 }
   0x7   :  { %s3031_s13 = smov 128   ;;  %s3032_s14 = smov 8  }
   0x8   :  { %44 = dma.hbm_to_vmem [thread:$0]  %s37_s29, 2048, %s39_s9, [#allocation6], %s3031_s13, %s3031_s13, %s3032_s14  }
   0x9   :  { %s3033_s15 = smov [#allocation8]   ;;  %s3034_s17 = smov 64  }
   0xa   :  { %s62_s16 = sshll.u32 %s3033_s15, 4  ;;  %s3035_s1 = smov 4   ;;  %s63_s16 = int_to_ptr.vmem [resolvable:$true] %s62_s16 }
   0xb   :  { %68 = dma.hbm_to_vmem [thread:$0]  %s61_s12, 1024, %s63_s16, [#allocation9], %s3034_s17, %s3034_s17, %s3035_s1  }
   0xc   :  { %s86_s3 = sshll.u32 %s4255_s5, 4  ;;  %s3036_s20 = smov [#allocation11]   ;;  %s87_s3 = int_to_ptr.hbm [resolvable:$true] %s86_s3 }
   0xd   :  { %s88_s21 = sshll.u32 %s3036_s20, 4  ;;  %s23_s24 = sshll.u32 %s4250_s0, 4  ;;  %s89_s21 = int_to_ptr.vmem [resolvable:$true] %s88_s21  ;;  %s24_s24 = int_to_ptr.hbm [resolvable:$true] %s23_s24 }
   0xe   :  { %94 = dma.hbm_to_vmem [thread:$0]  %s87_s3, 1024, %s89_s21, [#allocation12], %s3034_s17, %s3034_s17, %s3035_s1  }
   0xf   :  { %s3037_s25 = smov [#allocation2]   ;;  %s50_s29 = sshll.u32 %s4252_s2, 4  ;;  %s51_s29 = int_to_ptr.hbm [resolvable:$true] %s50_s29 }
  0x10   :  { %s25_s26 = sshll.u32 %s3037_s25, 4  ;;  %s73_s0 = sshll.u32 %s4254_s4, 4  ;;  %s26_s26 = int_to_ptr.vmem [resolvable:$true] %s25_s26  ;;  %s74_s0 = int_to_ptr.hbm [resolvable:$true] %s73_s0 }
  0x11   :  { %31 = dma.hbm_to_vmem [thread:$0]  %s24_s24, 2048, %s26_s26, [#allocation3], %s3031_s13, %s3031_s13, %s3032_s14  }
  0x12   :  { %s3038_s9 = smov [#allocation7]   ;;  %s3039_s11 = smov [#allocation10]  }
  0x13   :  { %s52_s10 = sshll.u32 %s3038_s9, 4  ;;  %s75_s12 = sshll.u32 %s3039_s11, 4  ;;  %s53_s10 = int_to_ptr.vmem [resolvable:$true] %s52_s10  ;;  %s76_s12 = int_to_ptr.vmem [resolvable:$true] %s75_s12 }
  0x14   :  { %55 = dma.hbm_to_vmem [thread:$0]  %s51_s29, 128, %s53_s10, [#allocation6]  }
  0x15   :  { %s99_s2 = sshll.u32 %s4256_s6, 4  ;;  %s112_s4 = sshll.u32 %s4257_s7, 4  ;;  %s100_s2 = int_to_ptr.hbm [resolvable:$true] %s99_s2  ;;  %s113_s4 = int_to_ptr.hbm [resolvable:$true] %s112_s4 }
  0x16   :  { %81 = dma.hbm_to_vmem [thread:$0]  %s74_s0, 1024, %s76_s12, [#allocation9], %s3034_s17, %s3034_s17, %s3035_s1  }
  0x17   :  { %s3040_s3 = smov [#allocation13]   ;;  %s3041_s21 = smov [#allocation14]  }
  0x18   :  { %s101_s20 = sshll.u32 %s3040_s3, 4  ;;  %s114_s6 = sshll.u32 %s3041_s21, 4  ;;  %s102_s20 = int_to_ptr.vmem [resolvable:$true] %s101_s20  ;;  %s115_s6 = int_to_ptr.vmem [resolvable:$true] %s114_s6 }
  0x19   :  { %107 = dma.hbm_to_vmem [thread:$0]  %s100_s2, 256, %s102_s20, [#allocation12], %s3031_s13, %s3031_s13, %s3032_s14  }
  0x1a   :  { %120 = dma.hbm_to_vmem [thread:$0]  %s113_s4, 2048, %s115_s6, [#allocation15], %s3031_s13, %s3031_s13, %s3032_s14  }
  0x1b   :  { %3018 = dma.done.wait [#allocation3], 2048  }
  0x1c   :  { %3019 = vsyncadd [#allocation3], 4294965248 }
  0x1d   :  { %3020 = dma.done.wait [#allocation6], 2176  }
  0x1e   :  { %3021 = vsyncadd [#allocation6], 4294965120 }
  0x1f   :  { %3022 = dma.done.wait [#allocation9], 2048  }
  0x20   :  { %3023 = vsyncadd [#allocation9], 4294965248 }
  0x21   :  { %3024 = dma.done.wait [#allocation12], 1280  }
  0x22   :  { %3025 = vsyncadd [#allocation12], 4294966016 }
  0x23   :  { %3026 = dma.done.wait [#allocation15], 2048  }
  0x24   :  { %3027 = vsyncadd [#allocation15], 4294965248  ;;  %v2541_v0 = vld [vmem:[#allocation8 + $0x38] sm:$0xff]  ;;  %v2540_v1 = vld [vmem:[#allocation8 + $0x30] sm:$0xff]  ;;  %s3042_s7 = smov [#allocation16]   ;;  %s2424_s1 = sshll.u32 %s4258_s8, 4  ;;  %s2425_s1 = int_to_ptr.hbm [resolvable:$true] %s2424_s1 }
  0x25   :  { %267 = vmatpush.bf16.msra.mxu0 %v2541_v0  ;;  %v2539_v2 = vld [vmem:[#allocation8 + $0x28] sm:$0xff]  ;;  %v2538_v3 = vld [vmem:[#allocation8 + $0x20] sm:$0xff]  ;;  %v2537_v4 = vld [vmem:[#allocation8 + $0x18] sm:$0xff]  ;;  %s2422_s13 = sshll.u32 %s3042_s7, 4  ;;  %s2423_s13 = int_to_ptr.vmem [resolvable:$true] %s2422_s13 }
  0x26   :  { %v2536_v5 = vld [vmem:[#allocation8 + $0x10] sm:$0xff]  ;;  %v2535_v6 = vld [vmem:[#allocation8 + $0x8] sm:$0xff]  ;;  %v2534_v7 = vld [vmem:[#allocation8] sm:$0xff] }
  0x27   :  { %v153_v8 = vld [vmem:[#allocation2] sm:$0xff]  ;;  %v154_v9 = vld [vmem:[#allocation2 + $0x8] sm:$0xff]  ;;  %v155_v11 = vld [vmem:[#allocation2 + $0x10] sm:$0xff] }
  0x28   :  { %v195_v10 = vpack.c.bf16 %v154_v9, %v153_v8  ;;  %v156_v12 = vld [vmem:[#allocation2 + $0x18] sm:$0xff]  ;;  %v157_v14 = vld [vmem:[#allocation2 + $0x20] sm:$0xff]  ;;  %v158_v15 = vld [vmem:[#allocation2 + $0x28] sm:$0xff] }
  0x29   :  { %268 = vmatpush.bf16.msra.mxu0 %v2540_v1  ;;  %v196_v13 = vpack.c.bf16 %v156_v12, %v155_v11  ;;  %v197_v16 = vpack.c.bf16 %v158_v15, %v157_v14  ;;  %v159_v17 = vld [vmem:[#allocation2 + $0x30] sm:$0xff]  ;;  %v160_v18 = vld [vmem:[#allocation2 + $0x38] sm:$0xff]  ;;  %v161_v20 = vld [vmem:[#allocation2 + $0x40] sm:$0xff] }
  0x2a   :  { %v198_v19 = vpack.c.bf16 %v160_v18, %v159_v17  ;;  %v162_v21 = vld [vmem:[#allocation2 + $0x48] sm:$0xff]  ;;  %v163_v23 = vld [vmem:[#allocation2 + $0x50] sm:$0xff]  ;;  %v164_v24 = vld [vmem:[#allocation2 + $0x58] sm:$0xff] }
  0x2b   :  { %v199_v22 = vpack.c.bf16 %v162_v21, %v161_v20  ;;  %v200_v25 = vpack.c.bf16 %v164_v24, %v163_v23  ;;  %v165_v26 = vld [vmem:[#allocation2 + $0x60] sm:$0xff]  ;;  %v166_v27 = vld [vmem:[#allocation2 + $0x68] sm:$0xff]  ;;  %v167_v29 = vld [vmem:[#allocation2 + $0x70] sm:$0xff] }
  0x2c   :  { %v201_v28 = vpack.c.bf16 %v166_v27, %v165_v26  ;;  %v168_v30 = vld [vmem:[#allocation2 + $0x78] sm:$0xff]  ;;  %v3133_v32 = vld [vmem:[#allocation13 + $0x1] ss:$0 sm:$0xff]  ;;  %v185_v0 = vld [vmem:[#allocation13] sm:$0x1] }
  0x2d   :  { %269 = vmatpush.bf16.msra.mxu0 %v2539_v2  ;;  %v202_v31 = vpack.c.bf16 %v168_v30, %v167_v29  ;;  %v3186_v12 = vld [vmem:[#allocation5] sm:$0xff] }
  0x2e   :  { %vm450_vm5 = vcmp.gt.f32.partialorder %v3186_v12, 0.0  ;;  %v3203_v27 = vld [vmem:[#allocation5 + $0x20] sm:$0xff] }
  0x2f   :  { %vm454_vm8 = vcmp.gt.f32.partialorder %v3203_v27, 0.0 }
  0x31   :  { %270 = vmatpush.bf16.msra.mxu0 %v2538_v3 }
  0x35   :  { %271 = vmatpush.bf16.msra.mxu0 %v2537_v4 }
  0x39   :  { %272 = vmatpush.bf16.msra.mxu0 %v2536_v5  ;;  %v3180_v5 = vld [vmem:[#allocation5 + $0x18] sm:$0xff] }
  0x3a   :  { %vm453_vm0 = vcmp.gt.f32.partialorder %v3180_v5, 0.0 }
  0x3d   :  { %273 = vmatpush.bf16.msra.mxu0 %v2535_v6  ;;  %v3182_v6 = vld [vmem:[#allocation5 + $0x8] sm:$0xff] }
  0x3e   :  { %vm451_vm1 = vcmp.gt.f32.partialorder %v3182_v6, 0.0 }
  0x41   :  { %274 = vmatpush.bf16.msra.mxu0 %v2534_v7 }
  0x44   :  { %275 = vmatmul.bf16.vlgmr.msra.gmra.mxu0 %v195_v10 }
  0x54   :  { %280 = vmatmul.bf16.gmra.mxu0 %v196_v13 }
  0x64   :  { %285 = vmatmul.bf16.gmra.mxu0 %v197_v16 }
  0x74   :  { %290 = vmatmul.bf16.gmra.mxu0 %v198_v19 }
  0x84   :  { %295 = vmatmul.bf16.gmra.mxu0 %v199_v22 }
  0x94   :  { %300 = vmatmul.bf16.gmra.mxu0 %v200_v25 }
  0xa4   :  { %305 = vmatmul.bf16.gmra.mxu0 %v201_v28  ;;  %v3205_v28 = vld [vmem:[#allocation5 + $0x10] sm:$0xff] }
  0xa5   :  { %vm452_vm9 = vcmp.gt.f32.partialorder %v3205_v28, 0.0 }
  0xb4   :  { %310 = vmatmul.bf16.gmra.mxu0 %v202_v31 }
  0xc1   :  { %v276_v33 = vpop.f32.mrf.mxu0 }
  0xc2   :  { %v317_v34 = vmul.f32 %v3133_v32, %v276_v33 }
  0xc4   :  { %333 = vadd.xlane.f32.xlu0 %v317_v34 }
  0xc9   :  { %v278_v35 = vpop.f32.mrf.mxu0 }
  0xca   :  { %v318_v36 = vmul.f32 %v3133_v32, %v278_v35  ;;  %v858_v63 = vpack.c.bf16 %v278_v35, %v276_v33 }
  0xcc   :  { %335 = vadd.xlane.f32.xlu0 %v318_v36 }
  0xd1   :  { %v281_v37 = vpop.f32.mrf.mxu0 }
  0xd2   :  { %v319_v38 = vmul.f32 %v3133_v32, %v281_v37 }
  0xd4   :  { %337 = vadd.xlane.f32.xlu1 %v319_v38 }
  0xd9   :  { %v283_v39 = vpop.f32.mrf.mxu0 }
  0xda   :  { %v320_v40 = vmul.f32 %v3133_v32, %v283_v39  ;;  %v859_v62 = vpack.c.bf16 %v283_v39, %v281_v37 }
  0xdc   :  { %339 = vadd.xlane.f32.xlu1 %v320_v40 }
  0xe1   :  { %v286_v41 = vpop.f32.mrf.mxu0 }
  0xe2   :  { %v321_v42 = vmul.f32 %v3133_v32, %v286_v41 }
  0xe4   :  { %341 = vadd.xlane.f32.xlu2 %v321_v42 }
  0xe9   :  { %v288_v43 = vpop.f32.mrf.mxu0 }
  0xea   :  { %v322_v44 = vmul.f32 %v3133_v32, %v288_v43  ;;  %v860_v61 = vpack.c.bf16 %v288_v43, %v286_v41 }
  0xec   :  { %343 = vadd.xlane.f32.xlu2 %v322_v44 }
  0xf1   :  { %v291_v45 = vpop.f32.mrf.mxu0 }
  0xf2   :  { %v323_v46 = vmul.f32 %v3133_v32, %v291_v45 }
  0xf4   :  { %345 = vadd.xlane.f32.xlu2 %v323_v46 }
  0xf9   :  { %v3142_v47 = vpop.f32.mrf.mxu0 }
  0xfa   :  { %v861_v60 = vpack.c.bf16 %v3142_v47, %v291_v45  ;;  %v324_v34 = vmul.f32 %v3133_v32, %v3142_v47 }
 0x101   :  { %v3144_v48 = vpop.f32.mrf.mxu0 }
 0x109   :  { %v3146_v49 = vpop.f32.mrf.mxu0 }
 0x10a   :  { %v862_v59 = vpack.c.bf16 %v3146_v49, %v3144_v48  ;;  %v326_v38 = vmul.f32 %v3133_v32, %v3146_v49 }
 0x111   :  { %v3148_v50 = vpop.f32.mrf.mxu0 }
 0x112   :  { %v327_v46 = vmul.f32 %v3133_v32, %v3148_v50 }
 0x119   :  { %v3150_v51 = vpop.f32.mrf.mxu0 }
 0x11a   :  { %v863_v58 = vpack.c.bf16 %v3150_v51, %v3148_v50 }
 0x121   :  { %v3152_v52 = vpop.f32.mrf.mxu0 }
 0x129   :  { %v3154_v53 = vpop.f32.mrf.mxu0 }
 0x12a   :  { %v864_v57 = vpack.c.bf16 %v3154_v53, %v3152_v52 }
 0x131   :  { %v3156_v54 = vpop.f32.mrf.mxu0 }
 0x137   :  { %v334_v1 = vpop.xlane.xlu0 %333 }
 0x139   :  { %v3158_v55 = vpop.f32.mrf.mxu0 }
 0x13a   :  { %365 = vmatpush.xpose.msra.mxu1 %v3158_v55  ;;  %v865_v56 = vpack.c.bf16 %v3158_v55, %v3156_v54 }
 0x13c   :  { %867 = vmatpush.bf16.msra.mxu2 %v865_v56 }
 0x13e   :  { %366 = vmatpush.xpose.msra.mxu1 %v3156_v54 }
 0x13f   :  { %v336_v7 = vpop.xlane.xlu0 %335 }
 0x140   :  { %868 = vmatpush.bf16.msra.mxu2 %v864_v57 }
 0x142   :  { %367 = vmatpush.xpose.msra.mxu1 %v3154_v53 }
 0x144   :  { %869 = vmatpush.bf16.msra.mxu2 %v863_v58 }
 0x146   :  { %368 = vmatpush.xpose.msra.mxu1 %v3152_v52 }
 0x147   :  { %v338_v2 = vpop.xlane.xlu1 %337 }
 0x148   :  { %870 = vmatpush.bf16.msra.mxu2 %v862_v59 }
 0x14a   :  { %369 = vmatpush.xpose.msra.mxu1 %v3150_v51 }
 0x14c   :  { %871 = vmatpush.bf16.msra.mxu2 %v861_v60 }
 0x14e   :  { %370 = vmatpush.xpose.msra.mxu1 %v3148_v50  ;;  %v330_v50 = vmul.f32 %v3133_v32, %v3154_v53 }
 0x14f   :  { %v340_v8 = vpop.xlane.xlu1 %339 }
 0x150   :  { %872 = vmatpush.bf16.msra.mxu2 %v860_v61 }
 0x152   :  { %371 = vmatpush.xpose.msra.mxu1 %v3146_v49  ;;  %v3241_v49 = vld [vmem:[#allocation5 + $0x30] sm:$0xff] }
 0x153   :  { %vm456_vm13 = vcmp.gt.f32.partialorder %v3241_v49, 0.0 }
 0x154   :  { %873 = vmatpush.bf16.msra.mxu2 %v859_v62 }
 0x156   :  { %372 = vmatpush.xpose.msra.mxu1 %v3144_v48 }
 0x157   :  { %v342_v9 = vpop.xlane.xlu2 %341 }
 0x158   :  { %874 = vmatpush.bf16.msra.mxu2 %v858_v63 }
 0x15a   :  { %373 = vmatpush.xpose.msra.mxu1 %v3142_v47 }
 0x15e   :  { %374 = vmatpush.xpose.msra.mxu1 %v291_v45  ;;  %v329_v45 = vmul.f32 %v3133_v32, %v3152_v52 }
 0x162   :  { %375 = vmatpush.xpose.msra.mxu1 %v288_v43 }
 0x166   :  { %376 = vmatpush.xpose.msra.mxu1 %v286_v41  ;;  %v3228_v41 = vld [vmem:[#allocation5 + $0x28] sm:$0xff] }
 0x167   :  { %vm455_vm11 = vcmp.gt.f32.partialorder %v3228_v41, 0.0 }
 0x16a   :  { %377 = vmatpush.xpose.msra.mxu1 %v283_v39  ;;  %v325_v39 = vmul.f32 %v3133_v32, %v3144_v48 }
 0x16e   :  { %378 = vmatpush.xpose.msra.mxu1 %v281_v37  ;;  %v328_v37 = vmul.f32 %v3133_v32, %v3150_v51 }
 0x172   :  { %379 = vmatpush.xpose.msra.mxu1 %v278_v35  ;;  %v344_v35 = vpop.xlane.xlu2 %343 }
 0x176   :  { %380 = vmatpush.xpose.msra.mxu1 %v276_v33 }
 0x179   :  { %381 = vmatmul.f32.vlgmr.msra.gmra.mxu1 %v185_v0 }
 0x17a   :  { %v346_v42 = vpop.xlane.xlu2 %345 }
 0x1f6   :  { %v382_v3 = vpop.f32.mrf.mxu1 }
 0x1f7   :  { %v3178_v4 = vperm.slane %v382_v3, 0 }
 0x1f9   :  { %v389_v10 = vadd.f32 %v3178_v4, %v340_v8  ;;  %v387_v11 = vadd.f32 %v3178_v4, %v336_v7  ;;  %v386_v13 = vadd.f32 %v3178_v4, %v334_v1  ;;  %v390_v14 = vadd.f32 %v3178_v4, %v342_v9  ;;  %v3251_v1 = vld [vmem:[#allocation5 + $0x38] sm:$0xff] }
 0x1fa   :  { %v388_v15 = vadd.f32 %v3178_v4, %v338_v2  ;;  %v391_v36 = vadd.f32 %v3178_v4, %v344_v35  ;;  %v392_v44 = vadd.f32 %v3178_v4, %v346_v42  ;;  %vm457_vm15 = vcmp.gt.f32.partialorder %v3251_v1, 0.0 }
 0x1fb   :  { %vm405_vm2 = vcmp.gt.f32.partialorder %v389_v10, 0.0  ;;  %v421_v16 = vmul.f32 0.2, %v389_v10  ;;  %vm403_vm3 = vcmp.gt.f32.partialorder %v387_v11, 0.0  ;;  %v419_v17 = vmul.f32 0.2, %v387_v11 }
 0x1fc   :  { %vm402_vm4 = vcmp.gt.f32.partialorder %v386_v13, 0.0  ;;  %v418_v18 = vmul.f32 0.2, %v386_v13  ;;  %v422_v25 = vmul.f32 0.2, %v390_v14  ;;  %vm406_vm6 = vcmp.gt.f32.partialorder %v390_v14, 0.0 }
 0x1fd   :  { %v437_v19 = vsel %vm405_vm2, %v389_v10, %v421_v16  ;;  %v435_v20 = vsel %vm403_vm3, %v387_v11, %v419_v17  ;;  %v420_v26 = vmul.f32 0.2, %v388_v15  ;;  %vm404_vm7 = vcmp.gt.f32.partialorder %v388_v15, 0.0 }
 0x1fe   :  { %v3196_v21 = vsel %vm453_vm0, %v437_v19, -1e+30  ;;  %v467_v22 = vsel %vm451_vm1, %v435_v20, -1e+30  ;;  %v434_v23 = vsel %vm402_vm4, %v386_v13, %v418_v18  ;;  %v438_v29 = vsel %vm406_vm6, %v390_v14, %v422_v25  ;;  %v3265_v14 = vld [vmem:[#allocation5 + $0x40] sm:$0xff] }
 0x1ff   :  { %488 = vmax.xlane.f32.xlu2 %v3196_v21  ;;  %484 = vmax.xlane.f32.xlu1 %v467_v22  ;;  %v466_v24 = vsel %vm450_vm5, %v434_v23, -1e+30  ;;  %v436_v30 = vsel %vm404_vm7, %v388_v15, %v420_v26  ;;  %v3211_v31 = vsel %vm454_vm8, %v438_v29, -1e+30  ;;  %v423_v40 = vmul.f32 0.2, %v391_v36 }
 0x200   :  { %482 = vmax.xlane.f32.xlu0 %v466_v24  ;;  %v3215_v33 = vsel %vm452_vm9, %v436_v30, -1e+30  ;;  %vm407_vm10 = vcmp.gt.f32.partialorder %v391_v36, 0.0  ;;  %v424_v48 = vmul.f32 0.2, %v392_v44  ;;  %vm408_vm12 = vcmp.gt.f32.partialorder %v392_v44, 0.0 }
 0x201   :  { %v439_v43 = vsel %vm407_vm10, %v391_v36, %v423_v40  ;;  %vm4266_vm2 = vcmp.gt.f32.partialorder %v3265_v14, 0.0  ;;  %v331_v23 = vmul.f32 %v3133_v32, %v3156_v54  ;;  %v3283_v54 = vld [vmem:[#allocation5 + $0x48] sm:$0xff]  ;;  %v332_v40 = vmul.f32 %v3133_v32, %v3158_v55 }
 0x202   :  { %v3238_v47 = vsel %vm455_vm11, %v439_v43, -1e+30  ;;  %v440_v51 = vsel %vm408_vm12, %v392_v44, %v424_v48  ;;  %vm4264_vm6 = vcmp.gt.f32.partialorder %v3283_v54, 0.0 }
 0x203   :  { %v3246_v52 = vsel %vm456_vm13, %v440_v51, -1e+30 }
 0x207   :  { %490 = vmax.xlane.f32.xlu2 %v3211_v31  ;;  %486 = vmax.xlane.f32.xlu1 %v3215_v33 }
 0x208   :  { %347 = vadd.xlane.f32.xlu0 %v324_v34 }
 0x20f   :  { %355 = vadd.xlane.f32.xlu2 %v328_v37  ;;  %351 = vadd.xlane.f32.xlu1 %v326_v38 }
 0x210   :  { %349 = vadd.xlane.f32.xlu0 %v325_v39 }
 0x217   :  { %357 = vadd.xlane.f32.xlu2 %v329_v45  ;;  %353 = vadd.xlane.f32.xlu1 %v327_v46  ;;  %v3299_v46 = vld [vmem:[#allocation5 + $0x50] sm:$0xff] }
 0x218   :  { %492 = vmax.xlane.f32.xlu0 %v3238_v47  ;;  %vm4263_vm10 = vcmp.gt.f32.partialorder %v3299_v46, 0.0 }
 0x220   :  { %494 = vmax.xlane.f32.xlu0 %v3246_v52 }
 0x228   :  { %359 = vadd.xlane.f32.xlu0 %v330_v50 }
 0x272   :  { %v485_v56 = vpop.xlane.xlu1 %484  ;;  %v489_v61 = vpop.xlane.xlu2 %488 }
 0x273   :  { %v515_v57 = vsub.f32 %v467_v22, %v485_v56  ;;  %v483_v58 = vpop.xlane.xlu0 %482  ;;  %v517_v3 = vsub.f32 %v3196_v21, %v489_v61  ;;  %v3319_v61 = vld [vmem:[#allocation5 + $0x68] sm:$0xff] }
 0x274   :  { %v514_v60 = vsub.f32 %v466_v24, %v483_v58 }
 0x275   :  { %v532_v59 = vmul.f32 1.442695, %v515_v57  ;;  %v536_v10 = vmul.f32 1.442695, %v517_v3 }
 0x276   :  { %v530_v63 = vmul.f32 1.442695, %v514_v60  ;;  %v3317_v60 = vld [vmem:[#allocation5 + $0x58] sm:$0xff] }
 0x277   :  { %2578 = vpow2.f32 %v532_v59 }
 0x278   :  { %2580 = vpow2.f32 %v530_v63 }
 0x279   :  { %2582 = vpow2.f32 %v536_v10 }
 0x27a   :  { %v487_v62 = vpop.xlane.xlu1 %486  ;;  %v491_v15 = vpop.xlane.xlu2 %490 }
 0x27b   :  { %v348_v0 = vpop.xlane.xlu0 %347  ;;  %v518_v19 = vsub.f32 %v3211_v31, %v491_v15  ;;  %v516_v22 = vsub.f32 %v3215_v33, %v487_v62 }
 0x27c   :  { %v393_v2 = vadd.f32 %v3178_v4, %v348_v0 }
 0x27d   :  { %v2579_v7 = vpop.eup %2578  ;;  %v538_v29 = vmul.f32 1.442695, %v518_v19  ;;  %v534_v33 = vmul.f32 1.442695, %v516_v22 }
 0x27e   :  { %v425_v8 = vmul.f32 0.2, %v393_v2  ;;  %vm409_vm14 = vcmp.gt.f32.partialorder %v393_v2, 0.0  ;;  %v3257_v53 = vmul.f32 %v2579_v7, %v3182_v6  ;;  %v2581_v18 = vpop.eup %2580 }
 0x27f   :  { %v3275_v24 = vmul.f32 %v2581_v18, %v3186_v12  ;;  %v2583_v31 = vpop.eup %2582  ;;  %2584 = vpow2.f32 %v538_v29 }
 0x280   :  { %v441_v9 = vsel %vm409_vm14, %v393_v2, %v425_v8  ;;  %580 = vadd.xlane.f32.xlu2 %v3257_v53  ;;  %2586 = vpow2.f32 %v534_v33  ;;  %v3288_v38 = vmul.f32 %v2583_v31, %v3180_v5  ;;  %vm4262_vm14 = vcmp.gt.f32.partialorder %v3317_v60, 0.0 }
 0x281   :  { %v3262_v11 = vsel %vm457_vm15, %v441_v9, -1e+30 }
 0x282   :  { %496 = vmax.xlane.f32.xlu1 %v3262_v11  ;;  %v352_v13 = vpop.xlane.xlu1 %351  ;;  %v356_v42 = vpop.xlane.xlu2 %355 }
 0x283   :  { %v350_v16 = vpop.xlane.xlu0 %349  ;;  %v395_v20 = vadd.f32 %v3178_v4, %v352_v13  ;;  %v397_v32 = vadd.f32 %v3178_v4, %v356_v42 }
 0x284   :  { %v394_v17 = vadd.f32 %v3178_v4, %v350_v16 }
 0x285   :  { %v427_v30 = vmul.f32 0.2, %v395_v20  ;;  %vm411_vm4 = vcmp.gt.f32.partialorder %v395_v20, 0.0  ;;  %v2585_v48 = vpop.eup %2584  ;;  %v429_v59 = vmul.f32 0.2, %v397_v32  ;;  %vm413_vm12 = vcmp.gt.f32.partialorder %v397_v32, 0.0 }
 0x286   :  { %v426_v21 = vmul.f32 0.2, %v394_v17  ;;  %vm410_vm3 = vcmp.gt.f32.partialorder %v394_v17, 0.0  ;;  %v2587_v51 = vpop.eup %2586  ;;  %v3304_v50 = vmul.f32 %v2585_v48, %v3203_v27 }
 0x287   :  { %v443_v37 = vsel %vm411_vm4, %v395_v20, %v427_v30  ;;  %v3308_v57 = vmul.f32 %v2587_v51, %v3205_v28  ;;  %v445_v8 = vsel %vm413_vm12, %v397_v32, %v429_v59 }
 0x288   :  { %v442_v25 = vsel %vm410_vm3, %v394_v17, %v426_v21  ;;  %361 = vadd.xlane.f32.xlu2 %v331_v23  ;;  %v3296_v43 = vsel %vm4264_vm6, %v443_v37, -1e+30  ;;  %vm4261_vm3 = vcmp.gt.f32.partialorder %v3319_v61, 0.0  ;;  %v3327_v10 = vsel %vm4262_vm14, %v445_v8, -1e+30  ;;  %v3339_v17 = vld [vmem:[#allocation5 + $0x60] sm:$0xff] }
 0x289   :  { %v3279_v26 = vsel %vm4266_vm2, %v442_v25, -1e+30  ;;  %vm4260_vm12 = vcmp.gt.f32.partialorder %v3339_v17, 0.0 }
 0x28a   :  { %578 = vadd.xlane.f32.xlu1 %v3275_v24  ;;  %498 = vmax.xlane.f32.xlu0 %v3279_v26  ;;  %v354_v34 = vpop.xlane.xlu1 %353  ;;  %v358_v62 = vpop.xlane.xlu2 %357 }
 0x28b   :  { %v493_v35 = vpop.xlane.xlu0 %492  ;;  %v396_v36 = vadd.f32 %v3178_v4, %v354_v34  ;;  %v398_v3 = vadd.f32 %v3178_v4, %v358_v62  ;;  %v3359_v34 = vld [vmem:[#allocation5 + $0x70] sm:$0xff] }
 0x28c   :  { %v519_v39 = vsub.f32 %v3238_v47, %v493_v35 }
 0x28d   :  { %v428_v44 = vmul.f32 0.2, %v396_v36  ;;  %vm412_vm7 = vcmp.gt.f32.partialorder %v396_v36, 0.0  ;;  %v430_v16 = vmul.f32 0.2, %v398_v3 }
 0x28e   :  { %v540_v47 = vmul.f32 1.442695, %v519_v39 }
 0x28f   :  { %v444_v55 = vsel %vm412_vm7, %v396_v36, %v428_v44  ;;  %vm414_vm7 = vcmp.gt.f32.partialorder %v398_v3, 0.0 }
 0x290   :  { %584 = vadd.xlane.f32.xlu2 %v3288_v38  ;;  %2588 = vpow2.f32 %v540_v47  ;;  %v3313_v58 = vsel %vm4263_vm10, %v444_v55, -1e+30  ;;  %v446_v19 = vsel %vm414_vm7, %v398_v3, %v430_v16  ;;  %vm4259_vm7 = vcmp.gt.f32.partialorder %v3359_v34, 0.0  ;;  %v3379_v55 = vld [vmem:[#allocation5 + $0x78] sm:$0xff] }
 0x291   :  { %v3344_v20 = vsel %vm4260_vm12, %v446_v19, -1e+30 }
 0x292   :  { %500 = vmax.xlane.f32.xlu1 %v3296_v43  ;;  %363 = vadd.xlane.f32.xlu0 %v332_v40 }
 0x293   :  { %v495_v45 = vpop.xlane.xlu0 %494 }
 0x294   :  { %v520_v56 = vsub.f32 %v3246_v52, %v495_v45 }
 0x296   :  { %v542_v63 = vmul.f32 1.442695, %v520_v56  ;;  %v2589_v2 = vpop.eup %2588 }
 0x297   :  { %v3334_v15 = vmul.f32 %v2589_v2, %v3228_v41 }
 0x298   :  { %586 = vadd.xlane.f32.xlu2 %v3304_v50  ;;  %2590 = vpow2.f32 %v542_v63 }
 0x29a   :  { %582 = vadd.xlane.f32.xlu1 %v3308_v57  ;;  %502 = vmax.xlane.f32.xlu0 %v3313_v58 }
 0x29b   :  { %v360_v52 = vpop.xlane.xlu0 %359 }
 0x29c   :  { %v399_v0 = vadd.f32 %v3178_v4, %v360_v52 }
 0x29e   :  { %v431_v7 = vmul.f32 0.2, %v399_v0  ;;  %vm415_vm4 = vcmp.gt.f32.partialorder %v399_v0, 0.0  ;;  %v2591_v18 = vpop.eup %2590 }
 0x29f   :  { %v3347_v21 = vmul.f32 %v2591_v18, %v3241_v49 }
 0x2a0   :  { %v447_v9 = vsel %vm415_vm4, %v399_v0, %v431_v7 }
 0x2a1   :  { %v3331_v13 = vsel %vm4261_vm3, %v447_v9, -1e+30 }
 0x2a2   :  { %504 = vmax.xlane.f32.xlu1 %v3327_v10  ;;  %508 = vmax.xlane.f32.xlu2 %v3331_v13 }
 0x2a3   :  { %588 = vadd.xlane.f32.xlu0 %v3334_v15 }
 0x2aa   :  { %506 = vmax.xlane.f32.xlu1 %v3344_v20 }
 0x2ab   :  { %590 = vadd.xlane.f32.xlu0 %v3347_v21 }
 0x2f3   :  { %v3351_v22 = vpop.xlane.xlu2 %580 }
 0x2f4   :  { %2592 = vrcp.f32 %v3351_v22  ;;  %v636_v2 = vand.u32 2147483648, %v3351_v22  ;;  %v634_v7 = vand.u32 2147483647, %v3351_v22  ;;  %vm630_vm12 = vweird.f32 %v3351_v22 }
 0x2f5   :  { %v497_v23 = vpop.xlane.xlu1 %496 }
 0x2f6   :  { %v521_v25 = vsub.f32 %v3262_v11, %v497_v23 }
 0x2f8   :  { %v544_v29 = vmul.f32 1.442695, %v521_v25 }
 0x2fa   :  { %2594 = vpow2.f32 %v544_v29  ;;  %v3355_v30 = vpop.eup %2592 }
 0x2fb   :  { %v626_v31 = vmul.f32 %v3355_v30, %v3351_v22  ;;  %v362_v33 = vpop.xlane.xlu2 %361 }
 0x2fc   :  { %v400_v35 = vadd.f32 %v3178_v4, %v362_v33 }
 0x2fd   :  { %v3362_v36 = vpop.xlane.xlu1 %578  ;;  %v499_v37 = vpop.xlane.xlu0 %498  ;;  %v627_v39 = vsub.f32 1.0, %v626_v31 }
 0x2fe   :  { %2596 = vrcp.f32 %v3362_v36  ;;  %v432_v40 = vmul.f32 0.2, %v400_v35  ;;  %v522_v11 = vsub.f32 %v3279_v26, %v499_v37  ;;  %vm416_vm4 = vcmp.gt.f32.partialorder %v400_v35, 0.0 }
 0x2ff   :  { %v628_v47 = vmul.f32 %v3355_v30, %v627_v39  ;;  %v619_v18 = vand.u32 2147483647, %v3362_v36  ;;  %vm615_vm6 = vweird.f32 %v3362_v36 }
 0x300   :  { %v2595_v42 = vpop.eup %2594  ;;  %v546_v44 = vmul.f32 1.442695, %v522_v11  ;;  %v448_v48 = vsel %vm416_vm4, %v400_v35, %v432_v40  ;;  %vm631_vm4 = vweird.f32 %v3355_v30  ;;  %v637_v35 = vor.u32 1.1754944e-38, %v636_v2 }
 0x301   :  { %v3368_v45 = vmul.f32 %v2595_v42, %v3251_v1  ;;  %v3373_v51 = vsel %vm4259_vm7, %v448_v48, -1e+30  ;;  %v629_v0 = vadd.f32 %v3355_v30, %v628_v47  ;;  %vm4265_vm7 = vcmp.gt.f32.partialorder %v3379_v55, 0.0  ;;  %vm3393_vm10 = vmor %vm630_vm12, %vm631_vm4 }
 0x302   :  { %2598 = vpow2.f32 %v546_v44  ;;  %510 = vmax.xlane.f32.xlu2 %v3373_v51  ;;  %vm620_vm12 = vcmp.eq.f32.partialorder %v619_v18, 8.507059e+37 }
 0x303   :  { %592 = vadd.xlane.f32.xlu1 %v3368_v45  ;;  %v3377_v32 = vpop.xlane.xlu2 %584  ;;  %v633_v22 = vsel %vm3393_vm10, %v3355_v30, %v629_v0 }
 0x304   :  { %v2597_v26 = vpop.eup %2596  ;;  %2600 = vrcp.f32 %v3377_v32  ;;  %v664_v18 = vand.u32 2147483647, %v3377_v32 }
 0x305   :  { %v611_v56 = vmul.f32 %v2597_v26, %v3362_v36  ;;  %v501_v59 = vpop.xlane.xlu1 %500  ;;  %v364_v62 = vpop.xlane.xlu0 %363  ;;  %vm616_vm14 = vweird.f32 %v2597_v26 }
 0x306   :  { %v523_v52 = vsub.f32 %v3296_v43, %v501_v59  ;;  %v401_v63 = vadd.f32 %v3178_v4, %v364_v62  ;;  %v621_v4 = vand.u32 2147483648, %v3362_v36  ;;  %vm617_vm10 = vmor %vm615_vm6, %vm616_vm14  ;;  %vm660_vm14 = vweird.f32 %v3377_v32 }
 0x307   :  { %v612_v3 = vsub.f32 1.0, %v611_v56 }
 0x308   :  { %v548_v8 = vmul.f32 1.442695, %v523_v52  ;;  %v433_v9 = vmul.f32 0.2, %v401_v63  ;;  %vm417_vm3 = vcmp.gt.f32.partialorder %v401_v63, 0.0  ;;  %v2599_v16 = vpop.eup %2598  ;;  %v622_v11 = vor.u32 1.1754944e-38, %v621_v4 }
 0x309   :  { %v613_v43 = vmul.f32 %v2597_v26, %v612_v3  ;;  %v3398_v23 = vmul.f32 %v2599_v16, %v3265_v14 }
 0x30a   :  { %2602 = vpow2.f32 %v548_v8  ;;  %v449_v25 = vsel %vm417_vm3, %v401_v63, %v433_v9  ;;  %v3403_v29 = vpop.eup %2600  ;;  %vm635_vm3 = vcmp.eq.f32.partialorder %v634_v7, 8.507059e+37 }
 0x30b   :  { %v3408_v31 = vsel %vm4265_vm7, %v449_v25, -1e+30  ;;  %v614_v33 = vadd.f32 %v2597_v26, %v613_v43  ;;  %v656_v37 = vmul.f32 %v3403_v29, %v3377_v32  ;;  %594 = vadd.xlane.f32.xlu1 %v3398_v23  ;;  %v3413_v39 = vpop.xlane.xlu2 %586  ;;  %v638_v42 = vsel %vm635_vm3, %v637_v35, %v633_v22 }
 0x30c   :  { %512 = vmax.xlane.f32.xlu0 %v3408_v31  ;;  %v639_v62 = vmul.f32 %v638_v42, %v3257_v53  ;;  %vm661_vm6 = vweird.f32 %v3403_v29  ;;  %v666_v53 = vand.u32 2147483648, %v3377_v32 }
 0x30d   :  { %v583_v30 = vpop.xlane.xlu1 %582  ;;  %v503_v36 = vpop.xlane.xlu0 %502  ;;  %v618_v40 = vsel %vm617_vm10, %v2597_v26, %v614_v33  ;;  %v657_v44 = vsub.f32 1.0, %v656_v37  ;;  %vm3438_vm4 = vmor %vm660_vm14, %vm661_vm6 }
 0x30e   :  { %2604 = vrcp.f32 %v583_v30  ;;  %v524_v48 = vsub.f32 %v3313_v58, %v503_v36  ;;  %v623_v47 = vsel %vm620_vm12, %v622_v11, %v618_v40  ;;  %v651_v19 = vand.u32 2147483648, %v583_v30 }
 0x30f   :  { %v624_v59 = vmul.f32 %v623_v47, %v3275_v24  ;;  %v658_v52 = vmul.f32 %v3403_v29, %v657_v44  ;;  %2606 = vrcp.f32 %v3413_v39  ;;  %v649_v35 = vand.u32 2147483647, %v583_v30 }
 0x310   :  { %v2603_v56 = vpop.eup %2602  ;;  %v550_v63 = vmul.f32 1.442695, %v524_v48  ;;  %v667_v40 = vor.u32 1.1754944e-38, %v666_v53  ;;  %vm645_vm3 = vweird.f32 %v583_v30  ;;  %vm665_vm12 = vcmp.eq.f32.partialorder %v664_v18, 8.507059e+37 }
 0x311   :  { %v3423_v26 = vmul.f32 %v2603_v56, %v3283_v54  ;;  %v850_v0 = vpack.c.bf16 %v639_v62, %v624_v59  ;;  %v659_v24 = vadd.f32 %v3403_v29, %v658_v52  ;;  %v652_v42 = vor.u32 1.1754944e-38, %v651_v19 }
 0x312   :  { %2608 = vpow2.f32 %v550_v63  ;;  %vm650_vm14 = vcmp.eq.f32.partialorder %v649_v35, 8.507059e+37  ;;  %v681_v18 = vand.u32 2147483648, %v3413_v39 }
 0x313   :  { %596 = vadd.xlane.f32.xlu2 %v3423_v26  ;;  %875 = vmatmul.bf16.vlgmr.msra.gmra.mxu2 %v850_v0  ;;  %v663_v37 = vsel %vm3438_vm4, %v3403_v29, %v659_v24 }
 0x314   :  { %v2605_v2 = vpop.eup %2604  ;;  %v668_v44 = vsel %vm665_vm12, %v667_v40, %v663_v37 }
 0x315   :  { %v641_v58 = vmul.f32 %v2605_v2, %v583_v30  ;;  %v505_v3 = vpop.xlane.xlu1 %504  ;;  %v509_v7 = vpop.xlane.xlu2 %508  ;;  %vm646_vm10 = vweird.f32 %v2605_v2  ;;  %v669_v63 = vmul.f32 %v668_v44, %v3288_v38  ;;  %v2548_v44 = vld [vmem:[#allocation10 + $0x30] sm:$0xff] }
 0x316   :  { %v525_v8 = vsub.f32 %v3327_v10, %v505_v3  ;;  %v527_v9 = vsub.f32 %v3331_v13, %v509_v7  ;;  %v3431_v16 = vpop.xlane.xlu0 %588  ;;  %v3433_v43 = vpop.eup %2606  ;;  %vm647_vm6 = vmor %vm645_vm3, %vm646_vm10 }
 0x317   :  { %v642_v4 = vsub.f32 1.0, %v641_v58  ;;  %2610 = vrcp.f32 %v3431_v16  ;;  %v671_v36 = vmul.f32 %v3433_v43, %v3413_v39  ;;  %vm690_vm10 = vweird.f32 %v3431_v16 }
 0x318   :  { %v552_v25 = vmul.f32 1.442695, %v525_v8  ;;  %v556_v22 = vmul.f32 1.442695, %v527_v9  ;;  %v2609_v10 = vpop.eup %2608  ;;  %vm676_vm3 = vweird.f32 %v3433_v43 }
 0x319   :  { %v643_v13 = vmul.f32 %v2605_v2, %v642_v4  ;;  %v3448_v32 = vmul.f32 %v2609_v10, %v3299_v46  ;;  %v672_v56 = vsub.f32 1.0, %v671_v36  ;;  %v694_v4 = vand.u32 2147483647, %v3431_v16 }
 0x31a   :  { %2612 = vpow2.f32 %v552_v25  ;;  %v679_v25 = vand.u32 2147483647, %v3413_v39 }
 0x31b   :  { %2614 = vpow2.f32 %v556_v22  ;;  %v644_v11 = vadd.f32 %v2605_v2, %v643_v13  ;;  %598 = vadd.xlane.f32.xlu0 %v3448_v32  ;;  %vm695_vm7 = vcmp.eq.f32.partialorder %v694_v4, 8.507059e+37 }
 0x31c   :  { %vm680_vm2 = vcmp.eq.f32.partialorder %v679_v25, 8.507059e+37 }
 0x31d   :  { %v2611_v48 = vpop.eup %2610  ;;  %v507_v47 = vpop.xlane.xlu1 %506  ;;  %v648_v29 = vsel %vm647_vm6, %v2605_v2, %v644_v11  ;;  %v673_v2 = vmul.f32 %v3433_v43, %v672_v56  ;;  %vm675_vm6 = vweird.f32 %v3413_v39 }
 0x31e   :  { %v686_v59 = vmul.f32 %v2611_v48, %v3431_v16  ;;  %v526_v62 = vsub.f32 %v3344_v20, %v507_v47  ;;  %v653_v52 = vsel %vm650_vm14, %v652_v42, %v648_v29  ;;  %vm691_vm4 = vweird.f32 %v2611_v48  ;;  %vm677_vm14 = vmor %vm675_vm6, %vm676_vm3  ;;  %v591_v11 = vpop.xlane.xlu0 %590  ;;  %v2549_v42 = vld [vmem:[#allocation10 + $0x38] sm:$0xff]  ;;  %v2546_v29 = vld [vmem:[#allocation10 + $0x20] sm:$0xff] }
 0x31f   :  { %v654_v30 = vmul.f32 %v653_v52, %v3308_v57  ;;  %v696_v57 = vand.u32 2147483648, %v3431_v16  ;;  %v674_v20 = vadd.f32 %v3433_v43, %v673_v2  ;;  %vm692_vm12 = vmor %vm690_vm10, %vm691_vm4  ;;  %v682_v16 = vor.u32 1.1754944e-38, %v681_v18  ;;  %1004 = vmatpush.bf16.msra.mxu3 %v2549_v42  ;;  %v2545_v52 = vld [vmem:[#allocation10 + $0x18] sm:$0xff] }
 0x320   :  { %v2613_v0 = vpop.eup %2612  ;;  %v687_v58 = vsub.f32 1.0, %v686_v59  ;;  %v554_v3 = vmul.f32 1.442695, %v526_v62  ;;  %v711_v2 = vand.u32 2147483648, %v591_v11 }
 0x321   :  { %v2615_v7 = vpop.eup %2614  ;;  %v851_v24 = vpack.c.bf16 %v669_v63, %v654_v30  ;;  %v3456_v53 = vmul.f32 %v2613_v0, %v3317_v60  ;;  %v697_v10 = vor.u32 1.1754944e-38, %v696_v57  ;;  %v678_v13 = vsel %vm677_vm14, %v3433_v43, %v674_v20  ;;  %v2544_v0 = vld [vmem:[#allocation10 + $0x10] sm:$0xff]  ;;  %v2543_v20 = vld [vmem:[#allocation10 + $0x8] sm:$0xff] }
 0x322   :  { %v688_v8 = vmul.f32 %v2611_v48, %v687_v58  ;;  %2616 = vpow2.f32 %v554_v3  ;;  %v3460_v9 = vmul.f32 %v2615_v7, %v3319_v61  ;;  %v683_v37 = vsel %vm680_vm2, %v682_v16, %v678_v13 }
 0x323   :  { %600 = vadd.xlane.f32.xlu1 %v3456_v53  ;;  %880 = vmatmul.bf16.gmra.mxu2 %v851_v24  ;;  %v684_v40 = vmul.f32 %v683_v37, %v3304_v50  ;;  %2618 = vrcp.f32 %v591_v11  ;;  %v709_v57 = vand.u32 2147483647, %v591_v11 }
 0x324   :  { %604 = vadd.xlane.f32.xlu0 %v3460_v9  ;;  %v689_v38 = vadd.f32 %v2611_v48, %v688_v8  ;;  %1005 = vmatpush.bf16.msra.mxu3 %v2548_v44 }
 0x326   :  { %v693_v22 = vsel %vm692_vm12, %v2611_v48, %v689_v38  ;;  %v2547_v48 = vld [vmem:[#allocation10 + $0x28] sm:$0xff]  ;;  %vm710_vm12 = vcmp.eq.f32.partialorder %v709_v57, 8.507059e+37 }
 0x327   :  { %v698_v35 = vsel %vm695_vm7, %v697_v10, %v693_v22  ;;  %vm705_vm7 = vweird.f32 %v591_v11 }
 0x328   :  { %v2617_v19 = vpop.eup %2616  ;;  %v699_v36 = vmul.f32 %v698_v35, %v3334_v15  ;;  %1006 = vmatpush.bf16.msra.mxu3 %v2547_v48  ;;  %v2542_v35 = vld [vmem:[#allocation10] sm:$0xff] }
 0x329   :  { %v3473_v33 = vmul.f32 %v2617_v19, %v3339_v17  ;;  %v2619_v43 = vpop.eup %2618 }
 0x32a   :  { %v852_v39 = vpack.c.bf16 %v699_v36, %v684_v40  ;;  %v701_v47 = vmul.f32 %v2619_v43, %v591_v11  ;;  %vm706_vm2 = vweird.f32 %v2619_v43 }
 0x32b   :  { %602 = vadd.xlane.f32.xlu2 %v3473_v33  ;;  %vm3487_vm4 = vmor %vm705_vm7, %vm706_vm2 }
 0x32c   :  { %v702_v62 = vsub.f32 1.0, %v701_v47  ;;  %1007 = vmatpush.bf16.msra.mxu3 %v2546_v29 }
 0x32e   :  { %v703_v30 = vmul.f32 %v2619_v43, %v702_v62 }
 0x330   :  { %1008 = vmatpush.bf16.msra.mxu3 %v2545_v52  ;;  %v704_v24 = vadd.f32 %v2619_v43, %v703_v30 }
 0x332   :  { %v708_v10 = vsel %vm3487_vm4, %v2619_v43, %v704_v24 }
 0x333   :  { %885 = vmatmul.bf16.gmra.mxu2 %v852_v39 }
 0x334   :  { %1009 = vmatpush.bf16.msra.mxu3 %v2544_v0 }
 0x338   :  { %1010 = vmatpush.bf16.msra.mxu3 %v2543_v20 }
 0x33c   :  { %1011 = vmatpush.bf16.msra.mxu3 %v2542_v35 }
 0x375   :  { %v511_v59 = vpop.xlane.xlu2 %510 }
 0x376   :  { %v593_v56 = vpop.xlane.xlu1 %592  ;;  %v528_v15 = vsub.f32 %v3373_v51, %v511_v59 }
 0x377   :  { %2620 = vrcp.f32 %v593_v56  ;;  %v726_v18 = vand.u32 2147483648, %v593_v56  ;;  %v724_v13 = vand.u32 2147483647, %v593_v56  ;;  %vm720_vm3 = vweird.f32 %v593_v56 }
 0x378   :  { %v558_v50 = vmul.f32 1.442695, %v528_v15 }
 0x379   :  { %v727_v11 = vor.u32 1.1754944e-38, %v726_v18  ;;  %vm725_vm14 = vcmp.eq.f32.partialorder %v724_v13, 8.507059e+37 }
 0x37a   :  { %2622 = vpow2.f32 %v558_v50 }
 0x37d   :  { %v2621_v63 = vpop.eup %2620 }
 0x37e   :  { %v716_v58 = vmul.f32 %v2621_v63, %v593_v56  ;;  %v3480_v3 = vpop.xlane.xlu1 %594  ;;  %vm721_vm10 = vweird.f32 %v2621_v63 }
 0x37f   :  { %v513_v7 = vpop.xlane.xlu0 %512  ;;  %2624 = vrcp.f32 %v3480_v3  ;;  %vm722_vm6 = vmor %vm720_vm3, %vm721_vm10  ;;  %vm735_vm7 = vweird.f32 %v3480_v3  ;;  %v739_v0 = vand.u32 2147483647, %v3480_v3 }
 0x380   :  { %v717_v8 = vsub.f32 1.0, %v716_v58  ;;  %v2623_v51 = vpop.eup %2622  ;;  %v529_v38 = vsub.f32 %v3408_v31, %v513_v7  ;;  %v712_v31 = vor.u32 1.1754944e-38, %v711_v2 }
 0x381   :  { %v3485_v19 = vmul.f32 %v2623_v51, %v3359_v34 }
 0x382   :  { %v718_v4 = vmul.f32 %v2621_v63, %v717_v8  ;;  %v560_v22 = vmul.f32 1.442695, %v529_v38  ;;  %v713_v40 = vsel %vm710_vm12, %v712_v31, %v708_v10  ;;  %v3506_v10 = vld [vmem:[#allocation13 + $0x2] ss:$0 sm:$0xff] }
 0x383   :  { %606 = vadd.xlane.f32.xlu1 %v3485_v19  ;;  %v714_v48 = vmul.f32 %v713_v40, %v3347_v21  ;;  %v741_v21 = vand.u32 2147483648, %v3480_v3 }
 0x384   :  { %v719_v16 = vadd.f32 %v2621_v63, %v718_v4  ;;  %2626 = vpow2.f32 %v560_v22 }
 0x385   :  { %v2625_v37 = vpop.eup %2624  ;;  %v742_v8 = vor.u32 1.1754944e-38, %v741_v21 }
 0x386   :  { %v597_v36 = vpop.xlane.xlu2 %596  ;;  %v723_v39 = vsel %vm722_vm6, %v2621_v63, %v719_v16  ;;  %v731_v42 = vmul.f32 %v2625_v37, %v3480_v3  ;;  %vm736_vm2 = vweird.f32 %v2625_v37  ;;  %vm740_vm6 = vcmp.eq.f32.partialorder %v739_v0, 8.507059e+37 }
 0x387   :  { %2628 = vrcp.f32 %v597_v36  ;;  %v728_v44 = vsel %vm725_vm14, %v727_v11, %v723_v39  ;;  %v756_v58 = vand.u32 2147483648, %v597_v36  ;;  %vm737_vm10 = vmor %vm735_vm7, %vm736_vm2  ;;  %vm750_vm3 = vweird.f32 %v597_v36 }
 0x388   :  { %v732_v43 = vsub.f32 1.0, %v731_v42  ;;  %v729_v47 = vmul.f32 %v728_v44, %v3368_v45  ;;  %v754_v2 = vand.u32 2147483647, %v597_v36 }
 0x389   :  { %v757_v25 = vor.u32 1.1754944e-38, %v756_v58 }
 0x38a   :  { %v2627_v29 = vpop.eup %2626  ;;  %v853_v56 = vpack.c.bf16 %v729_v47, %v714_v48  ;;  %v733_v59 = vmul.f32 %v2625_v37, %v732_v43  ;;  %vm755_vm14 = vcmp.eq.f32.partialorder %v754_v2, 8.507059e+37 }
 0x38b   :  { %v3498_v62 = vmul.f32 %v2627_v29, %v3379_v55 }
 0x38c   :  { %890 = vmatmul.bf16.gmra.mxu2 %v853_v56  ;;  %v734_v63 = vadd.f32 %v2625_v37, %v733_v59 }
 0x38d   :  { %v2629_v15 = vpop.eup %2628  ;;  %608 = vadd.xlane.f32.xlu2 %v3498_v62 }
 0x38e   :  { %v746_v50 = vmul.f32 %v2629_v15, %v597_v36  ;;  %v599_v52 = vpop.xlane.xlu0 %598  ;;  %vm751_vm4 = vweird.f32 %v2629_v15  ;;  %v738_v7 = vsel %vm737_vm10, %v2625_v37, %v734_v63 }
 0x38f   :  { %2630 = vrcp.f32 %v599_v52  ;;  %vm752_vm12 = vmor %vm750_vm3, %vm751_vm4  ;;  %v743_v18 = vsel %vm740_vm6, %v742_v8, %v738_v7  ;;  %v771_v44 = vand.u32 2147483648, %v599_v52  ;;  %vm765_vm7 = vweird.f32 %v599_v52 }
 0x390   :  { %v747_v30 = vsub.f32 1.0, %v746_v50  ;;  %v744_v31 = vmul.f32 %v743_v18, %v3398_v23  ;;  %v769_v23 = vand.u32 2147483647, %v599_v52 }
 0x391   :  { %v772_v63 = vor.u32 1.1754944e-38, %v771_v44 }
 0x392   :  { %v748_v45 = vmul.f32 %v2629_v15, %v747_v30  ;;  %vm770_vm3 = vcmp.eq.f32.partialorder %v769_v23, 8.507059e+37 }
 0x394   :  { %v749_v24 = vadd.f32 %v2629_v15, %v748_v45 }
 0x395   :  { %v2631_v51 = vpop.eup %2630 }
 0x396   :  { %v601_v38 = vpop.xlane.xlu1 %600  ;;  %v753_v57 = vsel %vm752_vm12, %v2629_v15, %v749_v24  ;;  %v761_v20 = vmul.f32 %v2631_v51, %v599_v52  ;;  %v876_v4 = vpop.f32.mrf.mxu2  ;;  %vm766_vm2 = vweird.f32 %v2631_v51 }
 0x397   :  { %2632 = vrcp.f32 %v601_v38  ;;  %v3504_v22 = vpop.xlane.xlu0 %604  ;;  %v758_v13 = vsel %vm755_vm14, %v757_v25, %v753_v57  ;;  %v877_v40 = vadd.f32 %v3506_v10, %v876_v4  ;;  %v786_v56 = vand.u32 2147483648, %v601_v38  ;;  %vm767_vm4 = vmor %vm765_vm7, %vm766_vm2 }
 0x398   :  { %v762_v3 = vsub.f32 1.0, %v761_v20  ;;  %v759_v16 = vmul.f32 %v758_v13, %v3423_v26  ;;  %2634 = vrcp.f32 %v3504_v22  ;;  %v784_v59 = vand.u32 2147483647, %v601_v38 }
 0x399   :  { %v916_v29 = vmax.f32 %v877_v40, 0.0  ;;  %vm780_vm12 = vweird.f32 %v601_v38  ;;  %v787_v7 = vor.u32 1.1754944e-38, %v786_v56  ;;  %v814_v44 = vand.u32 2147483647, %v3504_v22 }
 0x39a   :  { %v763_v35 = vmul.f32 %v2631_v51, %v762_v3  ;;  %v854_v37 = vpack.c.bf16 %v759_v16, %v744_v31  ;;  %vm785_vm14 = vcmp.eq.f32.partialorder %v784_v59, 8.507059e+37 }
 0x39c   :  { %895 = vmatmul.bf16.gmra.mxu2 %v854_v37  ;;  %v764_v42 = vadd.f32 %v2631_v51, %v763_v35 }
 0x39d   :  { %v2633_v36 = vpop.eup %2632 }
 0x39e   :  { %v776_v39 = vmul.f32 %v2633_v36, %v601_v38  ;;  %v3512_v11 = vpop.xlane.xlu2 %602  ;;  %v878_v43 = vpop.f32.mrf.mxu2  ;;  %v768_v30 = vsel %vm767_vm4, %v2631_v51, %v764_v42  ;;  %vm781_vm10 = vweird.f32 %v2633_v36 }
 0x39f   :  { %2636 = vrcp.f32 %v3512_v11  ;;  %v879_v48 = vadd.f32 %v3506_v10, %v878_v43  ;;  %v2635_v47 = vpop.eup %2634  ;;  %v773_v58 = vsel %vm770_vm3, %v772_v63, %v768_v30  ;;  %vm782_vm6 = vmor %vm780_vm12, %vm781_vm10  ;;  %vm795_vm7 = vweird.f32 %v3512_v11 }
 0x3a0   :  { %v777_v26 = vsub.f32 1.0, %v776_v39  ;;  %v806_v21 = vmul.f32 %v2635_v47, %v3504_v22  ;;  %v774_v4 = vmul.f32 %v773_v58, %v3448_v32  ;;  %v801_v16 = vand.u32 2147483648, %v3512_v11 }
 0x3a1   :  { %v917_v50 = vmax.f32 %v879_v48, 0.0  ;;  %vm811_vm4 = vweird.f32 %v2635_v47  ;;  %vm810_vm10 = vweird.f32 %v3504_v22 }
 0x3a2   :  { %v778_v15 = vmul.f32 %v2633_v36, %v777_v26  ;;  %v807_v51 = vsub.f32 1.0, %v806_v21  ;;  %v802_v43 = vor.u32 1.1754944e-38, %v801_v16  ;;  %vm812_vm12 = vmor %vm810_vm10, %vm811_vm4 }
 0x3a3   :  { %v932_v45 = vpack.c.bf16 %v917_v50, %v916_v29 }
 0x3a4   :  { %v779_v0 = vadd.f32 %v2633_v36, %v778_v15  ;;  %v808_v3 = vmul.f32 %v2635_v47, %v807_v51 }
 0x3a5   :  { %v2637_v52 = vpop.eup %2636  ;;  %1012 = vmatmul.bf16.vlgmr.msra.gmra.mxu3 %v932_v45 }
 0x3a6   :  { %v791_v24 = vmul.f32 %v2637_v52, %v3512_v11  ;;  %v783_v2 = vsel %vm782_vm6, %v2633_v36, %v779_v0  ;;  %v881_v8 = vpop.f32.mrf.mxu2  ;;  %vm796_vm2 = vweird.f32 %v2637_v52  ;;  %v799_v36 = vand.u32 2147483647, %v3512_v11 }
 0x3a7   :  { %v788_v57 = vsel %vm785_vm14, %v787_v7, %v783_v2  ;;  %v882_v13 = vadd.f32 %v3506_v10, %v881_v8  ;;  %v809_v32 = vadd.f32 %v2635_v47, %v808_v3  ;;  %vm797_vm3 = vmor %vm795_vm7, %vm796_vm2  ;;  %vm815_vm14 = vcmp.eq.f32.partialorder %v814_v44, 8.507059e+37 }
 0x3a8   :  { %v792_v20 = vsub.f32 1.0, %v791_v24  ;;  %v789_v38 = vmul.f32 %v788_v57, %v3456_v53  ;;  %v816_v53 = vand.u32 2147483648, %v3504_v22  ;;  %vm800_vm6 = vcmp.eq.f32.partialorder %v799_v36, 8.507059e+37 }
 0x3a9   :  { %v918_v40 = vmax.f32 %v882_v13, 0.0  ;;  %v813_v26 = vsel %vm812_vm12, %v2635_v47, %v809_v32 }
 0x3aa   :  { %v793_v18 = vmul.f32 %v2637_v52, %v792_v20  ;;  %v855_v25 = vpack.c.bf16 %v789_v38, %v774_v4  ;;  %v817_v29 = vor.u32 1.1754944e-38, %v816_v53 }
 0x3ac   :  { %900 = vmatmul.bf16.gmra.mxu2 %v855_v25  ;;  %v794_v31 = vadd.f32 %v2637_v52, %v793_v18  ;;  %v818_v56 = vsel %vm815_vm14, %v817_v29, %v813_v26  ;;  %v3536_v29 = vld [vmem:[#allocation13 + $0x4] ss:$0 sm:$0xff] }
 0x3ad   :  { %v819_v15 = vmul.f32 %v818_v56, %v3460_v9 }
 0x3ae   :  { %v883_v35 = vpop.f32.mrf.mxu2  ;;  %v798_v42 = vsel %vm797_vm3, %v2637_v52, %v794_v31 }
 0x3af   :  { %v884_v37 = vadd.f32 %v3506_v10, %v883_v35  ;;  %v803_v48 = vsel %vm800_vm6, %v802_v43, %v798_v42 }
 0x3b0   :  { %v804_v59 = vmul.f32 %v803_v48, %v3473_v33 }
 0x3b1   :  { %v919_v39 = vmax.f32 %v884_v37, 0.0 }
 0x3b2   :  { %v856_v50 = vpack.c.bf16 %v819_v15, %v804_v59 }
 0x3b3   :  { %v933_v23 = vpack.c.bf16 %v919_v39, %v918_v40 }
 0x3b5   :  { %1017 = vmatmul.bf16.gmra.mxu3 %v933_v23 }
 0x3b6   :  { %v886_v11 = vpop.f32.mrf.mxu2 }
 0x3b7   :  { %v887_v30 = vadd.f32 %v3506_v10, %v886_v11 }
 0x3b9   :  { %v920_v21 = vmax.f32 %v887_v30, 0.0 }
 0x3bc   :  { %905 = vmatmul.bf16.gmra.mxu2 %v856_v50 }
 0x3be   :  { %v888_v22 = vpop.f32.mrf.mxu2 }
 0x3bf   :  { %v889_v63 = vadd.f32 %v3506_v10, %v888_v22 }
 0x3c1   :  { %v921_v45 = vmax.f32 %v889_v63, 0.0 }
 0x3c3   :  { %v934_v47 = vpack.c.bf16 %v921_v45, %v920_v21 }
 0x3c5   :  { %1022 = vmatmul.bf16.gmra.mxu3 %v934_v47 }
 0x3f6   :  { %v607_v0 = vpop.xlane.xlu1 %606 }
 0x3f7   :  { %2638 = vrcp.f32 %v607_v0  ;;  %v831_v57 = vand.u32 2147483648, %v607_v0  ;;  %vm825_vm7 = vweird.f32 %v607_v0  ;;  %v829_v20 = vand.u32 2147483647, %v607_v0 }
 0x3f9   :  { %v832_v3 = vor.u32 1.1754944e-38, %v831_v57  ;;  %vm830_vm12 = vcmp.eq.f32.partialorder %v829_v20, 8.507059e+37 }
 0x3fd   :  { %v2639_v52 = vpop.eup %2638 }
 0x3fe   :  { %v821_v58 = vmul.f32 %v2639_v52, %v607_v0  ;;  %vm826_vm2 = vweird.f32 %v2639_v52 }
 0x3ff   :  { %vm827_vm4 = vmor %vm825_vm7, %vm826_vm2 }
 0x400   :  { %v822_v7 = vsub.f32 1.0, %v821_v58  ;;  %v609_v24 = vpop.xlane.xlu2 %608 }
 0x401   :  { %2640 = vrcp.f32 %v609_v24  ;;  %v846_v4 = vand.u32 2147483648, %v609_v24  ;;  %v844_v25 = vand.u32 2147483647, %v609_v24  ;;  %vm840_vm3 = vweird.f32 %v609_v24 }
 0x402   :  { %v823_v33 = vmul.f32 %v2639_v52, %v822_v7 }
 0x403   :  { %v847_v35 = vor.u32 1.1754944e-38, %v846_v4  ;;  %vm845_vm14 = vcmp.eq.f32.partialorder %v844_v25, 8.507059e+37 }
 0x404   :  { %v824_v8 = vadd.f32 %v2639_v52, %v823_v33 }
 0x406   :  { %v828_v18 = vsel %vm827_vm4, %v2639_v52, %v824_v8 }
 0x407   :  { %v2641_v9 = vpop.eup %2640  ;;  %v833_v16 = vsel %vm830_vm12, %v832_v3, %v828_v18 }
 0x408   :  { %v836_v2 = vmul.f32 %v2641_v9, %v609_v24  ;;  %vm841_vm10 = vweird.f32 %v2641_v9  ;;  %v834_v32 = vmul.f32 %v833_v16, %v3485_v19 }
 0x409   :  { %vm842_vm6 = vmor %vm840_vm3, %vm841_vm10 }
 0x40a   :  { %v837_v51 = vsub.f32 1.0, %v836_v2 }
 0x40c   :  { %v838_v38 = vmul.f32 %v2641_v9, %v837_v51 }
 0x40e   :  { %v839_v13 = vadd.f32 %v2641_v9, %v838_v38 }
 0x40f   :  { %v891_v31 = vpop.f32.mrf.mxu2 }
 0x410   :  { %v843_v37 = vsel %vm842_vm6, %v2641_v9, %v839_v13  ;;  %v892_v39 = vadd.f32 %v3506_v10, %v891_v31 }
 0x411   :  { %v848_v36 = vsel %vm845_vm14, %v847_v35, %v843_v37 }
 0x412   :  { %v849_v53 = vmul.f32 %v848_v36, %v3498_v62  ;;  %v922_v43 = vmax.f32 %v892_v39, 0.0 }
 0x414   :  { %v857_v40 = vpack.c.bf16 %v849_v53, %v834_v32 }
 0x416   :  { %910 = vmatmul.bf16.gmra.mxu2 %v857_v40 }
 0x417   :  { %v893_v42 = vpop.f32.mrf.mxu2 }
 0x418   :  { %v894_v44 = vadd.f32 %v3506_v10, %v893_v42 }
 0x41a   :  { %v923_v23 = vmax.f32 %v894_v44, 0.0 }
 0x41c   :  { %v935_v26 = vpack.c.bf16 %v923_v23, %v922_v43 }
 0x41e   :  { %1027 = vmatmul.bf16.gmra.mxu3 %v935_v26 }
 0x41f   :  { %v896_v48 = vpop.f32.mrf.mxu2 }
 0x420   :  { %v897_v11 = vadd.f32 %v3506_v10, %v896_v48 }
 0x422   :  { %v924_v15 = vmax.f32 %v897_v11, 0.0 }
 0x427   :  { %v898_v56 = vpop.f32.mrf.mxu2 }
 0x428   :  { %v3539_v19 = vpop.f32.mrf.mxu3  ;;  %v899_v62 = vadd.f32 %v3506_v10, %v898_v56 }
 0x429   :  { %v1054_v59 = vmul.f32 %v3536_v29, %v3539_v19 }
 0x42a   :  { %v925_v50 = vmax.f32 %v899_v62, 0.0 }
 0x42b   :  { %1070 = vadd.xlane.f32.xlu0 %v1054_v59 }
 0x42c   :  { %v936_v30 = vpack.c.bf16 %v925_v50, %v924_v15 }
 0x42e   :  { %1032 = vmatmul.bf16.gmra.mxu3 %v936_v30 }
 0x42f   :  { %v901_v22 = vpop.f32.mrf.mxu2 }
 0x430   :  { %v3544_v63 = vpop.f32.mrf.mxu3  ;;  %v902_v45 = vadd.f32 %v3506_v10, %v901_v22 }
 0x431   :  { %v1055_v21 = vmul.f32 %v3536_v29, %v3544_v63 }
 0x432   :  { %v926_v7 = vmax.f32 %v902_v45, 0.0 }
 0x433   :  { %1072 = vadd.xlane.f32.xlu1 %v1055_v21 }
 0x437   :  { %v903_v47 = vpop.f32.mrf.mxu2 }
 0x438   :  { %v3549_v0 = vpop.f32.mrf.mxu3  ;;  %v904_v52 = vadd.f32 %v3506_v10, %v903_v47  ;;  %v1579_v47 = vpack.c.bf16 %v3544_v63, %v3539_v19 }
 0x439   :  { %v1056_v58 = vmul.f32 %v3536_v29, %v3549_v0 }
 0x43a   :  { %v927_v24 = vmax.f32 %v904_v52, 0.0  ;;  %v188_v52 = vld [vmem:[#allocation13 + $0x3] sm:$0x1] }
 0x43b   :  { %1074 = vadd.xlane.f32.xlu2 %v1056_v58 }
 0x43c   :  { %v937_v33 = vpack.c.bf16 %v927_v24, %v926_v7 }
 0x43e   :  { %1037 = vmatmul.bf16.gmra.mxu3 %v937_v33 }
 0x43f   :  { %v906_v9 = vpop.f32.mrf.mxu2 }
 0x440   :  { %v3554_v2 = vpop.f32.mrf.mxu3  ;;  %v907_v57 = vadd.f32 %v3506_v10, %v906_v9 }
 0x441   :  { %v1057_v8 = vmul.f32 %v3536_v29, %v3554_v2  ;;  %v1580_v45 = vpack.c.bf16 %v3554_v2, %v3549_v0 }
 0x442   :  { %v928_v18 = vmax.f32 %v907_v57, 0.0 }
 0x443   :  { %1076 = vadd.xlane.f32.xlu0 %v1057_v8 }
 0x447   :  { %v908_v51 = vpop.f32.mrf.mxu2 }
 0x448   :  { %v1023_v20 = vpop.f32.mrf.mxu3  ;;  %v909_v4 = vadd.f32 %v3506_v10, %v908_v51 }
 0x449   :  { %v1058_v38 = vmul.f32 %v3536_v29, %v1023_v20 }
 0x44a   :  { %v929_v25 = vmax.f32 %v909_v4, 0.0 }
 0x44b   :  { %1078 = vadd.xlane.f32.xlu1 %v1058_v38 }
 0x44c   :  { %v938_v3 = vpack.c.bf16 %v929_v25, %v928_v18 }
 0x44e   :  { %1042 = vmatmul.bf16.gmra.mxu3 %v938_v3 }
 0x450   :  { %v1025_v13 = vpop.f32.mrf.mxu3 }
 0x451   :  { %v1059_v31 = vmul.f32 %v3536_v29, %v1025_v13  ;;  %v1581_v21 = vpack.c.bf16 %v1025_v13, %v1023_v20 }
 0x453   :  { %1080 = vadd.xlane.f32.xlu2 %v1059_v31 }
 0x499   :  { %v911_v16 = vpop.f32.mrf.mxu2 }
 0x49a   :  { %v912_v35 = vadd.f32 %v3506_v10, %v911_v16 }
 0x49c   :  { %v930_v40 = vmax.f32 %v912_v35, 0.0 }
 0x49e   :  { %v1071_v58 = vpop.xlane.xlu0 %1070 }
 0x4a1   :  { %v913_v37 = vpop.f32.mrf.mxu2  ;;  %v1028_v36 = vpop.f32.mrf.mxu3 }
 0x4a2   :  { %v914_v32 = vadd.f32 %v3506_v10, %v913_v37  ;;  %v1060_v53 = vmul.f32 %v3536_v29, %v1028_v36 }
 0x4a4   :  { %v931_v39 = vmax.f32 %v914_v32, 0.0  ;;  %1082 = vadd.xlane.f32.xlu2 %v1060_v53 }
 0x4a6   :  { %v939_v42 = vpack.c.bf16 %v931_v39, %v930_v40  ;;  %v1073_v7 = vpop.xlane.xlu1 %1072 }
 0x4a8   :  { %1047 = vmatmul.bf16.gmra.mxu3 %v939_v42 }
 0x4a9   :  { %v3565_v44 = vpop.f32.mrf.mxu3 }
 0x4aa   :  { %v1582_v22 = vpack.c.bf16 %v3565_v44, %v1028_v36  ;;  %v1061_v53 = vmul.f32 %v3536_v29, %v3565_v44 }
 0x4ae   :  { %v1075_v8 = vpop.xlane.xlu2 %1074 }
 0x4b1   :  { %v3567_v43 = vpop.f32.mrf.mxu3 }
 0x4b6   :  { %v1077_v9 = vpop.xlane.xlu0 %1076 }
 0x4b9   :  { %v3569_v23 = vpop.f32.mrf.mxu3 }
 0x4ba   :  { %v1583_v30 = vpack.c.bf16 %v3569_v23, %v3567_v43 }
 0x4c1   :  { %v3571_v26 = vpop.f32.mrf.mxu3 }
 0x4c6   :  { %v1081_v42 = vpop.xlane.xlu2 %1080 }
 0x4c9   :  { %v3573_v48 = vpop.f32.mrf.mxu3 }
 0x4ca   :  { %v1584_v50 = vpack.c.bf16 %v3573_v48, %v3571_v26 }
 0x4d1   :  { %v3575_v11 = vpop.f32.mrf.mxu3 }
 0x4d9   :  { %v3577_v10 = vpop.f32.mrf.mxu3 }
 0x4da   :  { %v1585_v15 = vpack.c.bf16 %v3577_v10, %v3575_v11 }
 0x52b   :  { %v3579_v56 = vpop.f32.mrf.mxu3 }
 0x533   :  { %v3581_v62 = vpop.f32.mrf.mxu3 }
 0x534   :  { %1102 = vmatpush.xpose.msrb.mxu1 %v3581_v62  ;;  %v1586_v59 = vpack.c.bf16 %v3581_v62, %v3579_v56 }
 0x536   :  { %1588 = vmatpush.bf16.msrb.mxu0 %v1586_v59 }
 0x538   :  { %1103 = vmatpush.xpose.msrb.mxu1 %v3579_v56 }
 0x53a   :  { %1589 = vmatpush.bf16.msrb.mxu0 %v1585_v15  ;;  %v1063_v15 = vmul.f32 %v3536_v29, %v3569_v23 }
 0x53c   :  { %1104 = vmatpush.xpose.msrb.mxu1 %v3577_v10 }
 0x53e   :  { %1590 = vmatpush.bf16.msrb.mxu0 %v1584_v50  ;;  %v1065_v50 = vmul.f32 %v3536_v29, %v3573_v48 }
 0x540   :  { %1105 = vmatpush.xpose.msrb.mxu1 %v3575_v11 }
 0x542   :  { %1591 = vmatpush.bf16.msrb.mxu0 %v1583_v30 }
 0x544   :  { %1106 = vmatpush.xpose.msrb.mxu1 %v3573_v48 }
 0x546   :  { %1592 = vmatpush.bf16.msrb.mxu0 %v1582_v22  ;;  %v1083_v22 = vpop.xlane.xlu2 %1082 }
 0x548   :  { %1107 = vmatpush.xpose.msrb.mxu1 %v3571_v26 }
 0x54a   :  { %1593 = vmatpush.bf16.msrb.mxu0 %v1581_v21 }
 0x54c   :  { %1108 = vmatpush.xpose.msrb.mxu1 %v3569_v23 }
 0x54e   :  { %1594 = vmatpush.bf16.msrb.mxu0 %v1580_v45 }
 0x550   :  { %1109 = vmatpush.xpose.msrb.mxu1 %v3567_v43 }
 0x552   :  { %1595 = vmatpush.bf16.msrb.mxu0 %v1579_v47  ;;  %v1064_v47 = vmul.f32 %v3536_v29, %v3571_v26  ;;  %v1067_v26 = vmul.f32 %v3536_v29, %v3577_v10 }
 0x554   :  { %1110 = vmatpush.xpose.msrb.mxu1 %v3565_v44  ;;  %v1062_v44 = vmul.f32 %v3536_v29, %v3567_v43  ;;  %v1066_v43 = vmul.f32 %v3536_v29, %v3575_v11 }
 0x558   :  { %1111 = vmatpush.xpose.msrb.mxu1 %v1028_v36 }
 0x55c   :  { %1112 = vmatpush.xpose.msrb.mxu1 %v1025_v13 }
 0x560   :  { %1113 = vmatpush.xpose.msrb.mxu1 %v1023_v20 }
 0x564   :  { %1114 = vmatpush.xpose.msrb.mxu1 %v3554_v2 }
 0x568   :  { %1115 = vmatpush.xpose.msrb.mxu1 %v3549_v0 }
 0x56c   :  { %1116 = vmatpush.xpose.msrb.mxu1 %v3544_v63  ;;  %v1079_v63 = vpop.xlane.xlu1 %1078 }
 0x570   :  { %1117 = vmatpush.xpose.msrb.mxu1 %v3539_v19 }
 0x573   :  { %1118 = vmatmul.f32.vlgmr.msrb.gmra.mxu1 %v188_v52 }
 0x5f0   :  { %v1119_v24 = vpop.f32.mrf.mxu1 }
 0x5f1   :  { %v3609_v33 = vperm.slane %v1119_v24, 0 }
 0x5f3   :  { %v1124_v57 = vadd.f32 %v3609_v33, %v1073_v7  ;;  %v1123_v51 = vadd.f32 %v3609_v33, %v1071_v58  ;;  %v1126_v2 = vadd.f32 %v3609_v33, %v1077_v9  ;;  %v1125_v0 = vadd.f32 %v3609_v33, %v1075_v8 }
 0x5f4   :  { %v1127_v38 = vadd.f32 %v3609_v33, %v1079_v63  ;;  %v1128_v59 = vadd.f32 %v3609_v33, %v1081_v42  ;;  %v1129_v45 = vadd.f32 %v3609_v33, %v1083_v22 }
 0x5f5   :  { %vm1140_vm2 = vcmp.gt.f32.partialorder %v1124_v57, 0.0  ;;  %v1156_v19 = vmul.f32 0.2, %v1124_v57  ;;  %vm1139_vm7 = vcmp.gt.f32.partialorder %v1123_v51, 0.0  ;;  %v1155_v20 = vmul.f32 0.2, %v1123_v51 }
 0x5f6   :  { %vm1142_vm4 = vcmp.gt.f32.partialorder %v1126_v2, 0.0  ;;  %v1158_v4 = vmul.f32 0.2, %v1126_v2  ;;  %v1157_v35 = vmul.f32 0.2, %v1125_v0  ;;  %vm1141_vm10 = vcmp.gt.f32.partialorder %v1125_v0, 0.0 }
 0x5f7   :  { %v1172_v18 = vsel %vm1140_vm2, %v1124_v57, %v1156_v19  ;;  %v1171_v25 = vsel %vm1139_vm7, %v1123_v51, %v1155_v20  ;;  %v1159_v37 = vmul.f32 0.2, %v1127_v38  ;;  %vm1143_vm3 = vcmp.gt.f32.partialorder %v1127_v38, 0.0 }
 0x5f8   :  { %v1188_v3 = vsel %vm451_vm1, %v1172_v18, -1e+30  ;;  %v1187_v13 = vsel %vm450_vm5, %v1171_v25, -1e+30  ;;  %v1174_v31 = vsel %vm1142_vm4, %v1126_v2, %v1158_v4  ;;  %v1173_v36 = vsel %vm1141_vm10, %v1125_v0, %v1157_v35 }
 0x5f9   :  { %1205 = vmax.xlane.f32.xlu1 %v1188_v3  ;;  %1203 = vmax.xlane.f32.xlu0 %v1187_v13  ;;  %v1190_v16 = vsel %vm453_vm0, %v1174_v31, -1e+30  ;;  %v1175_v32 = vsel %vm1143_vm3, %v1127_v38, %v1159_v37  ;;  %v3626_v40 = vsel %vm452_vm9, %v1173_v36, -1e+30  ;;  %v1160_v30 = vmul.f32 0.2, %v1128_v59 }
 0x5fa   :  { %1209 = vmax.xlane.f32.xlu2 %v1190_v16  ;;  %v3631_v39 = vsel %vm454_vm8, %v1175_v32, -1e+30  ;;  %vm1144_vm12 = vcmp.gt.f32.partialorder %v1128_v59, 0.0  ;;  %v1161_v48 = vmul.f32 0.2, %v1129_v45  ;;  %vm1145_vm6 = vcmp.gt.f32.partialorder %v1129_v45, 0.0 }
 0x5fb   :  { %v1176_v21 = vsel %vm1144_vm12, %v1128_v59, %v1160_v30  ;;  %v2770_v38 = vld [vmem:[#allocation5 + $0x8] sm:$0xff]  ;;  %v1068_v59 = vmul.f32 %v3536_v29, %v3579_v56  ;;  %vm4273_vm7 = vcmp.gt.f32.partialorder %v3265_v14, 0.0  ;;  %vm4274_vm10 = vcmp.gt.f32.partialorder %v3283_v54, 0.0 }
 0x5fc   :  { %v3646_v23 = vsel %vm455_vm11, %v1176_v21, -1e+30  ;;  %v1177_v52 = vsel %vm1145_vm6, %v1129_v45, %v1161_v48  ;;  %vm4275_vm12 = vcmp.gt.f32.partialorder %v3299_v46, 0.0 }
 0x5fd   :  { %v3653_v58 = vsel %vm456_vm13, %v1177_v52, -1e+30  ;;  %v2772_v52 = vld [vmem:[#allocation5 + $0x18] sm:$0xff] }
 0x601   :  { %1207 = vmax.xlane.f32.xlu1 %v3626_v40  ;;  %1084 = vadd.xlane.f32.xlu0 %v1061_v53 }
 0x602   :  { %1211 = vmax.xlane.f32.xlu2 %v3631_v39 }
 0x609   :  { %1088 = vadd.xlane.f32.xlu1 %v1063_v15  ;;  %1086 = vadd.xlane.f32.xlu0 %v1062_v44  ;;  %v2771_v15 = vld [vmem:[#allocation5] sm:$0xff] }
 0x60a   :  { %1092 = vadd.xlane.f32.xlu2 %v1065_v50 }
 0x611   :  { %1090 = vadd.xlane.f32.xlu1 %v1064_v47  ;;  %1213 = vmax.xlane.f32.xlu0 %v3646_v23 }
 0x612   :  { %1094 = vadd.xlane.f32.xlu2 %v1066_v43 }
 0x619   :  { %1215 = vmax.xlane.f32.xlu0 %v3653_v58 }
 0x621   :  { %1096 = vadd.xlane.f32.xlu0 %v1067_v26 }
 0x66c   :  { %v1206_v7 = vpop.xlane.xlu1 %1205  ;;  %v1204_v24 = vpop.xlane.xlu0 %1203 }
 0x66d   :  { %v1236_v11 = vsub.f32 %v1188_v3, %v1206_v7  ;;  %v1235_v8 = vsub.f32 %v1187_v13, %v1204_v24  ;;  %v1210_v57 = vpop.xlane.xlu2 %1209  ;;  %v1069_v7 = vmul.f32 %v3536_v29, %v3581_v62  ;;  %v2773_v62 = vld [vmem:[#allocation5 + $0x20] sm:$0xff] }
 0x66e   :  { %v1238_v19 = vsub.f32 %v1190_v16, %v1210_v57 }
 0x66f   :  { %v1253_v9 = vmul.f32 1.442695, %v1236_v11  ;;  %v1251_v51 = vmul.f32 1.442695, %v1235_v8 }
 0x670   :  { %v1257_v25 = vmul.f32 1.442695, %v1238_v19  ;;  %v2774_v19 = vld [vmem:[#allocation5 + $0x10] sm:$0xff] }
 0x671   :  { %2642 = vpow2.f32 %v1253_v9 }
 0x672   :  { %2644 = vpow2.f32 %v1251_v51 }
 0x673   :  { %2646 = vpow2.f32 %v1257_v25 }
 0x674   :  { %v1208_v2 = vpop.xlane.xlu1 %1207  ;;  %v1085_v0 = vpop.xlane.xlu0 %1084 }
 0x675   :  { %v1130_v63 = vadd.f32 %v3609_v33, %v1085_v0  ;;  %v1212_v13 = vpop.xlane.xlu2 %1211  ;;  %v1237_v42 = vsub.f32 %v3626_v40, %v1208_v2 }
 0x676   :  { %v1239_v36 = vsub.f32 %v3631_v39, %v1212_v13 }
 0x677   :  { %v2643_v20 = vpop.eup %2642  ;;  %v1162_v4 = vmul.f32 0.2, %v1130_v63  ;;  %vm1146_vm14 = vcmp.gt.f32.partialorder %v1130_v63, 0.0  ;;  %v1255_v40 = vmul.f32 1.442695, %v1237_v42 }
 0x678   :  { %v3659_v10 = vmul.f32 %v2770_v38, %v2643_v20  ;;  %v2645_v37 = vpop.eup %2644  ;;  %v1259_v22 = vmul.f32 1.442695, %v1239_v36  ;;  %v2775_v36 = vld [vmem:[#allocation5 + $0x28] sm:$0xff] }
 0x679   :  { %v1178_v18 = vsel %vm1146_vm14, %v1130_v63, %v1162_v4  ;;  %v3673_v44 = vmul.f32 %v2771_v15, %v2645_v37  ;;  %v2647_v21 = vpop.eup %2646 }
 0x67a   :  { %1301 = vadd.xlane.f32.xlu2 %v3659_v10  ;;  %v3664_v3 = vsel %vm457_vm15, %v1178_v18, -1e+30  ;;  %2648 = vpow2.f32 %v1259_v22  ;;  %v3683_v26 = vmul.f32 %v2772_v52, %v2647_v21 }
 0x67b   :  { %1217 = vmax.xlane.f32.xlu1 %v3664_v3  ;;  %2650 = vpow2.f32 %v1255_v40 }
 0x67c   :  { %v1089_v31 = vpop.xlane.xlu1 %1088  ;;  %v1087_v16 = vpop.xlane.xlu0 %1086 }
 0x67d   :  { %v1131_v35 = vadd.f32 %v3609_v33, %v1087_v16  ;;  %v1132_v32 = vadd.f32 %v3609_v33, %v1089_v31  ;;  %v1093_v24 = vpop.xlane.xlu2 %1092 }
 0x67e   :  { %v1134_v2 = vadd.f32 %v3609_v33, %v1093_v24 }
 0x67f   :  { %v1163_v53 = vmul.f32 0.2, %v1131_v35  ;;  %vm1147_vm2 = vcmp.gt.f32.partialorder %v1131_v35, 0.0  ;;  %v1164_v39 = vmul.f32 0.2, %v1132_v32  ;;  %vm1148_vm4 = vcmp.gt.f32.partialorder %v1132_v32, 0.0 }
 0x680   :  { %v1166_v38 = vmul.f32 0.2, %v1134_v2  ;;  %vm1150_vm6 = vcmp.gt.f32.partialorder %v1134_v2, 0.0 }
 0x681   :  { %v1179_v50 = vsel %vm1147_vm2, %v1131_v35, %v1163_v53  ;;  %v1180_v43 = vsel %vm1148_vm4, %v1132_v32, %v1164_v39  ;;  %vm4276_vm2 = vcmp.gt.f32.partialorder %v3317_v60, 0.0  ;;  %v2776_v39 = vld [vmem:[#allocation5 + $0x30] sm:$0xff] }
 0x682   :  { %1098 = vadd.xlane.f32.xlu2 %v1068_v59  ;;  %v3677_v30 = vsel %vm4273_vm7, %v1179_v50, -1e+30  ;;  %v3690_v11 = vsel %vm4274_vm10, %v1180_v43, -1e+30  ;;  %v1182_v37 = vsel %vm1150_vm6, %v1134_v2, %v1166_v38  ;;  %vm4277_vm7 = vcmp.gt.f32.partialorder %v3319_v61, 0.0 }
 0x683   :  { %1299 = vadd.xlane.f32.xlu1 %v3673_v44  ;;  %1219 = vmax.xlane.f32.xlu0 %v3677_v30  ;;  %v3712_v42 = vsel %vm4276_vm2, %v1182_v37, -1e+30  ;;  %vm4278_vm10 = vcmp.gt.f32.partialorder %v3339_v17, 0.0 }
 0x684   :  { %v1091_v45 = vpop.xlane.xlu1 %1090  ;;  %v1214_v47 = vpop.xlane.xlu0 %1213 }
 0x685   :  { %v1133_v56 = vadd.f32 %v3609_v33, %v1091_v45  ;;  %v1240_v48 = vsub.f32 %v3646_v23, %v1214_v47  ;;  %v2649_v23 = vpop.eup %2648  ;;  %v1095_v18 = vpop.xlane.xlu2 %1094 }
 0x686   :  { %v2651_v51 = vpop.eup %2650  ;;  %v3695_v63 = vmul.f32 %v2773_v62, %v2649_v23  ;;  %v1135_v16 = vadd.f32 %v3609_v33, %v1095_v18 }
 0x687   :  { %v1165_v9 = vmul.f32 0.2, %v1133_v56  ;;  %v1261_v8 = vmul.f32 1.442695, %v1240_v48  ;;  %vm1149_vm3 = vcmp.gt.f32.partialorder %v1133_v56, 0.0  ;;  %v3697_v20 = vmul.f32 %v2774_v19, %v2651_v51 }
 0x688   :  { %v1167_v15 = vmul.f32 0.2, %v1135_v16  ;;  %vm1151_vm4 = vcmp.gt.f32.partialorder %v1135_v16, 0.0 }
 0x689   :  { %v1181_v0 = vsel %vm1149_vm3, %v1133_v56, %v1165_v9  ;;  %2652 = vpow2.f32 %v1261_v8 }
 0x68a   :  { %1305 = vadd.xlane.f32.xlu2 %v3683_v26  ;;  %v3702_v4 = vsel %vm4275_vm12, %v1181_v0, -1e+30  ;;  %v1183_v22 = vsel %vm1151_vm4, %v1135_v16, %v1167_v15  ;;  %vm4279_vm12 = vcmp.gt.f32.partialorder %v3359_v34, 0.0 }
 0x68b   :  { %1221 = vmax.xlane.f32.xlu1 %v3690_v11  ;;  %1100 = vadd.xlane.f32.xlu0 %v1069_v7  ;;  %v3725_v40 = vsel %vm4278_vm10, %v1183_v22, -1e+30 }
 0x68c   :  { %v1216_v57 = vpop.xlane.xlu0 %1215 }
 0x68d   :  { %v1241_v29 = vsub.f32 %v3653_v58, %v1216_v57 }
 0x68f   :  { %v1263_v25 = vmul.f32 1.442695, %v1241_v29  ;;  %v2653_v31 = vpop.eup %2652 }
 0x690   :  { %v3708_v32 = vmul.f32 %v2775_v36, %v2653_v31 }
 0x691   :  { %2654 = vpow2.f32 %v1263_v25 }
 0x692   :  { %1307 = vadd.xlane.f32.xlu2 %v3695_v63 }
 0x693   :  { %1303 = vadd.xlane.f32.xlu1 %v3697_v20  ;;  %1223 = vmax.xlane.f32.xlu0 %v3702_v4 }
 0x694   :  { %v1097_v58 = vpop.xlane.xlu0 %1096 }
 0x695   :  { %v1136_v13 = vadd.f32 %v3609_v33, %v1097_v58 }
 0x697   :  { %v1168_v35 = vmul.f32 0.2, %v1136_v13  ;;  %vm1152_vm14 = vcmp.gt.f32.partialorder %v1136_v13, 0.0  ;;  %v2655_v50 = vpop.eup %2654 }
 0x698   :  { %v3721_v21 = vmul.f32 %v2776_v39, %v2655_v50 }
 0x699   :  { %v1184_v53 = vsel %vm1152_vm14, %v1136_v13, %v1168_v35 }
 0x69a   :  { %v3716_v59 = vsel %vm4277_vm7, %v1184_v53, -1e+30 }
 0x69b   :  { %1225 = vmax.xlane.f32.xlu1 %v3712_v42  ;;  %1309 = vadd.xlane.f32.xlu0 %v3708_v32 }
 0x69c   :  { %1229 = vmax.xlane.f32.xlu2 %v3716_v59 }
 0x6a3   :  { %1227 = vmax.xlane.f32.xlu1 %v3725_v40  ;;  %1311 = vadd.xlane.f32.xlu0 %v3721_v21 }
 0x6ed   :  { %v1302_v45 = vpop.xlane.xlu2 %1301 }
 0x6ee   :  { %2656 = vrcp.f32 %v1302_v45  ;;  %v1218_v47 = vpop.xlane.xlu1 %1217  ;;  %v1355_v37 = vand.u32 2147483647, %v1302_v45  ;;  %v1357_v36 = vand.u32 2147483648, %v1302_v45  ;;  %vm1351_vm14 = vweird.f32 %v1302_v45 }
 0x6ef   :  { %v1242_v56 = vsub.f32 %v3664_v3, %v1218_v47  ;;  %v2777_v3 = vld [vmem:[#allocation5 + $0x38] sm:$0xff] }
 0x6f1   :  { %v1265_v43 = vmul.f32 1.442695, %v1242_v56 }
 0x6f3   :  { %2658 = vpow2.f32 %v1265_v43 }
 0x6f4   :  { %v3730_v48 = vpop.eup %2656 }
 0x6f5   :  { %v1347_v52 = vmul.f32 %v3730_v48, %v1302_v45  ;;  %v1099_v7 = vpop.xlane.xlu2 %1098  ;;  %vm1352_vm6 = vweird.f32 %v3730_v48 }
 0x6f6   :  { %v1137_v24 = vadd.f32 %v3609_v33, %v1099_v7  ;;  %v1300_v9 = vpop.xlane.xlu1 %1299  ;;  %v1220_v8 = vpop.xlane.xlu0 %1219  ;;  %vm3751_vm7 = vmor %vm1351_vm14, %vm1352_vm6 }
 0x6f7   :  { %v1348_v57 = vsub.f32 1.0, %v1347_v52  ;;  %2660 = vrcp.f32 %v1300_v9  ;;  %v1243_v51 = vsub.f32 %v3677_v30, %v1220_v8  ;;  %v1340_v56 = vand.u32 2147483647, %v1300_v9 }
 0x6f8   :  { %v1169_v23 = vmul.f32 0.2, %v1137_v24  ;;  %vm1153_vm3 = vcmp.gt.f32.partialorder %v1137_v24, 0.0  ;;  %v1342_v43 = vand.u32 2147483648, %v1300_v9  ;;  %vm1336_vm10 = vweird.f32 %v1300_v9 }
 0x6f9   :  { %v2659_v2 = vpop.eup %2658  ;;  %v1267_v0 = vmul.f32 1.442695, %v1243_v51  ;;  %v1349_v19 = vmul.f32 %v3730_v48, %v1348_v57  ;;  %vm1341_vm14 = vcmp.eq.f32.partialorder %v1340_v56, 8.507059e+37 }
 0x6fa   :  { %v3735_v29 = vmul.f32 %v2777_v3, %v2659_v2  ;;  %v1185_v62 = vsel %vm1153_vm3, %v1137_v24, %v1169_v23  ;;  %v1358_v24 = vor.u32 1.1754944e-38, %v1357_v36  ;;  %vm4282_vm3 = vcmp.gt.f32.partialorder %v3379_v55, 0.0 }
 0x6fb   :  { %v3740_v38 = vsel %vm4279_vm12, %v1185_v62, -1e+30  ;;  %2662 = vpow2.f32 %v1267_v0  ;;  %v1350_v31 = vadd.f32 %v3730_v48, %v1349_v19  ;;  %vm1356_vm12 = vcmp.eq.f32.partialorder %v1355_v37, 8.507059e+37 }
 0x6fc   :  { %1313 = vadd.xlane.f32.xlu1 %v3735_v29  ;;  %1231 = vmax.xlane.f32.xlu2 %v3740_v38 }
 0x6fd   :  { %v2661_v18 = vpop.eup %2660  ;;  %v3744_v30 = vpop.xlane.xlu2 %1305  ;;  %v1354_v45 = vsel %vm3751_vm7, %v3730_v48, %v1350_v31  ;;  %v1343_v48 = vor.u32 1.1754944e-38, %v1342_v43 }
 0x6fe   :  { %v1332_v25 = vmul.f32 %v2661_v18, %v1300_v9  ;;  %2664 = vrcp.f32 %v3744_v30  ;;  %v1222_v58 = vpop.xlane.xlu1 %1221  ;;  %v1101_v13 = vpop.xlane.xlu0 %1100  ;;  %vm1337_vm4 = vweird.f32 %v2661_v18  ;;  %v1359_v3 = vsel %vm1356_vm12, %v1358_v24, %v1354_v45 }
 0x6ff   :  { %v1244_v16 = vsub.f32 %v3690_v11, %v1222_v58  ;;  %v1138_v35 = vadd.f32 %v3609_v33, %v1101_v13  ;;  %v2778_v11 = vld [vmem:[#allocation5 + $0x40] sm:$0xff]  ;;  %vm1338_vm6 = vmor %vm1336_vm10, %vm1337_vm4  ;;  %v1360_v31 = vmul.f32 %v1359_v3, %v3659_v10  ;;  %vm1381_vm7 = vweird.f32 %v3744_v30 }
 0x700   :  { %v1333_v53 = vsub.f32 1.0, %v1332_v25 }
 0x701   :  { %v1269_v15 = vmul.f32 1.442695, %v1244_v16  ;;  %v1170_v50 = vmul.f32 0.2, %v1138_v35  ;;  %vm1154_vm2 = vcmp.gt.f32.partialorder %v1138_v35, 0.0  ;;  %v2663_v22 = vpop.eup %2662 }
 0x702   :  { %v1334_v47 = vmul.f32 %v2661_v18, %v1333_v53  ;;  %v3755_v52 = vmul.f32 %v2778_v11, %v2663_v22 }
 0x703   :  { %2666 = vpow2.f32 %v1269_v15  ;;  %v1186_v33 = vsel %vm1154_vm2, %v1138_v35, %v1170_v50  ;;  %v2779_v35 = vld [vmem:[#allocation5 + $0x48] sm:$0xff] }
 0x704   :  { %v3760_v7 = vpop.eup %2664  ;;  %v1335_v8 = vadd.f32 %v2661_v18, %v1334_v47  ;;  %v3764_v57 = vsel %vm4282_vm3, %v1186_v33, -1e+30  ;;  %1315 = vadd.xlane.f32.xlu1 %v3755_v52  ;;  %v1387_v47 = vand.u32 2147483648, %v3744_v30 }
 0x705   :  { %v1377_v23 = vmul.f32 %v3760_v7, %v3744_v30  ;;  %v3769_v51 = vpop.xlane.xlu2 %1307  ;;  %1233 = vmax.xlane.f32.xlu0 %v3764_v57  ;;  %vm1382_vm2 = vweird.f32 %v3760_v7 }
 0x706   :  { %v3772_v2 = vpop.xlane.xlu1 %1303  ;;  %v1224_v0 = vpop.xlane.xlu0 %1223  ;;  %v1339_v9 = vsel %vm1338_vm6, %v2661_v18, %v1335_v8  ;;  %vm3798_vm10 = vmor %vm1381_vm7, %vm1382_vm2 }
 0x707   :  { %v1378_v62 = vsub.f32 1.0, %v1377_v23  ;;  %2668 = vrcp.f32 %v3772_v2  ;;  %v1245_v19 = vsub.f32 %v3702_v4, %v1224_v0  ;;  %v1344_v25 = vsel %vm1341_vm14, %v1343_v48, %v1339_v9  ;;  %v2780_v0 = vld [vmem:[#allocation5 + $0x50] sm:$0xff]  ;;  %v2783_v48 = vld [vmem:[#allocation5 + $0x60] sm:$0xff] }
 0x708   :  { %v1345_v13 = vmul.f32 %v1344_v25, %v3673_v44  ;;  %2670 = vrcp.f32 %v3769_v51  ;;  %v1372_v11 = vand.u32 2147483648, %v3772_v2  ;;  %v1370_v23 = vand.u32 2147483647, %v3772_v2 }
 0x709   :  { %v2667_v58 = vpop.eup %2666  ;;  %v1271_v16 = vmul.f32 1.442695, %v1245_v19  ;;  %v1379_v18 = vmul.f32 %v3760_v7, %v1378_v62  ;;  %vm1366_vm3 = vweird.f32 %v3772_v2  ;;  %v1388_v62 = vor.u32 1.1754944e-38, %v1387_v47  ;;  %v2781_v47 = vld [vmem:[#allocation5 + $0x58] sm:$0xff] }
 0x70a   :  { %v3779_v37 = vmul.f32 %v2779_v35, %v2667_v58  ;;  %v1571_v36 = vpack.c.bf16 %v1360_v31, %v1345_v13  ;;  %v1373_v31 = vor.u32 1.1754944e-38, %v1372_v11  ;;  %vm1371_vm14 = vcmp.eq.f32.partialorder %v1370_v23, 8.507059e+37  ;;  %v2782_v11 = vld [vmem:[#allocation5 + $0x68] sm:$0xff] }
 0x70b   :  { %2672 = vpow2.f32 %v1271_v16  ;;  %v1380_v22 = vadd.f32 %v3760_v7, %v1379_v18 }
 0x70c   :  { %1317 = vadd.xlane.f32.xlu2 %v3779_v37  ;;  %1596 = vmatmul.bf16.vlgmr.msrb.gmra.mxu0 %v1571_v36 }
 0x70d   :  { %v2669_v53 = vpop.eup %2668 }
 0x70e   :  { %v1362_v4 = vmul.f32 %v2669_v53, %v3772_v2  ;;  %v1226_v15 = vpop.xlane.xlu1 %1225  ;;  %v3784_v44 = vpop.xlane.xlu0 %1309  ;;  %vm1367_vm4 = vweird.f32 %v2669_v53 }
 0x70f   :  { %v1246_v10 = vsub.f32 %v3712_v42, %v1226_v15  ;;  %v1230_v50 = vpop.xlane.xlu2 %1229  ;;  %2674 = vrcp.f32 %v3784_v44  ;;  %v3790_v39 = vpop.eup %2670  ;;  %v1385_v42 = vand.u32 2147483647, %v3744_v30  ;;  %v1384_v30 = vsel %vm3798_vm10, %v3760_v7, %v1380_v22  ;;  %vm1368_vm12 = vmor %vm1366_vm3, %vm1367_vm4 }
 0x710   :  { %v1363_v56 = vsub.f32 1.0, %v1362_v4  ;;  %v1248_v43 = vsub.f32 %v3716_v59, %v1230_v50  ;;  %v1392_v59 = vmul.f32 %v3790_v39, %v3769_v51  ;;  %vm1411_vm7 = vweird.f32 %v3784_v44 }
 0x711   :  { %v1273_v33 = vmul.f32 1.442695, %v1246_v10  ;;  %v2673_v45 = vpop.eup %2672  ;;  %vm1386_vm6 = vcmp.eq.f32.partialorder %v1385_v42, 8.507059e+37  ;;  %vm1397_vm4 = vweird.f32 %v3790_v39  ;;  %v1415_v42 = vand.u32 2147483647, %v3784_v44 }
 0x712   :  { %v1364_v24 = vmul.f32 %v2669_v53, %v1363_v56  ;;  %v1277_v8 = vmul.f32 1.442695, %v1248_v43  ;;  %v3804_v9 = vmul.f32 %v2780_v0, %v2673_v45  ;;  %v1389_v16 = vsel %vm1386_vm6, %v1388_v62, %v1384_v30 }
 0x713   :  { %2676 = vpow2.f32 %v1273_v33  ;;  %v1393_v35 = vsub.f32 1.0, %v1392_v59  ;;  %v1390_v10 = vmul.f32 %v1389_v16, %v3683_v26  ;;  %v1417_v26 = vand.u32 2147483648, %v3784_v44 }
 0x714   :  { %2678 = vpow2.f32 %v1277_v8  ;;  %v1365_v3 = vadd.f32 %v2669_v53, %v1364_v24  ;;  %1319 = vadd.xlane.f32.xlu0 %v3804_v9  ;;  %v1402_v45 = vand.u32 2147483648, %v3769_v51  ;;  %vm1396_vm3 = vweird.f32 %v3769_v51 }
 0x715   :  { %v2675_v19 = vpop.eup %2674  ;;  %v1400_v8 = vand.u32 2147483647, %v3769_v51  ;;  %v1418_v0 = vor.u32 1.1754944e-38, %v1417_v26  ;;  %vm1416_vm6 = vcmp.eq.f32.partialorder %v1415_v42, 8.507059e+37 }
 0x716   :  { %v1407_v25 = vmul.f32 %v2675_v19, %v3784_v44  ;;  %v1228_v58 = vpop.xlane.xlu1 %1227  ;;  %v1369_v13 = vsel %vm1368_vm12, %v2669_v53, %v1365_v3  ;;  %v1394_v53 = vmul.f32 %v3790_v39, %v1393_v35  ;;  %vm1412_vm2 = vweird.f32 %v2675_v19  ;;  %vm1398_vm12 = vmor %vm1396_vm3, %vm1397_vm4  ;;  %v2554_v35 = vld [vmem:[#allocation11 + $0x20] sm:$0xff] }
 0x717   :  { %v1247_v18 = vsub.f32 %v3725_v40, %v1228_v58  ;;  %v1374_v2 = vsel %vm1371_vm14, %v1373_v31, %v1369_v13  ;;  %vm1413_vm10 = vmor %vm1411_vm7, %vm1412_vm2  ;;  %v1403_v44 = vor.u32 1.1754944e-38, %v1402_v45  ;;  %vm1401_vm14 = vcmp.eq.f32.partialorder %v1400_v8, 8.507059e+37  ;;  %v1312_v13 = vpop.xlane.xlu0 %1311  ;;  %v2556_v31 = vld [vmem:[#allocation11 + $0x30] sm:$0xff] }
 0x718   :  { %v1408_v7 = vsub.f32 1.0, %v1407_v25  ;;  %v1375_v15 = vmul.f32 %v1374_v2, %v3697_v20  ;;  %v1395_v33 = vadd.f32 %v3790_v39, %v1394_v53  ;;  %vm1426_vm7 = vweird.f32 %v1312_v13 }
 0x719   :  { %v2677_v36 = vpop.eup %2676  ;;  %v1275_v4 = vmul.f32 1.442695, %v1247_v18  ;;  %v1430_v45 = vand.u32 2147483647, %v1312_v13 }
 0x71a   :  { %v2679_v50 = vpop.eup %2678  ;;  %v1409_v22 = vmul.f32 %v2675_v19, %v1408_v7  ;;  %v3815_v56 = vmul.f32 %v2781_v47, %v2677_v36  ;;  %v1572_v43 = vpack.c.bf16 %v1390_v10, %v1375_v15  ;;  %v1399_v30 = vsel %vm1398_vm12, %v3790_v39, %v1395_v33  ;;  %v2555_v39 = vld [vmem:[#allocation11 + $0x28] sm:$0xff]  ;;  %v2553_v7 = vld [vmem:[#allocation11 + $0x18] sm:$0xff]  ;;  %v2550_v33 = vld [vmem:[#allocation11] sm:$0xff] }
 0x71b   :  { %2680 = vpow2.f32 %v1275_v4  ;;  %v3818_v40 = vmul.f32 %v2782_v11, %v2679_v50  ;;  %v1404_v62 = vsel %vm1401_vm14, %v1403_v44, %v1399_v30  ;;  %v2552_v4 = vld [vmem:[#allocation11 + $0x10] sm:$0xff]  ;;  %v2551_v50 = vld [vmem:[#allocation11 + $0x8] sm:$0xff]  ;;  %vm1431_vm12 = vcmp.eq.f32.partialorder %v1430_v45, 8.507059e+37 }
 0x71c   :  { %1321 = vadd.xlane.f32.xlu1 %v3815_v56  ;;  %1601 = vmatmul.bf16.gmra.mxu0 %v1572_v43  ;;  %v1410_v20 = vadd.f32 %v2675_v19, %v1409_v22  ;;  %v1405_v58 = vmul.f32 %v1404_v62, %v3695_v63  ;;  %2682 = vrcp.f32 %v1312_v13 }
 0x71d   :  { %1325 = vadd.xlane.f32.xlu0 %v3818_v40 }
 0x71e   :  { %v1414_v23 = vsel %vm1413_vm10, %v2675_v19, %v1410_v20  ;;  %v2557_v19 = vld [vmem:[#allocation11 + $0x38] sm:$0xff]  ;;  %v1432_v20 = vand.u32 2147483648, %v1312_v13 }
 0x71f   :  { %v1419_v3 = vsel %vm1416_vm6, %v1418_v0, %v1414_v23  ;;  %1725 = vmatpush.bf16.msra.mxu1 %v2557_v19  ;;  %v2784_v23 = vld [vmem:[#allocation5 + $0x70] sm:$0xff] }
 0x720   :  { %v1420_v25 = vmul.f32 %v1419_v3, %v3708_v32 }
 0x721   :  { %v2681_v24 = vpop.eup %2680 }
 0x722   :  { %v3830_v59 = vmul.f32 %v2783_v48, %v2681_v24  ;;  %v1573_v51 = vpack.c.bf16 %v1420_v25, %v1405_v58  ;;  %v2683_v16 = vpop.eup %2682 }
 0x723   :  { %1726 = vmatpush.bf16.msra.mxu1 %v2556_v31  ;;  %v1422_v18 = vmul.f32 %v2683_v16, %v1312_v13  ;;  %vm1427_vm2 = vweird.f32 %v2683_v16 }
 0x724   :  { %1323 = vadd.xlane.f32.xlu2 %v3830_v59  ;;  %vm3843_vm4 = vmor %vm1426_vm7, %vm1427_vm2 }
 0x725   :  { %v1423_v32 = vsub.f32 1.0, %v1422_v18 }
 0x727   :  { %1727 = vmatpush.bf16.msra.mxu1 %v2555_v39  ;;  %v1424_v10 = vmul.f32 %v2683_v16, %v1423_v32  ;;  %v2785_v32 = vld [vmem:[#allocation5 + $0x78] sm:$0xff] }
 0x729   :  { %v1425_v11 = vadd.f32 %v2683_v16, %v1424_v10 }
 0x72b   :  { %1728 = vmatpush.bf16.msra.mxu1 %v2554_v35  ;;  %v1429_v44 = vsel %vm3843_vm4, %v2683_v16, %v1425_v11 }
 0x72c   :  { %1606 = vmatmul.bf16.gmra.mxu0 %v1573_v51 }
 0x72f   :  { %1729 = vmatpush.bf16.msra.mxu1 %v2553_v7 }
 0x733   :  { %1730 = vmatpush.bf16.msra.mxu1 %v2552_v4 }
 0x737   :  { %1731 = vmatpush.bf16.msra.mxu1 %v2551_v50 }
 0x73b   :  { %1732 = vmatpush.bf16.msra.mxu1 %v2550_v33 }
 0x76f   :  { %v1314_v2 = vpop.xlane.xlu1 %1313  ;;  %v1232_v36 = vpop.xlane.xlu2 %1231 }
 0x770   :  { %2684 = vrcp.f32 %v1314_v2  ;;  %v1249_v63 = vsub.f32 %v3740_v38, %v1232_v36  ;;  %v1447_v8 = vand.u32 2147483648, %v1314_v2  ;;  %v1445_v3 = vand.u32 2147483647, %v1314_v2 }
 0x771   :  { %vm1441_vm3 = vweird.f32 %v1314_v2 }
 0x772   :  { %v1279_v15 = vmul.f32 1.442695, %v1249_v63  ;;  %v1448_v13 = vor.u32 1.1754944e-38, %v1447_v8  ;;  %vm1446_vm14 = vcmp.eq.f32.partialorder %v1445_v3, 8.507059e+37 }
 0x774   :  { %2686 = vpow2.f32 %v1279_v15 }
 0x776   :  { %v2685_v22 = vpop.eup %2684 }
 0x777   :  { %v1437_v47 = vmul.f32 %v2685_v22, %v1314_v2  ;;  %v3837_v53 = vpop.xlane.xlu1 %1315  ;;  %vm1442_vm10 = vweird.f32 %v2685_v22 }
 0x778   :  { %v1234_v43 = vpop.xlane.xlu0 %1233  ;;  %2688 = vrcp.f32 %v3837_v53  ;;  %vm1443_vm6 = vmor %vm1441_vm3, %vm1442_vm10  ;;  %vm1456_vm7 = vweird.f32 %v3837_v53 }
 0x779   :  { %v1438_v26 = vsub.f32 1.0, %v1437_v47  ;;  %v1250_v42 = vsub.f32 %v3764_v57, %v1234_v43  ;;  %v1433_v57 = vor.u32 1.1754944e-38, %v1432_v20  ;;  %v1460_v47 = vand.u32 2147483647, %v3837_v53 }
 0x77a   :  { %v2687_v38 = vpop.eup %2686 }
 0x77b   :  { %v1439_v24 = vmul.f32 %v2685_v22, %v1438_v26  ;;  %v3841_v48 = vmul.f32 %v2784_v23, %v2687_v38  ;;  %v1281_v30 = vmul.f32 1.442695, %v1250_v42  ;;  %v1434_v51 = vsel %vm1431_vm12, %v1433_v57, %v1429_v44  ;;  %v3866_v38 = vld [vmem:[#allocation13 + $0x5] ss:$0 sm:$0xff] }
 0x77c   :  { %v1435_v35 = vmul.f32 %v1434_v51, %v3721_v21  ;;  %v1462_v21 = vand.u32 2147483648, %v3837_v53 }
 0x77d   :  { %1327 = vadd.xlane.f32.xlu1 %v3841_v48  ;;  %v1440_v62 = vadd.f32 %v2685_v22, %v1439_v24  ;;  %2690 = vpow2.f32 %v1281_v30 }
 0x77e   :  { %v2689_v25 = vpop.eup %2688  ;;  %v1463_v45 = vor.u32 1.1754944e-38, %v1462_v21 }
 0x77f   :  { %v1318_v58 = vpop.xlane.xlu2 %1317  ;;  %v1444_v19 = vsel %vm1443_vm6, %v2685_v22, %v1440_v62  ;;  %v1452_v31 = vmul.f32 %v2689_v25, %v3837_v53  ;;  %vm1457_vm2 = vweird.f32 %v2689_v25  ;;  %vm1461_vm6 = vcmp.eq.f32.partialorder %v1460_v47, 8.507059e+37 }
 0x780   :  { %2692 = vrcp.f32 %v1318_v58  ;;  %v1449_v39 = vsel %vm1446_vm14, %v1448_v13, %v1444_v19  ;;  %vm3862_vm10 = vmor %vm1456_vm7, %vm1457_vm2  ;;  %v1477_v20 = vand.u32 2147483648, %v1318_v58  ;;  %vm1471_vm3 = vweird.f32 %v1318_v58 }
 0x781   :  { %v1453_v16 = vsub.f32 1.0, %v1452_v31  ;;  %v1450_v18 = vmul.f32 %v1449_v39, %v3735_v29  ;;  %v1475_v33 = vand.u32 2147483647, %v1318_v58 }
 0x782   :  { %v1478_v23 = vor.u32 1.1754944e-38, %v1477_v20 }
 0x783   :  { %v2691_v7 = vpop.eup %2690  ;;  %v1574_v2 = vpack.c.bf16 %v1450_v18, %v1435_v35  ;;  %v1454_v36 = vmul.f32 %v2689_v25, %v1453_v16  ;;  %vm1476_vm14 = vcmp.eq.f32.partialorder %v1475_v33, 8.507059e+37 }
 0x784   :  { %v3853_v63 = vmul.f32 %v2785_v32, %v2691_v7 }
 0x785   :  { %1611 = vmatmul.bf16.gmra.mxu0 %v1574_v2  ;;  %v1455_v50 = vadd.f32 %v2689_v25, %v1454_v36 }
 0x786   :  { %v2693_v4 = vpop.eup %2692  ;;  %1329 = vadd.xlane.f32.xlu2 %v3853_v63 }
 0x787   :  { %v1467_v15 = vmul.f32 %v2693_v4, %v1318_v58  ;;  %v3856_v10 = vpop.xlane.xlu0 %1319  ;;  %vm1472_vm4 = vweird.f32 %v2693_v4  ;;  %v1459_v42 = vsel %vm3862_vm10, %v2689_v25, %v1455_v50 }
 0x788   :  { %2694 = vrcp.f32 %v3856_v10  ;;  %vm1473_vm12 = vmor %vm1471_vm3, %vm1472_vm4  ;;  %v1464_v44 = vsel %vm1461_vm6, %v1463_v45, %v1459_v42  ;;  %v1492_v32 = vand.u32 2147483648, %v3856_v10  ;;  %vm1486_vm7 = vweird.f32 %v3856_v10 }
 0x789   :  { %v1468_v22 = vsub.f32 1.0, %v1467_v15  ;;  %v1597_v29 = vpop.f32.mrf.mxu0  ;;  %v1465_v51 = vmul.f32 %v1464_v44, %v3755_v52  ;;  %v1490_v52 = vand.u32 2147483647, %v3856_v10 }
 0x78a   :  { %v1598_v3 = vadd.f32 %v3866_v38, %v1597_v29 }
 0x78b   :  { %v1469_v43 = vmul.f32 %v2693_v4, %v1468_v22  ;;  %vm1491_vm3 = vcmp.eq.f32.partialorder %v1490_v52, 8.507059e+37 }
 0x78c   :  { %v1637_v31 = vmax.f32 %v1598_v3, 0.0 }
 0x78d   :  { %v1470_v26 = vadd.f32 %v2693_v4, %v1469_v43  ;;  %v1493_v43 = vor.u32 1.1754944e-38, %v1492_v32 }
 0x78e   :  { %v2695_v24 = vpop.eup %2694 }
 0x78f   :  { %v1322_v53 = vpop.xlane.xlu1 %1321  ;;  %v1474_v8 = vsel %vm1473_vm12, %v2693_v4, %v1470_v26  ;;  %v1482_v0 = vmul.f32 %v2695_v24, %v3856_v10  ;;  %vm1487_vm2 = vweird.f32 %v2695_v24 }
 0x790   :  { %2696 = vrcp.f32 %v1322_v53  ;;  %v3871_v30 = vpop.xlane.xlu0 %1325  ;;  %v1479_v58 = vsel %vm1476_vm14, %v1478_v23, %v1474_v8  ;;  %vm3881_vm4 = vmor %vm1486_vm7, %vm1487_vm2  ;;  %v1507_v50 = vand.u32 2147483648, %v1322_v53  ;;  %v1505_v29 = vand.u32 2147483647, %v1322_v53 }
 0x791   :  { %v1483_v57 = vsub.f32 1.0, %v1482_v0  ;;  %v1599_v62 = vpop.f32.mrf.mxu0  ;;  %2698 = vrcp.f32 %v3871_v30  ;;  %v1480_v19 = vmul.f32 %v1479_v58, %v3779_v37  ;;  %vm1501_vm12 = vweird.f32 %v1322_v53 }
 0x792   :  { %v1600_v25 = vadd.f32 %v3866_v38, %v1599_v62  ;;  %v1508_v26 = vor.u32 1.1754944e-38, %v1507_v50  ;;  %vm1506_vm14 = vcmp.eq.f32.partialorder %v1505_v29, 8.507059e+37 }
 0x793   :  { %v1484_v13 = vmul.f32 %v2695_v24, %v1483_v57  ;;  %v1575_v16 = vpack.c.bf16 %v1480_v19, %v1465_v51 }
 0x794   :  { %v1638_v39 = vmax.f32 %v1600_v25, 0.0 }
 0x795   :  { %v1485_v18 = vadd.f32 %v2695_v24, %v1484_v13  ;;  %1616 = vmatmul.bf16.gmra.mxu0 %v1575_v16 }
 0x796   :  { %v2697_v35 = vpop.eup %2696  ;;  %v1653_v2 = vpack.c.bf16 %v1638_v39, %v1637_v31 }
 0x797   :  { %v1497_v7 = vmul.f32 %v2697_v35, %v1322_v53  ;;  %v1324_v36 = vpop.xlane.xlu2 %1323  ;;  %v2699_v4 = vpop.eup %2698  ;;  %vm1502_vm10 = vweird.f32 %v2697_v35  ;;  %v1489_v47 = vsel %vm3881_vm4, %v2695_v24, %v1485_v18  ;;  %v1535_v18 = vand.u32 2147483647, %v3871_v30 }
 0x798   :  { %2700 = vrcp.f32 %v1324_v36  ;;  %1733 = vmatmul.bf16.vlgmr.msra.gmra.mxu1 %v1653_v2  ;;  %v1527_v11 = vmul.f32 %v2699_v4, %v3871_v30  ;;  %vm1503_vm6 = vmor %vm1501_vm12, %vm1502_vm10  ;;  %v1494_v33 = vsel %vm1491_vm3, %v1493_v43, %v1489_v47  ;;  %v1522_v39 = vand.u32 2147483648, %v1324_v36 }
 0x799   :  { %v1498_v37 = vsub.f32 1.0, %v1497_v7  ;;  %v1602_v22 = vpop.f32.mrf.mxu0  ;;  %v1495_v24 = vmul.f32 %v1494_v33, %v3804_v9  ;;  %vm1532_vm7 = vweird.f32 %v2699_v4  ;;  %vm1516_vm4 = vweird.f32 %v1324_v36 }
 0x79a   :  { %v1528_v8 = vsub.f32 1.0, %v1527_v11  ;;  %v1603_v44 = vadd.f32 %v3866_v38, %v1602_v22  ;;  %v1537_v9 = vand.u32 2147483648, %v3871_v30  ;;  %vm1531_vm3 = vweird.f32 %v3871_v30 }
 0x79b   :  { %v1499_v21 = vmul.f32 %v2697_v35, %v1498_v37  ;;  %vm1533_vm12 = vmor %vm1531_vm3, %vm1532_vm7  ;;  %v1523_v2 = vor.u32 1.1754944e-38, %v1522_v39 }
 0x79c   :  { %v1529_v25 = vmul.f32 %v2699_v4, %v1528_v8  ;;  %v1639_v51 = vmax.f32 %v1603_v44, 0.0  ;;  %v1538_v52 = vor.u32 1.1754944e-38, %v1537_v9 }
 0x79d   :  { %v1500_v20 = vadd.f32 %v2697_v35, %v1499_v21 }
 0x79e   :  { %v2701_v10 = vpop.eup %2700  ;;  %v1530_v16 = vadd.f32 %v2699_v4, %v1529_v25 }
 0x79f   :  { %v1512_v42 = vmul.f32 %v2701_v10, %v1324_v36  ;;  %v1504_v45 = vsel %vm1503_vm6, %v2697_v35, %v1500_v20  ;;  %vm1517_vm2 = vweird.f32 %v2701_v10  ;;  %v1520_v35 = vand.u32 2147483647, %v1324_v36 }
 0x7a0   :  { %v1509_v23 = vsel %vm1506_vm14, %v1508_v26, %v1504_v45  ;;  %vm1518_vm10 = vmor %vm1516_vm4, %vm1517_vm2  ;;  %v1534_v32 = vsel %vm1533_vm12, %v2699_v4, %v1530_v16  ;;  %vm1536_vm14 = vcmp.eq.f32.partialorder %v1535_v18, 8.507059e+37 }
 0x7a1   :  { %v1513_v0 = vsub.f32 1.0, %v1512_v42  ;;  %v1510_v3 = vmul.f32 %v1509_v23, %v3815_v56  ;;  %v1604_v57 = vpop.f32.mrf.mxu0  ;;  %vm1521_vm6 = vcmp.eq.f32.partialorder %v1520_v35, 8.507059e+37  ;;  %v1539_v15 = vsel %vm1536_vm14, %v1538_v52, %v1534_v32  ;;  %v3903_v32 = vld [vmem:[#allocation13 + $0x7] ss:$0 sm:$0xff] }
 0x7a2   :  { %v1605_v53 = vadd.f32 %v3866_v38, %v1604_v57  ;;  %v1540_v29 = vmul.f32 %v1539_v15, %v3818_v40 }
 0x7a3   :  { %v1514_v62 = vmul.f32 %v2701_v10, %v1513_v0  ;;  %v1576_v58 = vpack.c.bf16 %v1510_v3, %v1495_v24 }
 0x7a4   :  { %v1640_v19 = vmax.f32 %v1605_v53, 0.0 }
 0x7a5   :  { %v1515_v13 = vadd.f32 %v2701_v10, %v1514_v62  ;;  %1621 = vmatmul.bf16.gmra.mxu0 %v1576_v58 }
 0x7a6   :  { %v1654_v31 = vpack.c.bf16 %v1640_v19, %v1639_v51 }
 0x7a7   :  { %v1519_v7 = vsel %vm1518_vm10, %v2701_v10, %v1515_v13 }
 0x7a8   :  { %1738 = vmatmul.bf16.gmra.mxu1 %v1654_v31  ;;  %v1524_v37 = vsel %vm1521_vm6, %v1523_v2, %v1519_v7 }
 0x7a9   :  { %v1607_v56 = vpop.f32.mrf.mxu0  ;;  %v1525_v50 = vmul.f32 %v1524_v37, %v3830_v59 }
 0x7aa   :  { %v1608_v36 = vadd.f32 %v3866_v38, %v1607_v56 }
 0x7ab   :  { %v1577_v43 = vpack.c.bf16 %v1540_v29, %v1525_v50 }
 0x7ac   :  { %v1641_v47 = vmax.f32 %v1608_v36, 0.0 }
 0x7b1   :  { %v1609_v22 = vpop.f32.mrf.mxu0 }
 0x7b2   :  { %v1610_v21 = vadd.f32 %v3866_v38, %v1609_v22 }
 0x7b4   :  { %v1642_v30 = vmax.f32 %v1610_v21, 0.0 }
 0x7b5   :  { %1626 = vmatmul.bf16.gmra.mxu0 %v1577_v43 }
 0x7b6   :  { %v1655_v11 = vpack.c.bf16 %v1642_v30, %v1641_v47 }
 0x7b8   :  { %1743 = vmatmul.bf16.gmra.mxu1 %v1655_v11 }
 0x7f0   :  { %v1328_v4 = vpop.xlane.xlu1 %1327 }
 0x7f1   :  { %2702 = vrcp.f32 %v1328_v4  ;;  %v1552_v23 = vand.u32 2147483648, %v1328_v4  ;;  %vm1546_vm7 = vweird.f32 %v1328_v4  ;;  %v1550_v0 = vand.u32 2147483647, %v1328_v4 }
 0x7f3   :  { %v1553_v53 = vor.u32 1.1754944e-38, %v1552_v23  ;;  %vm1551_vm3 = vcmp.eq.f32.partialorder %v1550_v0, 8.507059e+37 }
 0x7f7   :  { %v2703_v20 = vpop.eup %2702 }
 0x7f8   :  { %v1542_v10 = vmul.f32 %v2703_v20, %v1328_v4  ;;  %vm1547_vm2 = vweird.f32 %v2703_v20 }
 0x7f9   :  { %v1330_v33 = vpop.xlane.xlu2 %1329  ;;  %vm1548_vm4 = vmor %vm1546_vm7, %vm1547_vm2 }
 0x7fa   :  { %v1543_v26 = vsub.f32 1.0, %v1542_v10  ;;  %2704 = vrcp.f32 %v1330_v33  ;;  %v1567_v24 = vand.u32 2147483648, %v1330_v33  ;;  %v1565_v57 = vand.u32 2147483647, %v1330_v33 }
 0x7fb   :  { %vm1561_vm12 = vweird.f32 %v1330_v33 }
 0x7fc   :  { %v1544_v42 = vmul.f32 %v2703_v20, %v1543_v26  ;;  %v1568_v25 = vor.u32 1.1754944e-38, %v1567_v24  ;;  %vm1566_vm14 = vcmp.eq.f32.partialorder %v1565_v57, 8.507059e+37 }
 0x7fe   :  { %v1545_v45 = vadd.f32 %v2703_v20, %v1544_v42 }
 0x800   :  { %v2705_v59 = vpop.eup %2704  ;;  %v1549_v62 = vsel %vm1548_vm4, %v2703_v20, %v1545_v45 }
 0x801   :  { %v1557_v8 = vmul.f32 %v2705_v59, %v1330_v33  ;;  %vm1562_vm10 = vweird.f32 %v2705_v59  ;;  %v1554_v51 = vsel %vm1551_vm3, %v1553_v53, %v1549_v62 }
 0x802   :  { %v1612_v40 = vpop.f32.mrf.mxu0  ;;  %vm1563_vm6 = vmor %vm1561_vm12, %vm1562_vm10  ;;  %v1555_v35 = vmul.f32 %v1554_v51, %v3841_v48  ;;  %vm4293_vm12 = vcmp.gt.f32.partialorder %v3299_v46, 0.0  ;;  %v2791_v46 = vld [vmem:[#allocation5 + $0x28] sm:$0xff] }
 0x803   :  { %v1558_v44 = vsub.f32 1.0, %v1557_v8  ;;  %v1613_v19 = vadd.f32 %v3866_v38, %v1612_v40 }
 0x805   :  { %v1559_v3 = vmul.f32 %v2705_v59, %v1558_v44  ;;  %v1643_v56 = vmax.f32 %v1613_v19, 0.0 }
 0x807   :  { %v1560_v58 = vadd.f32 %v2705_v59, %v1559_v3 }
 0x809   :  { %v1564_v13 = vsel %vm1563_vm6, %v2705_v59, %v1560_v58 }
 0x80a   :  { %v1614_v31 = vpop.f32.mrf.mxu0  ;;  %v1569_v39 = vsel %vm1566_vm14, %v1568_v25, %v1564_v13 }
 0x80b   :  { %v1615_v16 = vadd.f32 %v3866_v38, %v1614_v31  ;;  %v1570_v9 = vmul.f32 %v1569_v39, %v3853_v63 }
 0x80d   :  { %v1644_v18 = vmax.f32 %v1615_v16, 0.0  ;;  %v1578_v7 = vpack.c.bf16 %v1570_v9, %v1555_v35 }
 0x80f   :  { %1631 = vmatmul.bf16.gmra.mxu0 %v1578_v7  ;;  %v1656_v2 = vpack.c.bf16 %v1644_v18, %v1643_v56 }
 0x811   :  { %1748 = vmatmul.bf16.gmra.mxu1 %v1656_v2 }
 0x812   :  { %v1617_v52 = vpop.f32.mrf.mxu0 }
 0x813   :  { %v1618_v36 = vadd.f32 %v3866_v38, %v1617_v52 }
 0x815   :  { %v3905_v37 = vpop.f32.mrf.mxu1  ;;  %v1645_v22 = vmax.f32 %v1618_v36, 0.0 }
 0x816   :  { %v1775_v15 = vmul.f32 %v3903_v32, %v3905_v37 }
 0x818   :  { %1791 = vadd.xlane.f32.xlu0 %v1775_v15 }
 0x81a   :  { %v1619_v48 = vpop.f32.mrf.mxu0 }
 0x81b   :  { %v1620_v63 = vadd.f32 %v3866_v38, %v1619_v48 }
 0x81d   :  { %v3911_v50 = vpop.f32.mrf.mxu1  ;;  %v1646_v21 = vmax.f32 %v1620_v63, 0.0 }
 0x81e   :  { %v1776_v29 = vmul.f32 %v3903_v32, %v3911_v50 }
 0x81f   :  { %v1657_v47 = vpack.c.bf16 %v1646_v21, %v1645_v22 }
 0x820   :  { %1793 = vadd.xlane.f32.xlu1 %v1776_v29 }
 0x821   :  { %1753 = vmatmul.bf16.gmra.mxu1 %v1657_v47 }
 0x822   :  { %v1622_v30 = vpop.f32.mrf.mxu0 }
 0x823   :  { %v1623_v4 = vadd.f32 %v3866_v38, %v1622_v30 }
 0x825   :  { %v3915_v43 = vpop.f32.mrf.mxu1  ;;  %v1647_v33 = vmax.f32 %v1623_v4, 0.0  ;;  %v2300_v4 = vpack.c.bf16 %v3911_v50, %v3905_v37 }
 0x826   :  { %v1777_v11 = vmul.f32 %v3903_v32, %v3915_v43 }
 0x828   :  { %1795 = vadd.xlane.f32.xlu2 %v1777_v11 }
 0x82a   :  { %v1624_v20 = vpop.f32.mrf.mxu0 }
 0x82b   :  { %v1625_v10 = vadd.f32 %v3866_v38, %v1624_v20  ;;  %v191_v20 = vld [vmem:[#allocation13 + $0x6] sm:$0x1] }
 0x82d   :  { %v3921_v26 = vpop.f32.mrf.mxu1  ;;  %v1648_v42 = vmax.f32 %v1625_v10, 0.0 }
 0x82e   :  { %v1778_v59 = vmul.f32 %v3903_v32, %v3921_v26  ;;  %v2301_v11 = vpack.c.bf16 %v3921_v26, %v3915_v43 }
 0x82f   :  { %v1658_v45 = vpack.c.bf16 %v1648_v42, %v1647_v33 }
 0x830   :  { %1797 = vadd.xlane.f32.xlu0 %v1778_v59 }
 0x831   :  { %1758 = vmatmul.bf16.gmra.mxu1 %v1658_v45 }
 0x832   :  { %v1627_v8 = vpop.f32.mrf.mxu0 }
 0x833   :  { %v1628_v0 = vadd.f32 %v3866_v38, %v1627_v8 }
 0x835   :  { %v1744_v23 = vpop.f32.mrf.mxu1  ;;  %v1649_v57 = vmax.f32 %v1628_v0, 0.0 }
 0x836   :  { %v1779_v40 = vmul.f32 %v3903_v32, %v1744_v23 }
 0x838   :  { %1799 = vadd.xlane.f32.xlu1 %v1779_v40 }
 0x83a   :  { %v1629_v44 = vpop.f32.mrf.mxu0 }
 0x83b   :  { %v1630_v24 = vadd.f32 %v3866_v38, %v1629_v44 }
 0x83d   :  { %v1746_v3 = vpop.f32.mrf.mxu1  ;;  %v1650_v62 = vmax.f32 %v1630_v24, 0.0 }
 0x83e   :  { %v1780_v53 = vmul.f32 %v3903_v32, %v1746_v3  ;;  %v2302_v30 = vpack.c.bf16 %v1746_v3, %v1744_v23 }
 0x83f   :  { %v1659_v58 = vpack.c.bf16 %v1650_v62, %v1649_v57 }
 0x840   :  { %1801 = vadd.xlane.f32.xlu2 %v1780_v53 }
 0x841   :  { %1763 = vmatmul.bf16.gmra.mxu1 %v1659_v58 }
 0x88b   :  { %v1792_v10 = vpop.xlane.xlu0 %1791 }
 0x88c   :  { %v1632_v25 = vpop.f32.mrf.mxu0 }
 0x88d   :  { %v1633_v13 = vadd.f32 %v3866_v38, %v1632_v25 }
 0x88e   :  { %v1749_v51 = vpop.f32.mrf.mxu1 }
 0x88f   :  { %v1781_v19 = vmul.f32 %v3903_v32, %v1749_v51  ;;  %v1651_v16 = vmax.f32 %v1633_v13, 0.0 }
 0x891   :  { %1803 = vadd.xlane.f32.xlu2 %v1781_v19 }
 0x893   :  { %v1794_v33 = vpop.xlane.xlu1 %1793 }
 0x894   :  { %v1634_v31 = vpop.f32.mrf.mxu0 }
 0x895   :  { %v1635_v39 = vadd.f32 %v3866_v38, %v1634_v31 }
 0x896   :  { %v3932_v56 = vpop.f32.mrf.mxu1 }
 0x897   :  { %v1652_v35 = vmax.f32 %v1635_v39, 0.0  ;;  %v2303_v47 = vpack.c.bf16 %v3932_v56, %v1749_v51  ;;  %v1782_v6 = vmul.f32 %v3903_v32, %v3932_v56 }
 0x899   :  { %v1660_v9 = vpack.c.bf16 %v1652_v35, %v1651_v16 }
 0x89b   :  { %1768 = vmatmul.bf16.gmra.mxu1 %v1660_v9  ;;  %v1796_v8 = vpop.xlane.xlu2 %1795 }
 0x89e   :  { %v3934_v18 = vpop.f32.mrf.mxu1 }
 0x89f   :  { %v1783_v28 = vmul.f32 %v3903_v32, %v3934_v18 }
 0x8a3   :  { %v1798_v45 = vpop.xlane.xlu0 %1797 }
 0x8a6   :  { %v3936_v7 = vpop.f32.mrf.mxu1 }
 0x8a7   :  { %v2304_v29 = vpack.c.bf16 %v3936_v7, %v3934_v18  ;;  %v1784_v35 = vmul.f32 %v3903_v32, %v3936_v7 }
 0x8ae   :  { %v3938_v2 = vpop.f32.mrf.mxu1 }
 0x8b3   :  { %v1802_v39 = vpop.xlane.xlu2 %1801 }
 0x8b6   :  { %v3940_v52 = vpop.f32.mrf.mxu1 }
 0x8b7   :  { %v2305_v21 = vpack.c.bf16 %v3940_v52, %v3938_v2  ;;  %v1786_v9 = vmul.f32 %v3903_v32, %v3940_v52 }
 0x8be   :  { %v3942_v15 = vpop.f32.mrf.mxu1 }
 0x8c6   :  { %v3944_v36 = vpop.f32.mrf.mxu1 }
 0x8c7   :  { %v2306_v22 = vpack.c.bf16 %v3944_v36, %v3942_v15  ;;  %v1788_v41 = vmul.f32 %v3903_v32, %v3944_v36 }
 0x904   :  { %v1804_v27 = vpop.xlane.xlu2 %1803 }
 0x918   :  { %v3946_v48 = vpop.f32.mrf.mxu1 }
 0x919   :  { %v1789_v1 = vmul.f32 %v3903_v32, %v3946_v48 }
 0x920   :  { %v3948_v38 = vpop.f32.mrf.mxu1 }
 0x921   :  { %1823 = vmatpush.xpose.msrb.mxu2 %v3948_v38  ;;  %v2307_v63 = vpack.c.bf16 %v3948_v38, %v3946_v48 }
 0x923   :  { %2309 = vmatpush.bf16.msrb.mxu3 %v2307_v63 }
 0x925   :  { %1824 = vmatpush.xpose.msrb.mxu2 %v3946_v48 }
 0x927   :  { %2310 = vmatpush.bf16.msrb.mxu3 %v2306_v22 }
 0x929   :  { %1825 = vmatpush.xpose.msrb.mxu2 %v3944_v36 }
 0x92b   :  { %2311 = vmatpush.bf16.msrb.mxu3 %v2305_v21  ;;  %v1785_v21 = vmul.f32 %v3903_v32, %v3938_v2 }
 0x92d   :  { %1826 = vmatpush.xpose.msrb.mxu2 %v3942_v15 }
 0x92f   :  { %2312 = vmatpush.bf16.msrb.mxu3 %v2304_v29 }
 0x931   :  { %1827 = vmatpush.xpose.msrb.mxu2 %v3940_v52 }
 0x933   :  { %2313 = vmatpush.bf16.msrb.mxu3 %v2303_v47 }
 0x935   :  { %1828 = vmatpush.xpose.msrb.mxu2 %v3938_v2 }
 0x937   :  { %2314 = vmatpush.bf16.msrb.mxu3 %v2302_v30 }
 0x939   :  { %1829 = vmatpush.xpose.msrb.mxu2 %v3936_v7 }
 0x93b   :  { %2315 = vmatpush.bf16.msrb.mxu3 %v2301_v11 }
 0x93d   :  { %1830 = vmatpush.xpose.msrb.mxu2 %v3934_v18  ;;  %v1787_v18 = vmul.f32 %v3903_v32, %v3942_v15 }
 0x93f   :  { %2316 = vmatpush.bf16.msrb.mxu3 %v2300_v4 }
 0x941   :  { %1831 = vmatpush.xpose.msrb.mxu2 %v3932_v56 }
 0x945   :  { %1832 = vmatpush.xpose.msrb.mxu2 %v1749_v51 }
 0x949   :  { %1833 = vmatpush.xpose.msrb.mxu2 %v1746_v3 }
 0x94d   :  { %1834 = vmatpush.xpose.msrb.mxu2 %v1744_v23 }
 0x951   :  { %1835 = vmatpush.xpose.msrb.mxu2 %v3921_v26 }
 0x955   :  { %1836 = vmatpush.xpose.msrb.mxu2 %v3915_v43 }
 0x959   :  { %1837 = vmatpush.xpose.msrb.mxu2 %v3911_v50  ;;  %v1800_v50 = vpop.xlane.xlu1 %1799 }
 0x95d   :  { %1838 = vmatpush.xpose.msrb.mxu2 %v3905_v37 }
 0x960   :  { %1839 = vmatmul.f32.vlgmr.msrb.gmra.mxu2 %v191_v20 }
 0x9e3   :  { %v1840_v42 = vpop.f32.mrf.mxu2 }
 0x9e4   :  { %v3976_v59 = vperm.slane %v1840_v42, 0 }
 0x9e6   :  { %v1845_v40 = vadd.f32 %v3976_v59, %v1794_v33  ;;  %v1844_v23 = vadd.f32 %v3976_v59, %v1792_v10  ;;  %v1847_v26 = vadd.f32 %v3976_v59, %v1798_v45  ;;  %v1846_v43 = vadd.f32 %v3976_v59, %v1796_v8 }
 0x9e7   :  { %v1848_v24 = vadd.f32 %v3976_v59, %v1800_v50  ;;  %v1849_v16 = vadd.f32 %v3976_v59, %v1802_v39  ;;  %v1850_v22 = vadd.f32 %v3976_v59, %v1804_v27 }
 0x9e8   :  { %vm1861_vm2 = vcmp.gt.f32.partialorder %v1845_v40, 0.0  ;;  %v1877_v37 = vmul.f32 0.2, %v1845_v40  ;;  %vm1860_vm7 = vcmp.gt.f32.partialorder %v1844_v23, 0.0  ;;  %v1876_v0 = vmul.f32 0.2, %v1844_v23 }
 0x9e9   :  { %vm1863_vm4 = vcmp.gt.f32.partialorder %v1847_v26, 0.0  ;;  %v1879_v44 = vmul.f32 0.2, %v1847_v26  ;;  %v1878_v51 = vmul.f32 0.2, %v1846_v43  ;;  %vm1862_vm10 = vcmp.gt.f32.partialorder %v1846_v43, 0.0 }
 0x9ea   :  { %v1893_v3 = vsel %vm1861_vm2, %v1845_v40, %v1877_v37  ;;  %v1892_v57 = vsel %vm1860_vm7, %v1844_v23, %v1876_v0  ;;  %v1880_v19 = vmul.f32 0.2, %v1848_v24  ;;  %vm1864_vm3 = vcmp.gt.f32.partialorder %v1848_v24, 0.0  ;;  %v2786_v23 = vld [vmem:[#allocation5 + $0x8] sm:$0xff] }
 0x9eb   :  { %v1909_v62 = vsel %vm451_vm1, %v1893_v3, -1e+30  ;;  %v1908_v53 = vsel %vm450_vm5, %v1892_v57, -1e+30  ;;  %v1895_v58 = vsel %vm1863_vm4, %v1847_v26, %v1879_v44  ;;  %v1894_v13 = vsel %vm1862_vm10, %v1846_v43, %v1878_v51 }
 0x9ec   :  { %1926 = vmax.xlane.f32.xlu1 %v1909_v62  ;;  %1924 = vmax.xlane.f32.xlu0 %v1908_v53  ;;  %v1911_v25 = vsel %vm453_vm0, %v1895_v58, -1e+30  ;;  %v1896_v31 = vsel %vm1864_vm3, %v1848_v24, %v1880_v19  ;;  %v3993_v12 = vsel %vm452_vm9, %v1894_v13, -1e+30  ;;  %v1881_v56 = vmul.f32 0.2, %v1849_v16 }
 0x9ed   :  { %1930 = vmax.xlane.f32.xlu2 %v1911_v25  ;;  %v3998_v5 = vsel %vm454_vm8, %v1896_v31, -1e+30  ;;  %vm1865_vm0 = vcmp.gt.f32.partialorder %v1849_v16, 0.0  ;;  %v1882_v52 = vmul.f32 0.2, %v1850_v22  ;;  %vm1866_vm1 = vcmp.gt.f32.partialorder %v1850_v22, 0.0 }
 0x9ee   :  { %v1897_v63 = vsel %vm1865_vm0, %v1849_v16, %v1881_v56  ;;  %vm4291_vm9 = vcmp.gt.f32.partialorder %v3265_v14, 0.0  ;;  %v1790_v56 = vmul.f32 %v3903_v32, %v3948_v38  ;;  %v2789_v38 = vld [vmem:[#allocation5 + $0x20] sm:$0xff]  ;;  %vm4294_vm2 = vcmp.gt.f32.partialorder %v3317_v60, 0.0 }
 0x9ef   :  { %v4013_v7 = vsel %vm455_vm11, %v1897_v63, -1e+30  ;;  %v1898_v29 = vsel %vm1866_vm1, %v1850_v22, %v1882_v52  ;;  %vm4295_vm7 = vcmp.gt.f32.partialorder %v3319_v61, 0.0  ;;  %vm4296_vm10 = vcmp.gt.f32.partialorder %v3339_v17, 0.0 }
 0x9f0   :  { %v4020_v47 = vsel %vm456_vm13, %v1898_v29, -1e+30  ;;  %vm4292_vm13 = vcmp.gt.f32.partialorder %v3283_v54, 0.0  ;;  %v2790_v54 = vld [vmem:[#allocation5 + $0x10] sm:$0xff]  ;;  %vm4297_vm0 = vcmp.gt.f32.partialorder %v3359_v34, 0.0 }
 0x9f4   :  { %1928 = vmax.xlane.f32.xlu1 %v3993_v12  ;;  %1805 = vadd.xlane.f32.xlu0 %v1782_v6 }
 0x9f5   :  { %1932 = vmax.xlane.f32.xlu2 %v3998_v5 }
 0x9fc   :  { %1809 = vadd.xlane.f32.xlu1 %v1784_v35  ;;  %1807 = vadd.xlane.f32.xlu0 %v1783_v28  ;;  %v2788_v28 = vld [vmem:[#allocation5 + $0x18] sm:$0xff] }
 0x9fd   :  { %1813 = vadd.xlane.f32.xlu2 %v1786_v9 }
 0xa04   :  { %1811 = vadd.xlane.f32.xlu1 %v1785_v21  ;;  %1934 = vmax.xlane.f32.xlu0 %v4013_v7 }
 0xa05   :  { %1815 = vadd.xlane.f32.xlu2 %v1787_v18 }
 0xa0c   :  { %1936 = vmax.xlane.f32.xlu0 %v4020_v47 }
 0xa14   :  { %1817 = vadd.xlane.f32.xlu0 %v1788_v41 }
 0xa5f   :  { %v1927_v2 = vpop.xlane.xlu1 %1926  ;;  %v1925_v30 = vpop.xlane.xlu0 %1924 }
 0xa60   :  { %v1957_v15 = vsub.f32 %v1909_v62, %v1927_v2  ;;  %v1956_v4 = vsub.f32 %v1908_v53, %v1925_v30  ;;  %v1931_v20 = vpop.xlane.xlu2 %1930 }
 0xa61   :  { %v1959_v45 = vsub.f32 %v1911_v25, %v1931_v20  ;;  %v2787_v25 = vld [vmem:[#allocation5] sm:$0xff] }
 0xa62   :  { %v1974_v11 = vmul.f32 1.442695, %v1957_v15  ;;  %v1972_v10 = vmul.f32 1.442695, %v1956_v4 }
 0xa63   :  { %v1978_v43 = vmul.f32 1.442695, %v1959_v45 }
 0xa64   :  { %2706 = vpow2.f32 %v1974_v11 }
 0xa65   :  { %2708 = vpow2.f32 %v1972_v10 }
 0xa66   :  { %2710 = vpow2.f32 %v1978_v43 }
 0xa67   :  { %v1929_v33 = vpop.xlane.xlu1 %1928  ;;  %v1806_v42 = vpop.xlane.xlu0 %1805 }
 0xa68   :  { %v1851_v49 = vadd.f32 %v3976_v59, %v1806_v42  ;;  %v1933_v37 = vpop.xlane.xlu2 %1932  ;;  %v1958_v58 = vsub.f32 %v3993_v12, %v1929_v33 }
 0xa69   :  { %v1960_v57 = vsub.f32 %v3998_v5, %v1933_v37 }
 0xa6a   :  { %v2707_v8 = vpop.eup %2706  ;;  %v1883_v40 = vmul.f32 0.2, %v1851_v49  ;;  %vm1867_vm5 = vcmp.gt.f32.partialorder %v1851_v49, 0.0  ;;  %v1976_v12 = vmul.f32 1.442695, %v1958_v58 }
 0xa6b   :  { %v4026_v36 = vmul.f32 %v2786_v23, %v2707_v8  ;;  %v2709_v3 = vpop.eup %2708  ;;  %v1980_v31 = vmul.f32 1.442695, %v1960_v57 }
 0xa6c   :  { %v1899_v26 = vsel %vm1867_vm5, %v1851_v49, %v1883_v40  ;;  %v4040_v51 = vmul.f32 %v2787_v25, %v2709_v3  ;;  %v2711_v5 = vpop.eup %2710 }
 0xa6d   :  { %2022 = vadd.xlane.f32.xlu2 %v4026_v36  ;;  %v4031_v50 = vsel %vm457_vm15, %v1899_v26, -1e+30  ;;  %2712 = vpow2.f32 %v1980_v31  ;;  %v4050_v9 = vmul.f32 %v2788_v28, %v2711_v5 }
 0xa6e   :  { %1938 = vmax.xlane.f32.xlu1 %v4031_v50  ;;  %2714 = vpow2.f32 %v1976_v12 }
 0xa6f   :  { %v1810_v0 = vpop.xlane.xlu1 %1809  ;;  %v1808_v44 = vpop.xlane.xlu0 %1807 }
 0xa70   :  { %v1852_v24 = vadd.f32 %v3976_v59, %v1808_v44  ;;  %v1853_v62 = vadd.f32 %v3976_v59, %v1810_v0  ;;  %v1814_v27 = vpop.xlane.xlu2 %1813  ;;  %v2792_v44 = vld [vmem:[#allocation5 + $0x30] sm:$0xff] }
 0xa71   :  { %v1855_v29 = vadd.f32 %v3976_v59, %v1814_v27 }
 0xa72   :  { %v1884_v53 = vmul.f32 0.2, %v1852_v24  ;;  %vm1868_vm8 = vcmp.gt.f32.partialorder %v1852_v24, 0.0  ;;  %v1885_v6 = vmul.f32 0.2, %v1853_v62  ;;  %vm1869_vm11 = vcmp.gt.f32.partialorder %v1853_v62, 0.0 }
 0xa73   :  { %v1887_v11 = vmul.f32 0.2, %v1855_v29  ;;  %vm1871_vm6 = vcmp.gt.f32.partialorder %v1855_v29, 0.0 }
 0xa74   :  { %v1900_v19 = vsel %vm1868_vm8, %v1852_v24, %v1884_v53  ;;  %v1901_v35 = vsel %vm1869_vm11, %v1853_v62, %v1885_v6 }
 0xa75   :  { %1819 = vadd.xlane.f32.xlu2 %v1789_v1  ;;  %v4044_v13 = vsel %vm4291_vm9, %v1900_v19, -1e+30  ;;  %v4057_v63 = vsel %vm4292_vm13, %v1901_v35, -1e+30  ;;  %v1903_v45 = vsel %vm1871_vm6, %v1855_v29, %v1887_v11 }
 0xa76   :  { %2020 = vadd.xlane.f32.xlu1 %v4040_v51  ;;  %1940 = vmax.xlane.f32.xlu0 %v4044_v13  ;;  %v4079_v23 = vsel %vm4294_vm2, %v1903_v45, -1e+30 }
 0xa77   :  { %v1812_v39 = vpop.xlane.xlu1 %1811  ;;  %v1935_v16 = vpop.xlane.xlu0 %1934 }
 0xa78   :  { %v1854_v48 = vadd.f32 %v3976_v59, %v1812_v39  ;;  %v1961_v14 = vsub.f32 %v4013_v7, %v1935_v16  ;;  %v2713_v7 = vpop.eup %2712  ;;  %v1816_v4 = vpop.xlane.xlu2 %1815 }
 0xa79   :  { %v2715_v52 = vpop.eup %2714  ;;  %v4062_v2 = vmul.f32 %v2789_v38, %v2713_v7  ;;  %v1856_v42 = vadd.f32 %v3976_v59, %v1816_v4 }
 0xa7a   :  { %v1886_v22 = vmul.f32 0.2, %v1854_v48  ;;  %v1982_v21 = vmul.f32 1.442695, %v1961_v14  ;;  %vm1870_vm15 = vcmp.gt.f32.partialorder %v1854_v48, 0.0  ;;  %v4064_v30 = vmul.f32 %v2790_v54, %v2715_v52 }
 0xa7b   :  { %v1888_v43 = vmul.f32 0.2, %v1856_v42  ;;  %vm1872_vm4 = vcmp.gt.f32.partialorder %v1856_v42, 0.0 }
 0xa7c   :  { %v1902_v41 = vsel %vm1870_vm15, %v1854_v48, %v1886_v22  ;;  %2716 = vpow2.f32 %v1982_v21  ;;  %vm4300_vm15 = vcmp.gt.f32.partialorder %v3379_v55, 0.0 }
 0xa7d   :  { %2026 = vadd.xlane.f32.xlu2 %v4050_v9  ;;  %v4069_v15 = vsel %vm4293_vm12, %v1902_v41, -1e+30  ;;  %v1904_v0 = vsel %vm1872_vm4, %v1856_v42, %v1888_v43 }
 0xa7e   :  { %1942 = vmax.xlane.f32.xlu1 %v4057_v63  ;;  %1821 = vadd.xlane.f32.xlu0 %v1790_v56  ;;  %v4092_v60 = vsel %vm4296_vm10, %v1904_v0, -1e+30 }
 0xa7f   :  { %v1937_v18 = vpop.xlane.xlu0 %1936 }
 0xa80   :  { %v1962_v32 = vsub.f32 %v4020_v47, %v1937_v18 }
 0xa82   :  { %v1984_v20 = vmul.f32 1.442695, %v1962_v32  ;;  %v2717_v33 = vpop.eup %2716 }
 0xa83   :  { %v4075_v8 = vmul.f32 %v2791_v46, %v2717_v33 }
 0xa84   :  { %2718 = vpow2.f32 %v1984_v20 }
 0xa85   :  { %2028 = vadd.xlane.f32.xlu2 %v4062_v2 }
 0xa86   :  { %2024 = vadd.xlane.f32.xlu1 %v4064_v30  ;;  %1944 = vmax.xlane.f32.xlu0 %v4069_v15 }
 0xa87   :  { %v1818_v47 = vpop.xlane.xlu0 %1817 }
 0xa88   :  { %v1857_v10 = vadd.f32 %v3976_v59, %v1818_v47 }
 0xa8a   :  { %v1889_v49 = vmul.f32 0.2, %v1857_v10  ;;  %vm1873_vm14 = vcmp.gt.f32.partialorder %v1857_v10, 0.0  ;;  %v2719_v37 = vpop.eup %2718 }
 0xa8b   :  { %v4088_v24 = vmul.f32 %v2792_v44, %v2719_v37 }
 0xa8c   :  { %v1905_v40 = vsel %vm1873_vm14, %v1857_v10, %v1889_v49 }
 0xa8d   :  { %v4083_v26 = vsel %vm4295_vm7, %v1905_v40, -1e+30 }
 0xa8e   :  { %1946 = vmax.xlane.f32.xlu1 %v4079_v23  ;;  %2030 = vadd.xlane.f32.xlu0 %v4075_v8 }
 0xa8f   :  { %1950 = vmax.xlane.f32.xlu2 %v4083_v26 }
 0xa96   :  { %1948 = vmax.xlane.f32.xlu1 %v4092_v60  ;;  %2032 = vadd.xlane.f32.xlu0 %v4088_v24 }
 0xae0   :  { %v2023_v61 = vpop.xlane.xlu2 %2022 }
 0xae1   :  { %2720 = vrcp.f32 %v2023_v61  ;;  %v1939_v3 = vpop.xlane.xlu1 %1938  ;;  %v2076_v7 = vand.u32 2147483647, %v2023_v61  ;;  %v2078_v52 = vand.u32 2147483648, %v2023_v61  ;;  %vm2072_vm5 = vweird.f32 %v2023_v61 }
 0xae2   :  { %v1963_v57 = vsub.f32 %v4031_v50, %v1939_v3  ;;  %v2793_v50 = vld [vmem:[#allocation5 + $0x38] sm:$0xff] }
 0xae3   :  { %v2079_v42 = vor.u32 1.1754944e-38, %v2078_v52  ;;  %vm2077_vm12 = vcmp.eq.f32.partialorder %v2076_v7, 8.507059e+37  ;;  %v2796_v52 = vld [vmem:[#allocation5 + $0x50] sm:$0xff] }
 0xae4   :  { %v1986_v62 = vmul.f32 1.442695, %v1963_v57 }
 0xae6   :  { %2722 = vpow2.f32 %v1986_v62 }
 0xae7   :  { %v4097_v53 = vpop.eup %2720 }
 0xae8   :  { %v2068_v58 = vmul.f32 %v4097_v53, %v2023_v61  ;;  %v1820_v1 = vpop.xlane.xlu2 %1819  ;;  %vm2073_vm1 = vweird.f32 %v4097_v53 }
 0xae9   :  { %v1858_v17 = vadd.f32 %v3976_v59, %v1820_v1  ;;  %v2021_v25 = vpop.xlane.xlu1 %2020  ;;  %v1941_v19 = vpop.xlane.xlu0 %1940  ;;  %vm4118_vm9 = vmor %vm2072_vm5, %vm2073_vm1 }
 0xaea   :  { %v2069_v31 = vsub.f32 1.0, %v2068_v58  ;;  %2724 = vrcp.f32 %v2021_v25  ;;  %v1964_v5 = vsub.f32 %v4044_v13, %v1941_v19  ;;  %v2061_v4 = vand.u32 2147483647, %v2021_v25 }
 0xaeb   :  { %v1890_v6 = vmul.f32 0.2, %v1858_v17  ;;  %vm1874_vm3 = vcmp.gt.f32.partialorder %v1858_v17, 0.0  ;;  %v2063_v20 = vand.u32 2147483648, %v2021_v25  ;;  %vm2057_vm13 = vweird.f32 %v2021_v25 }
 0xaec   :  { %v2723_v12 = vpop.eup %2722  ;;  %v1988_v39 = vmul.f32 1.442695, %v1964_v5  ;;  %v2070_v35 = vmul.f32 %v4097_v53, %v2069_v31  ;;  %vm2062_vm14 = vcmp.eq.f32.partialorder %v2061_v4, 8.507059e+37 }
 0xaed   :  { %v4102_v16 = vmul.f32 %v2793_v50, %v2723_v12  ;;  %v1906_v48 = vsel %vm1874_vm3, %v1858_v17, %v1890_v6  ;;  %v2064_v43 = vor.u32 1.1754944e-38, %v2063_v20  ;;  %v2795_v17 = vld [vmem:[#allocation5 + $0x48] sm:$0xff] }
 0xaee   :  { %v4107_v14 = vsel %vm4297_vm0, %v1906_v48, -1e+30  ;;  %2726 = vpow2.f32 %v1988_v39  ;;  %v2071_v21 = vadd.f32 %v4097_v53, %v2070_v35 }
 0xaef   :  { %2034 = vadd.xlane.f32.xlu1 %v4102_v16  ;;  %1952 = vmax.xlane.f32.xlu2 %v4107_v14 }
 0xaf0   :  { %v2725_v28 = vpop.eup %2724  ;;  %v4111_v13 = vpop.xlane.xlu2 %2026  ;;  %v2075_v10 = vsel %vm4118_vm9, %v4097_v53, %v2071_v21 }
 0xaf1   :  { %v2053_v56 = vmul.f32 %v2725_v28, %v2021_v25  ;;  %2728 = vrcp.f32 %v4111_v13  ;;  %v1943_v27 = vpop.xlane.xlu1 %1942  ;;  %v1822_v22 = vpop.xlane.xlu0 %1821  ;;  %vm2058_vm11 = vweird.f32 %v2725_v28  ;;  %v2080_v61 = vsel %vm2077_vm12, %v2079_v42, %v2075_v10 }
 0xaf2   :  { %v1965_v34 = vsub.f32 %v4057_v63, %v1943_v27  ;;  %v1859_v18 = vadd.f32 %v3976_v59, %v1822_v22  ;;  %v2794_v63 = vld [vmem:[#allocation5 + $0x40] sm:$0xff]  ;;  %vm2059_vm6 = vmor %vm2057_vm13, %vm2058_vm11  ;;  %v2081_v58 = vmul.f32 %v2080_v61, %v4026_v36  ;;  %v2108_v48 = vand.u32 2147483648, %v4111_v13  ;;  %v2797_v61 = vld [vmem:[#allocation5 + $0x58] sm:$0xff] }
 0xaf3   :  { %v2054_v29 = vsub.f32 1.0, %v2053_v56  ;;  %vm2102_vm7 = vweird.f32 %v4111_v13 }
 0xaf4   :  { %v1990_v41 = vmul.f32 1.442695, %v1965_v34  ;;  %v1891_v32 = vmul.f32 0.2, %v1859_v18  ;;  %vm1875_vm8 = vcmp.gt.f32.partialorder %v1859_v18, 0.0  ;;  %v2727_v38 = vpop.eup %2726 }
 0xaf5   :  { %v2055_v11 = vmul.f32 %v2725_v28, %v2054_v29  ;;  %v4122_v47 = vmul.f32 %v2794_v63, %v2727_v38 }
 0xaf6   :  { %2730 = vpow2.f32 %v1990_v41  ;;  %v1907_v59 = vsel %vm1875_vm8, %v1859_v18, %v1891_v32  ;;  %v2109_v32 = vor.u32 1.1754944e-38, %v2108_v48 }
 0xaf7   :  { %v4127_v33 = vpop.eup %2728  ;;  %v2056_v49 = vadd.f32 %v2725_v28, %v2055_v11  ;;  %v4131_v45 = vsel %vm4300_vm15, %v1907_v59, -1e+30  ;;  %2036 = vadd.xlane.f32.xlu1 %v4122_v47 }
 0xaf8   :  { %v2098_v46 = vmul.f32 %v4127_v33, %v4111_v13  ;;  %v4136_v40 = vpop.xlane.xlu2 %2028  ;;  %1954 = vmax.xlane.f32.xlu0 %v4131_v45  ;;  %vm2103_vm2 = vweird.f32 %v4127_v33 }
 0xaf9   :  { %v4139_v37 = vpop.xlane.xlu1 %2024  ;;  %v1945_v0 = vpop.xlane.xlu0 %1944  ;;  %v2060_v44 = vsel %vm2059_vm6, %v2725_v28, %v2056_v49  ;;  %vm4165_vm10 = vmor %vm2102_vm7, %vm2103_vm2  ;;  %vm2117_vm15 = vweird.f32 %v4136_v40 }
 0xafa   :  { %v2099_v55 = vsub.f32 1.0, %v2098_v46  ;;  %2732 = vrcp.f32 %v4139_v37  ;;  %v1966_v3 = vsub.f32 %v4069_v15, %v1945_v0  ;;  %v2065_v57 = vsel %vm2062_vm14, %v2064_v43, %v2060_v44 }
 0xafb   :  { %v2066_v53 = vmul.f32 %v2065_v57, %v4040_v51  ;;  %2734 = vrcp.f32 %v4136_v40  ;;  %v2093_v56 = vand.u32 2147483648, %v4139_v37  ;;  %v2091_v18 = vand.u32 2147483647, %v4139_v37 }
 0xafc   :  { %v2731_v62 = vpop.eup %2730  ;;  %v1992_v1 = vmul.f32 1.442695, %v1966_v3  ;;  %v2100_v19 = vmul.f32 %v4127_v33, %v2099_v55  ;;  %vm2087_vm3 = vweird.f32 %v4139_v37 }
 0xafd   :  { %v4146_v25 = vmul.f32 %v2795_v17, %v2731_v62  ;;  %v2292_v31 = vpack.c.bf16 %v2081_v58, %v2066_v53  ;;  %v2094_v20 = vor.u32 1.1754944e-38, %v2093_v56  ;;  %vm2092_vm5 = vcmp.eq.f32.partialorder %v2091_v18, 8.507059e+37  ;;  %v2798_v62 = vld [vmem:[#allocation5 + $0x68] sm:$0xff] }
 0xafe   :  { %2736 = vpow2.f32 %v1992_v1  ;;  %v2101_v39 = vadd.f32 %v4127_v33, %v2100_v19  ;;  %v2123_v1 = vand.u32 2147483648, %v4136_v40  ;;  %v2121_v19 = vand.u32 2147483647, %v4136_v40 }
 0xaff   :  { %2038 = vadd.xlane.f32.xlu2 %v4146_v25  ;;  %2317 = vmatmul.bf16.vlgmr.msrb.gmra.mxu3 %v2292_v31 }
 0xb00   :  { %v2733_v6 = vpop.eup %2732  ;;  %vm2122_vm14 = vcmp.eq.f32.partialorder %v2121_v19, 8.507059e+37 }
 0xb01   :  { %v2083_v15 = vmul.f32 %v2733_v6, %v4139_v37  ;;  %v1947_v5 = vpop.xlane.xlu1 %1946  ;;  %v4151_v51 = vpop.xlane.xlu0 %2030  ;;  %vm2088_vm4 = vweird.f32 %v2733_v6 }
 0xb02   :  { %v1967_v36 = vsub.f32 %v4079_v23, %v1947_v5  ;;  %v1951_v12 = vpop.xlane.xlu2 %1950  ;;  %2738 = vrcp.f32 %v4151_v51  ;;  %v4157_v50 = vpop.eup %2734  ;;  %v2106_v23 = vand.u32 2147483647, %v4111_v13  ;;  %v2105_v13 = vsel %vm4165_vm10, %v4127_v33, %v2101_v39  ;;  %vm2089_vm0 = vmor %vm2087_vm3, %vm2088_vm4 }
 0xb03   :  { %v2084_v35 = vsub.f32 1.0, %v2083_v15  ;;  %v1969_v28 = vsub.f32 %v4083_v26, %v1951_v12  ;;  %v2113_v26 = vmul.f32 %v4157_v50, %v4136_v40  ;;  %vm2132_vm9 = vweird.f32 %v4151_v51 }
 0xb04   :  { %v1994_v27 = vmul.f32 1.442695, %v1967_v36  ;;  %v2737_v22 = vpop.eup %2736  ;;  %vm2107_vm1 = vcmp.eq.f32.partialorder %v2106_v23, 8.507059e+37  ;;  %vm2118_vm11 = vweird.f32 %v4157_v50  ;;  %v2136_v58 = vand.u32 2147483647, %v4151_v51 }
 0xb05   :  { %v2085_v21 = vmul.f32 %v2733_v6, %v2084_v35  ;;  %v1998_v34 = vmul.f32 1.442695, %v1969_v28  ;;  %v4171_v29 = vmul.f32 %v2796_v52, %v2737_v22  ;;  %v2110_v63 = vsel %vm2107_vm1, %v2109_v32, %v2105_v13  ;;  %vm2119_vm12 = vmor %vm2117_vm15, %vm2118_vm11 }
 0xb06   :  { %2740 = vpow2.f32 %v1994_v27  ;;  %v2114_v59 = vsub.f32 1.0, %v2113_v26  ;;  %v2111_v37 = vmul.f32 %v2110_v63, %v4050_v9  ;;  %v2138_v9 = vand.u32 2147483648, %v4151_v51 }
 0xb07   :  { %2742 = vpow2.f32 %v1998_v34  ;;  %v2086_v41 = vadd.f32 %v2733_v6, %v2085_v21  ;;  %2040 = vadd.xlane.f32.xlu0 %v4171_v29  ;;  %vm2137_vm6 = vcmp.eq.f32.partialorder %v2136_v58, 8.507059e+37 }
 0xb08   :  { %v2739_v38 = vpop.eup %2738  ;;  %v2115_v3 = vmul.f32 %v4157_v50, %v2114_v59  ;;  %v2139_v5 = vor.u32 1.1754944e-38, %v2138_v9  ;;  %v2801_v9 = vld [vmem:[#allocation5 + $0x78] sm:$0xff] }
 0xb09   :  { %v2128_v54 = vmul.f32 %v2739_v38, %v4151_v51  ;;  %v1949_v11 = vpop.xlane.xlu1 %1948  ;;  %v2090_v4 = vsel %vm2089_vm0, %v2733_v6, %v2086_v41  ;;  %vm2133_vm8 = vweird.f32 %v2739_v38  ;;  %v2799_v6 = vld [vmem:[#allocation5 + $0x60] sm:$0xff]  ;;  %v2124_v51 = vor.u32 1.1754944e-38, %v2123_v1  ;;  %v2033_v28 = vpop.xlane.xlu0 %2032 }
 0xb0a   :  { %v1968_v10 = vsub.f32 %v4092_v60, %v1949_v11  ;;  %v2095_v42 = vsel %vm2092_vm5, %v2094_v20, %v2090_v4  ;;  %v2116_v53 = vadd.f32 %v4157_v50, %v2115_v3  ;;  %vm2134_vm13 = vmor %vm2132_vm9, %vm2133_vm8  ;;  %v2153_v13 = vand.u32 2147483648, %v2033_v28  ;;  %v2800_v4 = vld [vmem:[#allocation5 + $0x70] sm:$0xff] }
 0xb0b   :  { %v2129_v33 = vsub.f32 1.0, %v2128_v54  ;;  %v2096_v43 = vmul.f32 %v2095_v42, %v4064_v30  ;;  %vm2147_vm7 = vweird.f32 %v2033_v28  ;;  %v2151_v54 = vand.u32 2147483647, %v2033_v28 }
 0xb0c   :  { %v2741_v49 = vpop.eup %2740  ;;  %v1996_v46 = vmul.f32 1.442695, %v1968_v10  ;;  %v2120_v36 = vsel %vm2119_vm12, %v4157_v50, %v2116_v53 }
 0xb0d   :  { %v2743_v0 = vpop.eup %2742  ;;  %v2130_v44 = vmul.f32 %v2739_v38, %v2129_v33  ;;  %v4182_v55 = vmul.f32 %v2797_v61, %v2741_v49  ;;  %v2293_v57 = vpack.c.bf16 %v2111_v37, %v2096_v43  ;;  %v2125_v39 = vsel %vm2122_vm14, %v2124_v51, %v2120_v36 }
 0xb0e   :  { %2744 = vpow2.f32 %v1996_v46  ;;  %v4185_v60 = vmul.f32 %v2798_v62, %v2743_v0  ;;  %v2126_v35 = vmul.f32 %v2125_v39, %v4062_v2  ;;  %v2154_v33 = vor.u32 1.1754944e-38, %v2153_v13 }
 0xb0f   :  { %2042 = vadd.xlane.f32.xlu1 %v4182_v55  ;;  %2322 = vmatmul.bf16.gmra.mxu3 %v2293_v57  ;;  %v2131_v30 = vadd.f32 %v2739_v38, %v2130_v44  ;;  %2746 = vrcp.f32 %v2033_v28  ;;  %vm2152_vm0 = vcmp.eq.f32.partialorder %v2151_v54, 8.507059e+37 }
 0xb10   :  { %2046 = vadd.xlane.f32.xlu0 %v4185_v60 }
 0xb11   :  { %v2135_v31 = vsel %vm2134_vm13, %v2739_v38, %v2131_v30 }
 0xb12   :  { %v2140_v12 = vsel %vm2137_vm6, %v2139_v5, %v2135_v31 }
 0xb13   :  { %v2141_v48 = vmul.f32 %v2140_v12, %v4075_v8 }
 0xb14   :  { %v2745_v17 = vpop.eup %2744 }
 0xb15   :  { %v4197_v15 = vmul.f32 %v2799_v6, %v2745_v17  ;;  %v2294_v40 = vpack.c.bf16 %v2141_v48, %v2126_v35  ;;  %v2747_v56 = vpop.eup %2746 }
 0xb16   :  { %v2143_v27 = vmul.f32 %v2747_v56, %v2033_v28  ;;  %vm2148_vm2 = vweird.f32 %v2747_v56 }
 0xb17   :  { %2044 = vadd.xlane.f32.xlu2 %v4197_v15  ;;  %vm2149_vm4 = vmor %vm2147_vm7, %vm2148_vm2 }
 0xb18   :  { %v2144_v50 = vsub.f32 1.0, %v2143_v27 }
 0xb1a   :  { %v2145_v18 = vmul.f32 %v2747_v56, %v2144_v50 }
 0xb1c   :  { %v2146_v52 = vadd.f32 %v2747_v56, %v2145_v18 }
 0xb1e   :  { %v2150_v59 = vsel %vm2149_vm4, %v2747_v56, %v2146_v52 }
 0xb1f   :  { %2327 = vmatmul.bf16.gmra.mxu3 %v2294_v40  ;;  %v2155_v46 = vsel %vm2152_vm0, %v2154_v33, %v2150_v59 }
 0xb20   :  { %v2156_v3 = vmul.f32 %v2155_v46, %v4088_v24 }
 0xb62   :  { %v2035_v23 = vpop.xlane.xlu1 %2034  ;;  %v1953_v22 = vpop.xlane.xlu2 %1952 }
 0xb63   :  { %2748 = vrcp.f32 %v2035_v23  ;;  %v1970_v21 = vsub.f32 %v4107_v14, %v1953_v22  ;;  %v2168_v11 = vand.u32 2147483648, %v2035_v23  ;;  %v2166_v10 = vand.u32 2147483647, %v2035_v23 }
 0xb64   :  { %vm2162_vm3 = vweird.f32 %v2035_v23 }
 0xb65   :  { %v2000_v34 = vmul.f32 1.442695, %v1970_v21  ;;  %v2169_v37 = vor.u32 1.1754944e-38, %v2168_v11  ;;  %vm2167_vm5 = vcmp.eq.f32.partialorder %v2166_v10, 8.507059e+37 }
 0xb67   :  { %2750 = vpow2.f32 %v2000_v34 }
 0xb69   :  { %v2749_v7 = vpop.eup %2748 }
 0xb6a   :  { %v2158_v26 = vmul.f32 %v2749_v7, %v2035_v23  ;;  %v4204_v8 = vpop.xlane.xlu1 %2036  ;;  %vm2163_vm10 = vweird.f32 %v2749_v7 }
 0xb6b   :  { %v1955_v2 = vpop.xlane.xlu0 %1954  ;;  %2752 = vrcp.f32 %v4204_v8  ;;  %vm2164_vm1 = vmor %vm2162_vm3, %vm2163_vm10  ;;  %v2183_v24 = vand.u32 2147483648, %v4204_v8  ;;  %vm2177_vm9 = vweird.f32 %v4204_v8 }
 0xb6c   :  { %v2159_v41 = vsub.f32 1.0, %v2158_v26  ;;  %v1971_v38 = vsub.f32 %v4131_v45, %v1955_v2 }
 0xb6d   :  { %v2751_v32 = vpop.eup %2750  ;;  %v2184_v40 = vor.u32 1.1754944e-38, %v2183_v24 }
 0xb6e   :  { %v2160_v14 = vmul.f32 %v2749_v7, %v2159_v41  ;;  %v4208_v20 = vmul.f32 %v2800_v4, %v2751_v32  ;;  %v2002_v63 = vmul.f32 1.442695, %v1971_v38 }
 0xb70   :  { %2048 = vadd.xlane.f32.xlu1 %v4208_v20  ;;  %v2161_v42 = vadd.f32 %v2749_v7, %v2160_v14  ;;  %2754 = vpow2.f32 %v2002_v63 }
 0xb71   :  { %v2753_v45 = vpop.eup %2752 }
 0xb72   :  { %v2039_v49 = vpop.xlane.xlu2 %2038  ;;  %v2165_v43 = vsel %vm2164_vm1, %v2749_v7, %v2161_v42  ;;  %v2173_v0 = vmul.f32 %v2753_v45, %v4204_v8  ;;  %vm2178_vm8 = vweird.f32 %v2753_v45 }
 0xb73   :  { %2756 = vrcp.f32 %v2039_v49  ;;  %v2170_v44 = vsel %vm2167_vm5, %v2169_v37, %v2165_v43  ;;  %vm4220_vm13 = vmor %vm2177_vm9, %vm2178_vm8  ;;  %v2198_v12 = vand.u32 2147483648, %v2039_v49  ;;  %vm2192_vm15 = vweird.f32 %v2039_v49 }
 0xb74   :  { %v2174_v61 = vsub.f32 1.0, %v2173_v0  ;;  %v2171_v57 = vmul.f32 %v2170_v44, %v4102_v16  ;;  %v2181_v16 = vand.u32 2147483647, %v4204_v8  ;;  %v2196_v39 = vand.u32 2147483647, %v2039_v49 }
 0xb75   :  { %v2199_v23 = vor.u32 1.1754944e-38, %v2198_v12 }
 0xb76   :  { %v2755_v62 = vpop.eup %2754  ;;  %v2295_v30 = vpack.c.bf16 %v2171_v57, %v2156_v3  ;;  %v2175_v1 = vmul.f32 %v2753_v45, %v2174_v61  ;;  %vm2182_vm6 = vcmp.eq.f32.partialorder %v2181_v16, 8.507059e+37  ;;  %vm2197_vm14 = vcmp.eq.f32.partialorder %v2196_v39, 8.507059e+37 }
 0xb77   :  { %v4214_v53 = vmul.f32 %v2801_v9, %v2755_v62 }
 0xb78   :  { %2332 = vmatmul.bf16.gmra.mxu3 %v2295_v30  ;;  %v2176_v6 = vadd.f32 %v2753_v45, %v2175_v1 }
 0xb79   :  { %v2757_v58 = vpop.eup %2756  ;;  %2050 = vadd.xlane.f32.xlu2 %v4214_v53 }
 0xb7a   :  { %v2188_v17 = vmul.f32 %v2757_v58, %v2039_v49  ;;  %v2041_v19 = vpop.xlane.xlu0 %2040  ;;  %vm2193_vm11 = vweird.f32 %v2757_v58  ;;  %v2180_v48 = vsel %vm4220_vm13, %v2753_v45, %v2176_v6 }
 0xb7b   :  { %2758 = vrcp.f32 %v2041_v19  ;;  %vm2194_vm12 = vmor %vm2192_vm15, %vm2193_vm11  ;;  %v2185_v22 = vsel %vm2182_vm6, %v2184_v40, %v2180_v48  ;;  %v2213_v32 = vand.u32 2147483648, %v2041_v19  ;;  %vm2207_vm7 = vweird.f32 %v2041_v19 }
 0xb7c   :  { %v2189_v31 = vsub.f32 1.0, %v2188_v17  ;;  %v2186_v7 = vmul.f32 %v2185_v22, %v4122_v47  ;;  %v2211_v54 = vand.u32 2147483647, %v2041_v19 }
 0xb7d   :  { %v2214_v59 = vor.u32 1.1754944e-38, %v2213_v32 }
 0xb7e   :  { %v2190_v5 = vmul.f32 %v2757_v58, %v2189_v31  ;;  %vm2212_vm0 = vcmp.eq.f32.partialorder %v2211_v54, 8.507059e+37 }
 0xb80   :  { %v2191_v51 = vadd.f32 %v2757_v58, %v2190_v5 }
 0xb81   :  { %v2759_v35 = vpop.eup %2758 }
 0xb82   :  { %v2043_v28 = vpop.xlane.xlu1 %2042  ;;  %v2203_v56 = vmul.f32 %v2759_v35, %v2041_v19  ;;  %v2195_v27 = vsel %vm2194_vm12, %v2757_v58, %v2191_v51  ;;  %vm2208_vm2 = vweird.f32 %v2759_v35 }
 0xb83   :  { %2760 = vrcp.f32 %v2043_v28  ;;  %v4226_v21 = vpop.xlane.xlu0 %2046  ;;  %v2200_v34 = vsel %vm2197_vm14, %v2199_v23, %v2195_v27  ;;  %v2228_v14 = vand.u32 2147483648, %v2043_v28  ;;  %vm4231_vm4 = vmor %vm2207_vm7, %vm2208_vm2  ;;  %v2226_v4 = vand.u32 2147483647, %v2043_v28 }
 0xb84   :  { %v2204_v50 = vsub.f32 1.0, %v2203_v56  ;;  %v2201_v26 = vmul.f32 %v2200_v34, %v4146_v25  ;;  %2762 = vrcp.f32 %v4226_v21  ;;  %vm2222_vm3 = vweird.f32 %v2043_v28 }
 0xb85   :  { %v2229_v42 = vor.u32 1.1754944e-38, %v2228_v14  ;;  %vm2227_vm5 = vcmp.eq.f32.partialorder %v2226_v4, 8.507059e+37  ;;  %v2258_v19 = vand.u32 2147483648, %v4226_v21  ;;  %vm2252_vm15 = vweird.f32 %v4226_v21 }
 0xb86   :  { %v2205_v18 = vmul.f32 %v2759_v35, %v2204_v50  ;;  %v2296_v2 = vpack.c.bf16 %v2201_v26, %v2186_v7 }
 0xb87   :  { %v2259_v24 = vor.u32 1.1754944e-38, %v2258_v19 }
 0xb88   :  { %v2206_v41 = vadd.f32 %v2759_v35, %v2205_v18  ;;  %2337 = vmatmul.bf16.gmra.mxu3 %v2296_v2 }
 0xb89   :  { %v2761_v8 = vpop.eup %2760 }
 0xb8a   :  { %v2218_v52 = vmul.f32 %v2761_v8, %v2043_v28  ;;  %v2045_v13 = vpop.xlane.xlu2 %2044  ;;  %v2763_v11 = vpop.eup %2762  ;;  %vm2223_vm10 = vweird.f32 %v2761_v8  ;;  %v2210_v63 = vsel %vm4231_vm4, %v2759_v35, %v2206_v41 }
 0xb8b   :  { %2764 = vrcp.f32 %v2045_v13  ;;  %vm2224_vm1 = vmor %vm2222_vm3, %vm2223_vm10  ;;  %v2248_v45 = vmul.f32 %v2763_v11, %v4226_v21  ;;  %v2215_v46 = vsel %vm2212_vm0, %v2214_v59, %v2210_v63  ;;  %v2243_v58 = vand.u32 2147483648, %v2045_v13  ;;  %v2318_v41 = vpop.f32.mrf.mxu3 }
 0xb8c   :  { %v2219_v38 = vsub.f32 1.0, %v2218_v52  ;;  %v2216_v3 = vmul.f32 %v2215_v46, %v4171_v29  ;;  %vm2253_vm9 = vweird.f32 %v2763_v11  ;;  %vm2237_vm11 = vweird.f32 %v2045_v13 }
 0xb8d   :  { %v2249_v61 = vsub.f32 1.0, %v2248_v45  ;;  %v2241_v17 = vand.u32 2147483647, %v2045_v13  ;;  %vm2254_vm12 = vmor %vm2252_vm15, %vm2253_vm9  ;;  %v2244_v29 = vor.u32 1.1754944e-38, %v2243_v58 }
 0xb8e   :  { %v2220_v25 = vmul.f32 %v2761_v8, %v2219_v38 }
 0xb8f   :  { %v2250_v30 = vmul.f32 %v2763_v11, %v2249_v61  ;;  %vm2242_vm6 = vcmp.eq.f32.partialorder %v2241_v17, 8.507059e+37 }
 0xb90   :  { %v2221_v10 = vadd.f32 %v2761_v8, %v2220_v25 }
 0xb91   :  { %v2765_v33 = vpop.eup %2764  ;;  %v2251_v1 = vadd.f32 %v2763_v11, %v2250_v30 }
 0xb92   :  { %v2233_v49 = vmul.f32 %v2765_v33, %v2045_v13  ;;  %v2225_v43 = vsel %vm2224_vm1, %v2761_v8, %v2221_v10  ;;  %vm2238_vm8 = vweird.f32 %v2765_v33 }
 0xb93   :  { %v2230_v37 = vsel %vm2227_vm5, %v2229_v42, %v2225_v43  ;;  %vm2239_vm13 = vmor %vm2237_vm11, %vm2238_vm8  ;;  %v2255_v6 = vsel %vm2254_vm12, %v2763_v11, %v2251_v1  ;;  %v2320_v11 = vpop.f32.mrf.mxu3 }
 0xb94   :  { %v2234_v0 = vsub.f32 1.0, %v2233_v49  ;;  %v2231_v44 = vmul.f32 %v2230_v37, %v4182_v55  ;;  %v2256_v55 = vand.u32 2147483647, %v4226_v21 }
 0xb96   :  { %v2235_v57 = vmul.f32 %v2765_v33, %v2234_v0  ;;  %v2297_v62 = vpack.c.bf16 %v2231_v44, %v2216_v3  ;;  %vm2257_vm14 = vcmp.eq.f32.partialorder %v2256_v55, 8.507059e+37  ;;  %v2576_v0 = vld [vmem:[#allocation13 + $0x8] ss:$0 sm:$0xff] }
 0xb97   :  { %v2260_v16 = vsel %vm2257_vm14, %v2259_v24, %v2255_v6  ;;  %v2319_v6 = vadd.f32 %v2576_v0, %v2318_v41  ;;  %v2358_v24 = vld [vmem:[#allocation7] sm:$0xff] }
 0xb98   :  { %v2236_v9 = vadd.f32 %v2765_v33, %v2235_v57  ;;  %2342 = vmatmul.bf16.gmra.mxu3 %v2297_v62  ;;  %v2261_v51 = vmul.f32 %v2260_v16, %v4185_v60  ;;  %v2393_v16 = vld [vmem:[#allocation14 + $0x70] sm:$0xff] }
 0xb9a   :  { %v2240_v31 = vsel %vm2239_vm13, %v2765_v33, %v2236_v9 }
 0xb9b   :  { %v2245_v5 = vsel %vm2242_vm6, %v2244_v29, %v2240_v31  ;;  %v2323_v47 = vpop.f32.mrf.mxu3  ;;  %v2321_v29 = vadd.f32 %v2576_v0, %v2320_v11 }
 0xb9c   :  { %v2246_v36 = vmul.f32 %v2245_v5, %v4197_v15  ;;  %v2324_v31 = vadd.f32 %v2576_v0, %v2323_v47  ;;  %v2394_v5 = vld [vmem:[#allocation14 + $0x78] sm:$0xff] }
 0xb9e   :  { %v2298_v12 = vpack.c.bf16 %v2261_v51, %v2246_v36  ;;  %v2392_v36 = vld [vmem:[#allocation14 + $0x68] sm:$0xff]  ;;  %v2391_v51 = vld [vmem:[#allocation14 + $0x60] sm:$0xff] }
 0xba3   :  { %v2325_v25 = vpop.f32.mrf.mxu3 }
 0xba4   :  { %v2326_v55 = vadd.f32 %v2576_v0, %v2325_v25 }
 0xba8   :  { %2347 = vmatmul.bf16.gmra.mxu3 %v2298_v12  ;;  %v2390_v12 = vld [vmem:[#allocation14 + $0x58] sm:$0xff] }
 0xbab   :  { %v2328_v4 = vpop.f32.mrf.mxu3 }
 0xbac   :  { %v2329_v19 = vadd.f32 %v2576_v0, %v2328_v4 }
 0xbb3   :  { %v2330_v63 = vpop.f32.mrf.mxu3 }
 0xbb4   :  { %v2331_v17 = vadd.f32 %v2576_v0, %v2330_v63 }
 0xbe3   :  { %v2049_v39 = vpop.xlane.xlu1 %2048 }
 0xbe4   :  { %2766 = vrcp.f32 %v2049_v39  ;;  %v2273_v50 = vand.u32 2147483648, %v2049_v39  ;;  %vm2267_vm7 = vweird.f32 %v2049_v39  ;;  %v2271_v21 = vand.u32 2147483647, %v2049_v39 }
 0xbe6   :  { %v2274_v26 = vor.u32 1.1754944e-38, %v2273_v50  ;;  %vm2272_vm3 = vcmp.eq.f32.partialorder %v2271_v21, 8.507059e+37  ;;  %v2380_v50 = vld [vmem:[#allocation14 + $0x8] sm:$0xff]  ;;  %v2379_v21 = vld [vmem:[#allocation14] sm:$0xff] }
 0xbea   :  { %v2767_v48 = vpop.eup %2766 }
 0xbeb   :  { %v2263_v35 = vmul.f32 %v2767_v48, %v2049_v39  ;;  %vm2268_vm2 = vweird.f32 %v2767_v48  ;;  %v2389_v39 = vld [vmem:[#allocation14 + $0x50] sm:$0xff] }
 0xbec   :  { %v2051_v28 = vpop.xlane.xlu2 %2050  ;;  %vm2269_vm4 = vmor %vm2267_vm7, %vm2268_vm2 }
 0xbed   :  { %v2264_v40 = vsub.f32 1.0, %v2263_v35  ;;  %2768 = vrcp.f32 %v2051_v28  ;;  %v2288_v60 = vand.u32 2147483648, %v2051_v28  ;;  %v2286_v7 = vand.u32 2147483647, %v2051_v28  ;;  %v2387_v35 = vld [vmem:[#allocation14 + $0x40] sm:$0xff] }
 0xbee   :  { %vm2282_vm0 = vweird.f32 %v2051_v28 }
 0xbef   :  { %v2265_v56 = vmul.f32 %v2767_v48, %v2264_v40  ;;  %v2289_v2 = vor.u32 1.1754944e-38, %v2288_v60  ;;  %vm2287_vm5 = vcmp.eq.f32.partialorder %v2286_v7, 8.507059e+37  ;;  %v2386_v40 = vld [vmem:[#allocation14 + $0x38] sm:$0xff] }
 0xbf0   :  { %v2577_v60 = vld [vmem:[#allocation13 + $0x9] ss:$0 sm:$0xff] }
 0xbf1   :  { %v2266_v23 = vadd.f32 %v2767_v48, %v2265_v56  ;;  %v2384_v56 = vld [vmem:[#allocation14 + $0x28] sm:$0xff] }
 0xbf3   :  { %v2769_v27 = vpop.eup %2768  ;;  %v2270_v34 = vsel %vm2269_vm4, %v2767_v48, %v2266_v23  ;;  %v2388_v48 = vld [vmem:[#allocation14 + $0x48] sm:$0xff]  ;;  %v2382_v23 = vld [vmem:[#allocation14 + $0x18] sm:$0xff] }
 0xbf4   :  { %v2278_v22 = vmul.f32 %v2769_v27, %v2051_v28  ;;  %vm2283_vm10 = vweird.f32 %v2769_v27  ;;  %v2275_v52 = vsel %vm2272_vm3, %v2274_v26, %v2270_v34  ;;  %v2385_v28 = vld [vmem:[#allocation14 + $0x30] sm:$0xff] }
 0xbf5   :  { %vm2284_vm1 = vmor %vm2282_vm0, %vm2283_vm10  ;;  %v2276_v38 = vmul.f32 %v2275_v52, %v4208_v20 }
 0xbf6   :  { %v2279_v15 = vsub.f32 1.0, %v2278_v22  ;;  %v2381_v22 = vld [vmem:[#allocation14 + $0x10] sm:$0xff] }
 0xbf8   :  { %v2280_v18 = vmul.f32 %v2769_v27, %v2279_v15 }
 0xbfa   :  { %v2281_v8 = vadd.f32 %v2769_v27, %v2280_v18 }
 0xbfb   :  { %v2333_v59 = vpop.f32.mrf.mxu3 }
 0xbfc   :  { %v2285_v13 = vsel %vm2284_vm1, %v2769_v27, %v2281_v8  ;;  %v2334_v1 = vadd.f32 %v2576_v0, %v2333_v59  ;;  %v2383_v27 = vld [vmem:[#allocation14 + $0x20] sm:$0xff] }
 0xbfd   :  { %v2290_v32 = vsel %vm2287_vm5, %v2289_v2, %v2285_v13 }
 0xbfe   :  { %v2291_v54 = vmul.f32 %v2290_v32, %v4214_v53 }
 0xc00   :  { %v2299_v14 = vpack.c.bf16 %v2291_v54, %v2276_v38 }
 0xc02   :  { %2352 = vmatmul.bf16.gmra.mxu3 %v2299_v14 }
 0xc03   :  { %v2335_v10 = vpop.f32.mrf.mxu3 }
 0xc04   :  { %v2336_v58 = vadd.f32 %v2576_v0, %v2335_v10 }
 0xc0b   :  { %v2338_v33 = vpop.f32.mrf.mxu3 }
 0xc0c   :  { %v2339_v9 = vadd.f32 %v2576_v0, %v2338_v33 }
 0xc13   :  { %v2340_v42 = vpop.f32.mrf.mxu3 }
 0xc14   :  { %v2341_v30 = vadd.f32 %v2576_v0, %v2340_v42 }
 0xc1b   :  { %v2343_v45 = vpop.f32.mrf.mxu3 }
 0xc1c   :  { %v2344_v62 = vadd.f32 %v2576_v0, %v2343_v45 }
 0xc23   :  { %v2345_v49 = vpop.f32.mrf.mxu3 }
 0xc24   :  { %v2346_v57 = vadd.f32 %v2576_v0, %v2345_v49 }
 0xc2b   :  { %v2348_v46 = vpop.f32.mrf.mxu3 }
 0xc2c   :  { %v2349_v3 = vadd.f32 %v2576_v0, %v2348_v46 }
 0xc33   :  { %v2350_v43 = vpop.f32.mrf.mxu3 }
 0xc34   :  { %v2351_v61 = vadd.f32 %v2576_v0, %v2350_v43 }
 0xc85   :  { %v2353_v37 = vpop.f32.mrf.mxu3 }
 0xc86   :  { %v2354_v53 = vadd.f32 %v2576_v0, %v2353_v37 }
 0xc8d   :  { %v2355_v20 = vpop.f32.mrf.mxu3 }
 0xc8e   :  { %v2356_v44 = vadd.f32 %v2576_v0, %v2355_v20 }
 0xc90   :  { %2359 = vmatpush.msra.mxu2 %v2356_v44 }
 0xc92   :  { %2360 = vmatpush.msra.mxu2 %v2354_v53 }
 0xc94   :  { %2361 = vmatpush.msra.mxu2 %v2351_v61 }
 0xc96   :  { %2362 = vmatpush.msra.mxu2 %v2349_v3 }
 0xc98   :  { %2363 = vmatpush.msra.mxu2 %v2346_v57 }
 0xc9a   :  { %2364 = vmatpush.msra.mxu2 %v2344_v62 }
 0xc9c   :  { %2365 = vmatpush.msra.mxu2 %v2341_v30 }
 0xc9e   :  { %2366 = vmatpush.msra.mxu2 %v2339_v9 }
 0xca0   :  { %2367 = vmatpush.msra.mxu2 %v2336_v58 }
 0xca2   :  { %2368 = vmatpush.msra.mxu2 %v2334_v1 }
 0xca4   :  { %2369 = vmatpush.msra.mxu2 %v2331_v17 }
 0xca6   :  { %2370 = vmatpush.msra.mxu2 %v2329_v19 }
 0xca8   :  { %2371 = vmatpush.msra.mxu2 %v2326_v55 }
 0xcaa   :  { %2372 = vmatpush.msra.mxu2 %v2324_v31 }
 0xcac   :  { %2373 = vmatpush.msra.mxu2 %v2321_v29 }
 0xcae   :  { %2374 = vmatpush.msra.mxu2 %v2319_v6 }
 0xcaf   :  { %2375 = vmatmul.f32.vlgmr.msra.gmra.mxu2 %v2358_v24 }
 0xcb0   :  { %2396 = vmatpush.msrb.mxu2 %v2394_v5 }
 0xcb2   :  { %2397 = vmatpush.msrb.mxu2 %v2393_v16 }
 0xcb4   :  { %2398 = vmatpush.msrb.mxu2 %v2392_v36 }
 0xcb6   :  { %2399 = vmatpush.msrb.mxu2 %v2391_v51 }
 0xcb8   :  { %2400 = vmatpush.msrb.mxu2 %v2390_v12 }
 0xcba   :  { %2401 = vmatpush.msrb.mxu2 %v2389_v39 }
 0xcbc   :  { %2402 = vmatpush.msrb.mxu2 %v2388_v48 }
 0xcbe   :  { %2403 = vmatpush.msrb.mxu2 %v2387_v35 }
 0xcc0   :  { %2404 = vmatpush.msrb.mxu2 %v2386_v40 }
 0xcc2   :  { %2405 = vmatpush.msrb.mxu2 %v2385_v28 }
 0xcc4   :  { %2406 = vmatpush.msrb.mxu2 %v2384_v56 }
 0xcc6   :  { %2407 = vmatpush.msrb.mxu2 %v2383_v27 }
 0xcc8   :  { %2408 = vmatpush.msrb.mxu2 %v2382_v23 }
 0xcca   :  { %2409 = vmatpush.msrb.mxu2 %v2381_v22 }
 0xccc   :  { %2410 = vmatpush.msrb.mxu2 %v2380_v50 }
 0xcce   :  { %2411 = vmatpush.msrb.mxu2 %v2379_v21 }
 0xd32   :  { %v2376_v15 = vpop.f32.mrf.mxu2 }
 0xd33   :  { %2412 = vmatmul.f32.vlgmr.msrb.gmra.mxu2 %v2376_v15 }
 0xdb6   :  { %v2413_v34 = vpop.f32.mrf.mxu2 }
 0xdb7   :  { %v2414_v18 = vadd.f32 %v2577_v60, %v2413_v34 }
 0xdb9   :  { %2416 = vst [vmem:[#allocation16] sm:$0xff] %v2414_v18 }
 0xdba   :  { %2427 = dma.vmem_to_hbm [thread:$0]  %s2423_s13, 128, %s2425_s1, [#allocation4]  }
 0xdbb   :  { %3028 = dma.done.wait [#allocation4], 128  }
 0xdbc   :  { %3029 = vsyncadd [#allocation4], 4294967168 }
 0xdbd   :  { %2432 = vsyncpa [#allocation3], 1 }
 0xdbe   :  { %2433 = vsyncpa [#allocation6], 1 }
 0xdbf   :  { %2434 = vsyncpa [#allocation9], 1 }
 0xdc0   :  { %2435 = vsyncpa [#allocation12], 1 }
 0xdc1   :  { %2436 = vsyncpa [#allocation15], 1 }
 0xdc2   :  { %2437 = vsyncpa [#allocation4], 1 }

</bundles_post_ra>
